<compile_context>
chip_gen: v7x
topology: tpu7x:2x2x1
jax: 0.10.0
libtpu: 0.0.40
codegen_flags: <defaults>
</compile_context>

<pallas_src>
import math
import jax
import jax.numpy as jnp
from jax.experimental import pallas as pl
from jax.experimental.pallas import tpu as pltpu

# ---------------- model / problem sizes (module defaults, small node count) ----------
N       = 16          # number of graph nodes (patches)
E       = 64          # number of edges
IN_DIM  = 768         # data.x_img_cnn feature dim
H       = 128         # hidden_dim
H2      = 2 * H       # GENConv MLP expansion
H4      = 4 * H       # concat of 4 feature stages
C       = 4           # n_classes
NUM_GCN = 3           # num_layers - 1
LN_EPS  = 1e-5
GEN_EPS = 1e-7
PADL    = 128         # lane-dense output padding


# ------------------------------- Pallas kernel ---------------------------------------
def patchgcn_kernel(
        # --- VMEM / SMEM inputs (needed immediately, or tiny biases) ---
        x_ref, adj_ref, t_ref,
        fc_w, fc_b,
        g1w0, g2w0, g1b, gln_g, gln_b, g2b,
        dn_g, dn_b,
        phi_b, ab_b, cw_row, cb, rb, clb,
        # --- HBM (pl.ANY) inputs, streamed manually ---
        g1wr_hbm, g2wr_hbm, phiw_hbm, abw_hbm, rw_hbm, clw_hbm,
        # --- outputs ---
        logits_ref, apath_ref,
        # --- scratch ---
        g1wr, g2wr, phiw, abw, rw, clw,
        gcn_sem, late_sem):
    f32 = jnp.float32
    bf16 = jnp.bfloat16

    # Read the per-layer temperature scalars before any DMA waits
    # (waits break SMEM sst->sld forwarding).
    ts = [t_ref[l] for l in range(NUM_GCN)]

    # Stream the non-prologue weights HBM -> VMEM in consumption order, one DMA
    # per consumer chunk.  Each chunk is waited on right before the matmul that
    # needs it: fc + layer-0 hides layers 1/2, the GCN stack hides phi, the
    # phi / a|b matmuls hide the remaining chunks.
    cps_g1 = [pltpu.make_async_copy(g1wr_hbm.at[l], g1wr.at[l], gcn_sem.at[l, 0])
              for l in range(NUM_GCN - 1)]
    cps_g2 = [pltpu.make_async_copy(g2wr_hbm.at[l], g2wr.at[l], gcn_sem.at[l, 1])
              for l in range(NUM_GCN - 1)]
    for l in range(NUM_GCN - 1):
        cps_g1[l].start()
        cps_g2[l].start()
    cp_phi = pltpu.make_async_copy(phiw_hbm, phiw, late_sem.at[0]); cp_phi.start()
    cp_ab  = pltpu.make_async_copy(abw_hbm,  abw,  late_sem.at[1]); cp_ab.start()
    cp_rho = pltpu.make_async_copy(rw_hbm,   rw,   late_sem.at[2]); cp_rho.start()
    cp_cls = pltpu.make_async_copy(clw_hbm,  clw,  late_sem.at[3]); cp_cls.start()

    def layernorm(h, g, b):
        mu = jnp.mean(h, axis=-1, keepdims=True)
        var = jnp.mean((h - mu) ** 2, axis=-1, keepdims=True)
        return (h - mu) * jax.lax.rsqrt(var + LN_EPS) * g + b

    adj = adj_ref[...]                              # (N, N) bf16; adj[i, j] = #edges j->i

    def genconv(h, l, w1, w2):
        # GENConv (aggr='softmax') via dense adjacency matmuls.  Elementwise and
        # softmax math stays f32; all MXU operands are bf16 (f32 accumulation).
        t = ts[l]
        m = jnp.maximum(h, 0.0) + GEN_EPS           # messages relu(x_j) + eps
        # NOTE: per-feature global max cancels exactly in numer/denom; valid for
        # eval with t=1.0 (learn_t init).  For t<0 this shift would grow exp().
        shift = jnp.max(m, axis=0, keepdims=True)
        e = jnp.exp(t * (m - shift))
        # Fused pair of adjacency matmuls: one MXU pass producing [denom | numer].
        em = jnp.concatenate([e, e * m], axis=1).astype(bf16)       # (N, 2H)
        agg2 = jnp.dot(adj, em, preferred_element_type=f32)
        denom = agg2[:, :H]
        numer = agg2[:, H:]
        safe = jnp.where(denom > 0.0, denom, 1.0)
        agg = jnp.where(denom > 0.0, numer / safe, 0.0)             # no in-edges -> 0
        out = (agg + h).astype(bf16)                                # add x_dst (root)
        h1 = jnp.dot(out, w1, preferred_element_type=f32) + g1b[l]
        h1 = jnp.maximum(layernorm(h1, gln_g[l], gln_b[l]), 0.0)
        return jnp.dot(h1.astype(bf16), w2, preferred_element_type=f32) + g2b[l]

    # fc: Linear(768,128) -> ReLU  (dropout = identity at inference); x is bf16.
    x0 = jnp.maximum(
        jnp.dot(x_ref[...], fc_w[...], preferred_element_type=f32) + fc_b[...], 0.0)

    # layers[0].conv only (no norm / act / residual in the reference forward)
    x1 = genconv(x0, 0, g1w0[...], g2w0[...])
    feats = [x0, x1]

    # layers[1:], DeepGCNLayer block='res': x = x + relu(layernorm(conv(x)))
    x = x1
    for l in range(1, NUM_GCN):
        cps_g1[l - 1].wait()
        cps_g2[l - 1].wait()
        hh = genconv(x, l, g1wr[l - 1], g2wr[l - 1])
        hh = jnp.maximum(layernorm(hh, dn_g[l - 1], dn_b[l - 1]), 0.0)
        x = x + hh                                   # dropout(0.1) identity (eval)
        feats.append(x)

    h_path = jnp.concatenate(feats, axis=1).astype(bf16)            # (N, 4H)

    # path_phi: Linear(4H,4H) -> ReLU
    cp_phi.wait()
    h_phi = jnp.maximum(
        jnp.dot(h_path, phiw[...], preferred_element_type=f32) + phi_b[...], 0.0)

    # Attn_Net_Gated — fused a|b projection, attention_c as a lane reduction
    cp_ab.wait()
    ab = jnp.dot(h_phi.astype(bf16), abw[...], preferred_element_type=f32) + ab_b[...]
    a = jnp.tanh(ab[:, :H4])
    b = jax.nn.sigmoid(ab[:, H4:])
    A = jnp.sum((a * b) * cw_row[...], axis=-1, keepdims=True) + cb[...]   # (N, 1)
    apath_ref[...] = jnp.broadcast_to(A, (N, PADL))                 # lane-dense writeback

    # softmax over nodes + attention pooling as VPU/XLU reductions (no M=1 MXU pass)
    s = jnp.exp(A - jnp.max(A, axis=0, keepdims=True))
    w = s / jnp.sum(s, axis=0, keepdims=True)
    pooled = jnp.sum(w * h_phi, axis=0, keepdims=True)              # (1, 4H)

    # path_rho + classifier (classifier weight padded to 128 lanes)
    cp_rho.wait()
    hro = jnp.maximum(
        jnp.dot(pooled.astype(bf16), rw[...], preferred_element_type=f32) + rb[...], 0.0)
    cp_cls.wait()
    logits_ref[...] = jnp.dot(hro.astype(bf16), clw[...],
                              preferred_element_type=f32) + clb[...]


# ------------------------------- wrapper ----------------------------------------------
def patchgcn_forward(x, adj, p):
    bf16 = jnp.bfloat16
    vm = pl.BlockSpec(memory_space=pltpu.MemorySpace.VMEM)
    sm = pl.BlockSpec(memory_space=pltpu.MemorySpace.SMEM)
    hbm = pl.BlockSpec(memory_space=pl.ANY)

    # Pad classifier to lane-dense 128 columns (zeros -> identical first C columns).
    clw_pad = jnp.zeros((H4, PADL), jnp.float32).at[:, :C].set(p['clw'])
    clb_pad = jnp.zeros((1, PADL), jnp.float32).at[:, :C].set(p['clb'])
    ab_w = jnp.concatenate([p['aw'], p['bw']], axis=1).astype(bf16)   # (4H, 2*4H)
    ab_bias = jnp.concatenate([p['ab'], p['bb']], axis=1)             # (1, 2*4H)
    cw_row = p['cw'].T                                                # (1, 4H)

    args = (
        # prologue / tiny inputs (VMEM, SMEM)
        x.astype(bf16), adj.astype(bf16), p['t'],
        p['fc_w'].astype(bf16), p['fc_b'],
        p['g1w'][0].astype(bf16), p['g2w'][0].astype(bf16),
        p['g1b'], p['gln_g'], p['gln_b'], p['g2b'],
        p['dn_g'], p['dn_b'],
        p['phi_b'], ab_bias, cw_row, p['cb'], p['rb'], clb_pad,
        # streamed weights (HBM, manual DMA)
        p['g1w'][1:].astype(bf16), p['g2w'][1:].astype(bf16),
        p['phi_w'].astype(bf16), ab_w, p['rw'].astype(bf16), clw_pad.astype(bf16),
    )
    in_specs = [vm, vm, sm] + [vm] * 16 + [hbm] * 6

    logits_pad, apath_pad = pl.pallas_call(
        patchgcn_kernel,
        out_shape=(jax.ShapeDtypeStruct((1, PADL), jnp.float32),
                   jax.ShapeDtypeStruct((N, PADL), jnp.float32)),
        in_specs=in_specs,
        out_specs=(vm, vm),
        scratch_shapes=[
            pltpu.VMEM((NUM_GCN - 1, H, H2), bf16),     # g1w layers 1..
            pltpu.VMEM((NUM_GCN - 1, H2, H), bf16),     # g2w layers 1..
            pltpu.VMEM((H4, H4), bf16),                 # phi_w
            pltpu.VMEM((H4, 2 * H4), bf16),             # [aw | bw]
            pltpu.VMEM((H4, H4), bf16),                 # rho_w
            pltpu.VMEM((H4, PADL), bf16),               # classifier (padded)
            pltpu.SemaphoreType.DMA((NUM_GCN - 1, 2)),
            pltpu.SemaphoreType.DMA((4,)),
        ],
        compiler_params=pltpu.CompilerParams(vmem_limit_bytes=16 * 1024 * 1024),
        cost_estimate=pl.CostEstimate(flops=36_000_000,
                                      transcendentals=25_000,
                                      bytes_accessed=3_200_000),
    )(*args)

    logits = logits_pad[:, :C]
    A_path = apath_pad[:, 0].reshape(1, N)
    Y_prob = jax.nn.softmax(logits, axis=1)
    Y_hat = jnp.argmax(logits, axis=1, keepdims=True)      # torch.topk(logits,1)[1]
    return logits, Y_prob, Y_hat, A_path


# ------------------------------- parameter init ---------------------------------------
def init_params(key):
    keys = iter(jax.random.split(key, 64))

    def lin(fan_in, fan_out):
        bound = 1.0 / math.sqrt(fan_in)                    # torch Linear default init
        w = jax.random.uniform(next(keys), (fan_in, fan_out), jnp.float32, -bound, bound)
        b = jax.random.uniform(next(keys), (1, fan_out), jnp.float32, -bound, bound)
        return w, b

    p = {}
    p['fc_w'], p['fc_b'] = lin(IN_DIM, H)

    g1w, g1b, g2w, g2b = [], [], [], []
    for _ in range(NUM_GCN):
        w1, b1 = lin(H, H2)
        w2, b2 = lin(H2, H)
        g1w.append(w1); g1b.append(b1); g2w.append(w2); g2b.append(b2)
    p['g1w'] = jnp.stack(g1w); p['g1b'] = jnp.stack(g1b)
    p['g2w'] = jnp.stack(g2w); p['g2b'] = jnp.stack(g2b)
    p['gln_g'] = jnp.ones((NUM_GCN, 1, H2), jnp.float32)
    p['gln_b'] = jnp.zeros((NUM_GCN, 1, H2), jnp.float32)
    p['t'] = jnp.ones((NUM_GCN,), jnp.float32)             # learn_t, init t=1.0

    p['dn_g'] = jnp.ones((NUM_GCN - 1, 1, H), jnp.float32)  # DeepGCNLayer LayerNorms
    p['dn_b'] = jnp.zeros((NUM_GCN - 1, 1, H), jnp.float32)

    p['phi_w'], p['phi_b'] = lin(H4, H4)
    p['aw'], p['ab'] = lin(H4, H4)
    p['bw'], p['bb'] = lin(H4, H4)
    p['cw'], p['cb'] = lin(H4, 1)
    p['rw'], p['rb'] = lin(H4, H4)
    p['clw'], p['clb'] = lin(H4, C)
    return p


# ------------------------------- pure-JAX f32 reference --------------------------------
def reference_forward(x, adj, p):
    def layernorm(h, g, b):
        mu = jnp.mean(h, -1, keepdims=True)
        var = jnp.mean((h - mu) ** 2, -1, keepdims=True)
        return (h - mu) / jnp.sqrt(var + LN_EPS) * g + b

    def genconv(h, l):
        t = p['t'][l]
        m = jnp.maximum(h, 0.0) + GEN_EPS
        e = jnp.exp(t * (m - jnp.max(m, 0, keepdims=True)))
        denom = adj @ e
        numer = adj @ (e * m)
        agg = jnp.where(denom > 0, numer / jnp.where(denom > 0, denom, 1.0), 0.0)
        out = agg + h
        h1 = jnp.maximum(layernorm(out @ p['g1w'][l] + p['g1b'][l],
                                   p['gln_g'][l], p['gln_b'][l]), 0.0)
        return h1 @ p['g2w'][l] + p['g2b'][l]

    x0 = jnp.maximum(x @ p['fc_w'] + p['fc_b'], 0.0)
    feats = [x0]
    x1 = genconv(x0, 0); feats.append(x1)
    xx = x1
    for l in range(1, NUM_GCN):
        hh = jnp.maximum(layernorm(genconv(xx, l), p['dn_g'][l - 1], p['dn_b'][l - 1]), 0.0)
        xx = xx + hh
        feats.append(xx)
    h_path = jnp.concatenate(feats, axis=1)
    h_path = jnp.maximum(h_path @ p['phi_w'] + p['phi_b'], 0.0)
    a = jnp.tanh(h_path @ p['aw'] + p['ab'])
    b = jax.nn.sigmoid(h_path @ p['bw'] + p['bb'])
    A = (a * b) @ p['cw'] + p['cb']
    A_path = A.T
    w = jax.nn.softmax(A_path, axis=1)
    pooled = w @ h_path
    hro = jnp.maximum(pooled @ p['rw'] + p['rb'], 0.0)
    logits = hro @ p['clw'] + p['clb']
    return logits, A_path


# ------------------------------------ main ---------------------------------------------
if __name__ == "__main__":
    key = jax.random.PRNGKey(0)
    k_x, k_src, k_dst, k_p = jax.random.split(key, 4)

    x = jax.random.normal(k_x, (N, IN_DIM), jnp.float32)           # data.x_img_cnn
    src = jax.random.randint(k_src, (E,), 0, N)                    # data.x_img_cnn_edge
    dst = jax.random.randint(k_dst, (E,), 0, N)
    edge_index = jnp.stack([src, dst])                             # (2, E)
    # dense adjacency (glue, plain JAX): A[dst, src] counts edges src -> dst
    adj = jnp.zeros((N, N), jnp.float32).at[edge_index[1], edge_index[0]].add(1.0)

    params = init_params(k_p)

    logits, Y_prob, Y_hat, A_path = patchgcn_forward(x, adj, params)
    jax.block_until_ready((logits, Y_prob, Y_hat, A_path))

    ref_logits, ref_A = reference_forward(x, adj, params)
    assert jnp.all(jnp.isfinite(logits)) and jnp.all(jnp.isfinite(A_path))
    # bf16 MXU operands (f32 accumulation) -> slightly looser tolerance vs f32 reference
    assert jnp.allclose(logits, ref_logits, rtol=2e-2, atol=2e-2)
    assert jnp.allclose(A_path, ref_A, rtol=2e-2, atol=2e-2)
    assert logits.shape == (1, C) and Y_prob.shape == (1, C)
    assert Y_hat.shape == (1, 1) and A_path.shape == (1, N)

    # TODO(synk): dropout layers / ckpt_grad are training-only; modeled as identity (eval mode).
    print("KERNEL_OK")
</pallas_src>

<mosaic_0001>
module attributes {stable_mosaic.version = 11 : i64} {
  func.func @patchgcn_kernel(%arg0: memref<16x768xbf16, #tpu.memory_space<vmem>>, %arg1: memref<16x16xbf16, #tpu.memory_space<vmem>>, %arg2: memref<3xf32, #tpu.memory_space<smem>>, %arg3: memref<768x128xbf16, #tpu.memory_space<vmem>>, %arg4: memref<1x128xf32, #tpu.memory_space<vmem>>, %arg5: memref<128x256xbf16, #tpu.memory_space<vmem>>, %arg6: memref<256x128xbf16, #tpu.memory_space<vmem>>, %arg7: memref<3x1x256xf32, #tpu.memory_space<vmem>>, %arg8: memref<3x1x256xf32, #tpu.memory_space<vmem>>, %arg9: memref<3x1x256xf32, #tpu.memory_space<vmem>>, %arg10: memref<3x1x128xf32, #tpu.memory_space<vmem>>, %arg11: memref<2x1x128xf32, #tpu.memory_space<vmem>>, %arg12: memref<2x1x128xf32, #tpu.memory_space<vmem>>, %arg13: memref<1x512xf32, #tpu.memory_space<vmem>>, %arg14: memref<1x1024xf32, #tpu.memory_space<vmem>>, %arg15: memref<1x512xf32, #tpu.memory_space<vmem>>, %arg16: memref<1x1xf32, #tpu.memory_space<vmem>>, %arg17: memref<1x512xf32, #tpu.memory_space<vmem>>, %arg18: memref<1x128xf32, #tpu.memory_space<vmem>>, %arg19: memref<2x128x256xbf16, #tpu.memory_space<any>>, %arg20: memref<2x256x128xbf16, #tpu.memory_space<any>>, %arg21: memref<512x512xbf16, #tpu.memory_space<any>>, %arg22: memref<512x1024xbf16, #tpu.memory_space<any>>, %arg23: memref<512x512xbf16, #tpu.memory_space<any>>, %arg24: memref<512x128xbf16, #tpu.memory_space<any>>, %arg25: memref<1x128xf32, #tpu.memory_space<vmem>>, %arg26: memref<16x128xf32, #tpu.memory_space<vmem>>, %arg27: memref<2x128x256xbf16, #tpu.memory_space<vmem>>, %arg28: memref<2x256x128xbf16, #tpu.memory_space<vmem>>, %arg29: memref<512x512xbf16, #tpu.memory_space<vmem>>, %arg30: memref<512x1024xbf16, #tpu.memory_space<vmem>>, %arg31: memref<512x512xbf16, #tpu.memory_space<vmem>>, %arg32: memref<512x128xbf16, #tpu.memory_space<vmem>>, %arg33: memref<2x2x!tpu.dma_semaphore, #tpu.memory_space<semaphore_mem>>, %arg34: memref<4x!tpu.dma_semaphore, #tpu.memory_space<semaphore_mem>>) attributes {dimension_semantics = [], scalar_prefetch = 0 : i64, scratch_operands = 8 : i64, tpu.core_type = #tpu.core_type<tc>} {
    %c0 = arith.constant 0 : index
    %0 = memref.load %arg2[%c0] : memref<3xf32, #tpu.memory_space<smem>>
    %c1 = arith.constant 1 : index
    %1 = memref.load %arg2[%c1] : memref<3xf32, #tpu.memory_space<smem>>
    %c2 = arith.constant 2 : index
    %2 = memref.load %arg2[%c2] : memref<3xf32, #tpu.memory_space<smem>>
    %c0_i32 = arith.constant 0 : i32
    %c0_i32_0 = arith.constant 0 : i32
    %c0_i32_1 = arith.constant 0 : i32
    %c0_i32_2 = arith.constant 0 : i32
    %c0_i32_3 = arith.constant 0 : i32
    %c0_i32_4 = arith.constant 0 : i32
    %3 = tpu.memref_slice %arg19[%c0_i32, %c0_i32_3, %c0_i32_4] : memref<2x128x256xbf16, #tpu.memory_space<any>> -> memref<1x128x256xbf16, #tpu.memory_space<any>>
    %4 = tpu.memref_squeeze %3 : memref<1x128x256xbf16, #tpu.memory_space<any>> -> memref<128x256xbf16, #tpu.memory_space<any>>
    %c0_i32_5 = arith.constant 0 : i32
    %c0_i32_6 = arith.constant 0 : i32
    %5 = tpu.memref_slice %arg27[%c0_i32_0, %c0_i32_5, %c0_i32_6] : memref<2x128x256xbf16, #tpu.memory_space<vmem>> -> memref<1x128x256xbf16, #tpu.memory_space<vmem>>
    %6 = tpu.memref_squeeze %5 : memref<1x128x256xbf16, #tpu.memory_space<vmem>> -> memref<128x256xbf16, #tpu.memory_space<vmem>>
    %7 = tpu.memref_slice %arg33[%c0_i32_1, %c0_i32_2] : memref<2x2x!tpu.dma_semaphore, #tpu.memory_space<semaphore_mem>> -> memref<1x1x!tpu.dma_semaphore, #tpu.memory_space<semaphore_mem>>
    %8 = tpu.memref_squeeze %7 : memref<1x1x!tpu.dma_semaphore, #tpu.memory_space<semaphore_mem>> -> memref<!tpu.dma_semaphore, #tpu.memory_space<semaphore_mem>>
    tpu.enqueue_dma source(%4 : memref<128x256xbf16, #tpu.memory_space<any>>) target(%6 : memref<128x256xbf16, #tpu.memory_space<vmem>>) target_semaphore(%8 : memref<!tpu.dma_semaphore, #tpu.memory_space<semaphore_mem>>)
    %c0_i32_7 = arith.constant 0 : i32
    %c0_i32_8 = arith.constant 0 : i32
    %c0_i32_9 = arith.constant 0 : i32
    %c1_i32 = arith.constant 1 : i32
    %c0_i32_10 = arith.constant 0 : i32
    %c0_i32_11 = arith.constant 0 : i32
    %9 = tpu.memref_slice %arg20[%c0_i32_7, %c0_i32_10, %c0_i32_11] : memref<2x256x128xbf16, #tpu.memory_space<any>> -> memref<1x256x128xbf16, #tpu.memory_space<any>>
    %10 = tpu.memref_squeeze %9 : memref<1x256x128xbf16, #tpu.memory_space<any>> -> memref<256x128xbf16, #tpu.memory_space<any>>
    %c0_i32_12 = arith.constant 0 : i32
    %c0_i32_13 = arith.constant 0 : i32
    %11 = tpu.memref_slice %arg28[%c0_i32_8, %c0_i32_12, %c0_i32_13] : memref<2x256x128xbf16, #tpu.memory_space<vmem>> -> memref<1x256x128xbf16, #tpu.memory_space<vmem>>
    %12 = tpu.memref_squeeze %11 : memref<1x256x128xbf16, #tpu.memory_space<vmem>> -> memref<256x128xbf16, #tpu.memory_space<vmem>>
    %13 = tpu.memref_slice %arg33[%c0_i32_9, %c1_i32] : memref<2x2x!tpu.dma_semaphore, #tpu.memory_space<semaphore_mem>> -> memref<1x1x!tpu.dma_semaphore, #tpu.memory_space<semaphore_mem>>
    %14 = tpu.memref_squeeze %13 : memref<1x1x!tpu.dma_semaphore, #tpu.memory_space<semaphore_mem>> -> memref<!tpu.dma_semaphore, #tpu.memory_space<semaphore_mem>>
    tpu.enqueue_dma source(%10 : memref<256x128xbf16, #tpu.memory_space<any>>) target(%12 : memref<256x128xbf16, #tpu.memory_space<vmem>>) target_semaphore(%14 : memref<!tpu.dma_semaphore, #tpu.memory_space<semaphore_mem>>)
    %c1_i32_14 = arith.constant 1 : i32
    %c1_i32_15 = arith.constant 1 : i32
    %c1_i32_16 = arith.constant 1 : i32
    %c0_i32_17 = arith.constant 0 : i32
    %c0_i32_18 = arith.constant 0 : i32
    %c0_i32_19 = arith.constant 0 : i32
    %15 = tpu.memref_slice %arg19[%c1_i32_14, %c0_i32_18, %c0_i32_19] : memref<2x128x256xbf16, #tpu.memory_space<any>> -> memref<1x128x256xbf16, #tpu.memory_space<any>>
    %16 = tpu.memref_squeeze %15 : memref<1x128x256xbf16, #tpu.memory_space<any>> -> memref<128x256xbf16, #tpu.memory_space<any>>
    %c0_i32_20 = arith.constant 0 : i32
    %c0_i32_21 = arith.constant 0 : i32
    %17 = tpu.memref_slice %arg27[%c1_i32_15, %c0_i32_20, %c0_i32_21] : memref<2x128x256xbf16, #tpu.memory_space<vmem>> -> memref<1x128x256xbf16, #tpu.memory_space<vmem>>
    %18 = tpu.memref_squeeze %17 : memref<1x128x256xbf16, #tpu.memory_space<vmem>> -> memref<128x256xbf16, #tpu.memory_space<vmem>>
    %19 = tpu.memref_slice %arg33[%c1_i32_16, %c0_i32_17] : memref<2x2x!tpu.dma_semaphore, #tpu.memory_space<semaphore_mem>> -> memref<1x1x!tpu.dma_semaphore, #tpu.memory_space<semaphore_mem>>
    %20 = tpu.memref_squeeze %19 : memref<1x1x!tpu.dma_semaphore, #tpu.memory_space<semaphore_mem>> -> memref<!tpu.dma_semaphore, #tpu.memory_space<semaphore_mem>>
    tpu.enqueue_dma source(%16 : memref<128x256xbf16, #tpu.memory_space<any>>) target(%18 : memref<128x256xbf16, #tpu.memory_space<vmem>>) target_semaphore(%20 : memref<!tpu.dma_semaphore, #tpu.memory_space<semaphore_mem>>)
    %c1_i32_22 = arith.constant 1 : i32
    %c1_i32_23 = arith.constant 1 : i32
    %c1_i32_24 = arith.constant 1 : i32
    %c1_i32_25 = arith.constant 1 : i32
    %c0_i32_26 = arith.constant 0 : i32
    %c0_i32_27 = arith.constant 0 : i32
    %21 = tpu.memref_slice %arg20[%c1_i32_22, %c0_i32_26, %c0_i32_27] : memref<2x256x128xbf16, #tpu.memory_space<any>> -> memref<1x256x128xbf16, #tpu.memory_space<any>>
    %22 = tpu.memref_squeeze %21 : memref<1x256x128xbf16, #tpu.memory_space<any>> -> memref<256x128xbf16, #tpu.memory_space<any>>
    %c0_i32_28 = arith.constant 0 : i32
    %c0_i32_29 = arith.constant 0 : i32
    %23 = tpu.memref_slice %arg28[%c1_i32_23, %c0_i32_28, %c0_i32_29] : memref<2x256x128xbf16, #tpu.memory_space<vmem>> -> memref<1x256x128xbf16, #tpu.memory_space<vmem>>
    %24 = tpu.memref_squeeze %23 : memref<1x256x128xbf16, #tpu.memory_space<vmem>> -> memref<256x128xbf16, #tpu.memory_space<vmem>>
    %25 = tpu.memref_slice %arg33[%c1_i32_24, %c1_i32_25] : memref<2x2x!tpu.dma_semaphore, #tpu.memory_space<semaphore_mem>> -> memref<1x1x!tpu.dma_semaphore, #tpu.memory_space<semaphore_mem>>
    %26 = tpu.memref_squeeze %25 : memref<1x1x!tpu.dma_semaphore, #tpu.memory_space<semaphore_mem>> -> memref<!tpu.dma_semaphore, #tpu.memory_space<semaphore_mem>>
    tpu.enqueue_dma source(%22 : memref<256x128xbf16, #tpu.memory_space<any>>) target(%24 : memref<256x128xbf16, #tpu.memory_space<vmem>>) target_semaphore(%26 : memref<!tpu.dma_semaphore, #tpu.memory_space<semaphore_mem>>)
    %c0_i32_30 = arith.constant 0 : i32
    %27 = tpu.memref_slice %arg34[%c0_i32_30] : memref<4x!tpu.dma_semaphore, #tpu.memory_space<semaphore_mem>> -> memref<1x!tpu.dma_semaphore, #tpu.memory_space<semaphore_mem>>
    %28 = tpu.memref_squeeze %27 : memref<1x!tpu.dma_semaphore, #tpu.memory_space<semaphore_mem>> -> memref<!tpu.dma_semaphore, #tpu.memory_space<semaphore_mem>>
    tpu.enqueue_dma source(%arg21 : memref<512x512xbf16, #tpu.memory_space<any>>) target(%arg29 : memref<512x512xbf16, #tpu.memory_space<vmem>>) target_semaphore(%28 : memref<!tpu.dma_semaphore, #tpu.memory_space<semaphore_mem>>)
    %c1_i32_31 = arith.constant 1 : i32
    %29 = tpu.memref_slice %arg34[%c1_i32_31] : memref<4x!tpu.dma_semaphore, #tpu.memory_space<semaphore_mem>> -> memref<1x!tpu.dma_semaphore, #tpu.memory_space<semaphore_mem>>
    %30 = tpu.memref_squeeze %29 : memref<1x!tpu.dma_semaphore, #tpu.memory_space<semaphore_mem>> -> memref<!tpu.dma_semaphore, #tpu.memory_space<semaphore_mem>>
    tpu.enqueue_dma source(%arg22 : memref<512x1024xbf16, #tpu.memory_space<any>>) target(%arg30 : memref<512x1024xbf16, #tpu.memory_space<vmem>>) target_semaphore(%30 : memref<!tpu.dma_semaphore, #tpu.memory_space<semaphore_mem>>)
    %c2_i32 = arith.constant 2 : i32
    %31 = tpu.memref_slice %arg34[%c2_i32] : memref<4x!tpu.dma_semaphore, #tpu.memory_space<semaphore_mem>> -> memref<1x!tpu.dma_semaphore, #tpu.memory_space<semaphore_mem>>
    %32 = tpu.memref_squeeze %31 : memref<1x!tpu.dma_semaphore, #tpu.memory_space<semaphore_mem>> -> memref<!tpu.dma_semaphore, #tpu.memory_space<semaphore_mem>>
    tpu.enqueue_dma source(%arg23 : memref<512x512xbf16, #tpu.memory_space<any>>) target(%arg31 : memref<512x512xbf16, #tpu.memory_space<vmem>>) target_semaphore(%32 : memref<!tpu.dma_semaphore, #tpu.memory_space<semaphore_mem>>)
    %c3_i32 = arith.constant 3 : i32
    %33 = tpu.memref_slice %arg34[%c3_i32] : memref<4x!tpu.dma_semaphore, #tpu.memory_space<semaphore_mem>> -> memref<1x!tpu.dma_semaphore, #tpu.memory_space<semaphore_mem>>
    %34 = tpu.memref_squeeze %33 : memref<1x!tpu.dma_semaphore, #tpu.memory_space<semaphore_mem>> -> memref<!tpu.dma_semaphore, #tpu.memory_space<semaphore_mem>>
    tpu.enqueue_dma source(%arg24 : memref<512x128xbf16, #tpu.memory_space<any>>) target(%arg32 : memref<512x128xbf16, #tpu.memory_space<vmem>>) target_semaphore(%34 : memref<!tpu.dma_semaphore, #tpu.memory_space<semaphore_mem>>)
    %c0_32 = arith.constant 0 : index
    %c0_33 = arith.constant 0 : index
    %35 = vector.load %arg1[%c0_32, %c0_33] : memref<16x16xbf16, #tpu.memory_space<vmem>>, vector<16x16xbf16>
    %c0_34 = arith.constant 0 : index
    %c0_35 = arith.constant 0 : index
    %36 = vector.load %arg0[%c0_34, %c0_35] : memref<16x768xbf16, #tpu.memory_space<vmem>>, vector<16x768xbf16>
    %c0_36 = arith.constant 0 : index
    %c0_37 = arith.constant 0 : index
    %37 = vector.load %arg3[%c0_36, %c0_37] : memref<768x128xbf16, #tpu.memory_space<vmem>>, vector<768x128xbf16>
    %cst = arith.constant dense<0.000000e+00> : vector<16x128xf32>
    %38 = tpu.matmul %36, %37, %cst {dimension_numbers = #tpu.dot_dimension_numbers<[1], [0], [0], [1], [0, 0, 1, 1], [], []>} : vector<16x768xbf16>, vector<768x128xbf16>, vector<16x128xf32> -> vector<16x128xf32>
    %c0_38 = arith.constant 0 : index
    %c0_39 = arith.constant 0 : index
    %39 = vector.load %arg4[%c0_38, %c0_39] : memref<1x128xf32, #tpu.memory_space<vmem>>, vector<1x128xf32>
    %40 = vector.broadcast %39 : vector<1x128xf32> to vector<16x128xf32>
    %41 = arith.addf %38, %40 : vector<16x128xf32>
    %cst_40 = arith.constant 0.000000e+00 : f32
    %42 = vector.broadcast %cst_40 : f32 to vector<16x128xf32>
    %43 = arith.maximumf %41, %42 : vector<16x128xf32>
    %c0_41 = arith.constant 0 : index
    %c0_42 = arith.constant 0 : index
    %44 = vector.load %arg5[%c0_41, %c0_42] : memref<128x256xbf16, #tpu.memory_space<vmem>>, vector<128x256xbf16>
    %c0_43 = arith.constant 0 : index
    %c0_44 = arith.constant 0 : index
    %45 = vector.load %arg6[%c0_43, %c0_44] : memref<256x128xbf16, #tpu.memory_space<vmem>>, vector<256x128xbf16>
    %cst_45 = arith.constant 0.000000e+00 : f32
    %46 = vector.broadcast %cst_45 : f32 to vector<16x128xf32>
    %47 = arith.maximumf %43, %46 : vector<16x128xf32>
    %cst_46 = arith.constant 1.000000e-07 : f32
    %48 = vector.broadcast %cst_46 : f32 to vector<16x128xf32>
    %49 = arith.addf %47, %48 : vector<16x128xf32>
    %cst_47 = arith.constant dense<0xFF800000> : vector<128xf32>
    %50 = vector.multi_reduction <maximumf>, %49, %cst_47 [0] : vector<16x128xf32> to vector<128xf32>
    %51 = vector.shape_cast %50 : vector<128xf32> to vector<1x128xf32>
    %52 = vector.broadcast %51 : vector<1x128xf32> to vector<16x128xf32>
    %53 = arith.subf %49, %52 : vector<16x128xf32>
    %54 = vector.broadcast %0 : f32 to vector<16x128xf32>
    %55 = arith.mulf %54, %53 : vector<16x128xf32>
    %56 = math.exp %55 : vector<16x128xf32>
    %57 = arith.mulf %56, %49 : vector<16x128xf32>
    %58 = tpu.concatenate %56, %57 in 1 : vector<16x128xf32>, vector<16x128xf32> -> vector<16x256xf32>
    %59 = arith.truncf %58 : vector<16x256xf32> to vector<16x256xbf16>
    %cst_48 = arith.constant dense<0.000000e+00> : vector<16x256xf32>
    %60 = tpu.matmul %35, %59, %cst_48 {dimension_numbers = #tpu.dot_dimension_numbers<[1], [0], [0], [1], [0, 0, 1, 1], [], []>} : vector<16x16xbf16>, vector<16x256xbf16>, vector<16x256xf32> -> vector<16x256xf32>
    %61 = vector.extract_strided_slice %60 {offsets = [0, 0], sizes = [16, 128], strides = [1, 1]} : vector<16x256xf32> to vector<16x128xf32>
    %62 = vector.extract_strided_slice %60 {offsets = [0, 128], sizes = [16, 128], strides = [1, 1]} : vector<16x256xf32> to vector<16x128xf32>
    %cst_49 = arith.constant 0.000000e+00 : f32
    %63 = vector.broadcast %cst_49 : f32 to vector<16x128xf32>
    %64 = arith.cmpf ogt, %61, %63 : vector<16x128xf32>
    %cst_50 = arith.constant 1.000000e+00 : f32
    %65 = vector.broadcast %cst_50 : f32 to vector<16x128xf32>
    %66 = arith.select %64, %61, %65 : vector<16x128xi1>, vector<16x128xf32>
    %cst_51 = arith.constant 0.000000e+00 : f32
    %67 = vector.broadcast %cst_51 : f32 to vector<16x128xf32>
    %68 = arith.cmpf ogt, %61, %67 : vector<16x128xf32>
    %69 = arith.divf %62, %66 : vector<16x128xf32>
    %cst_52 = arith.constant 0.000000e+00 : f32
    %70 = vector.broadcast %cst_52 : f32 to vector<16x128xf32>
    %71 = arith.select %68, %69, %70 : vector<16x128xi1>, vector<16x128xf32>
    %72 = arith.addf %71, %43 : vector<16x128xf32>
    %73 = arith.truncf %72 : vector<16x128xf32> to vector<16x128xbf16>
    %cst_53 = arith.constant dense<0.000000e+00> : vector<16x256xf32>
    %74 = tpu.matmul %73, %44, %cst_53 {dimension_numbers = #tpu.dot_dimension_numbers<[1], [0], [0], [1], [0, 0, 1, 1], [], []>} : vector<16x128xbf16>, vector<128x256xbf16>, vector<16x256xf32> -> vector<16x256xf32>
    %c0_54 = arith.constant 0 : index
    %c0_55 = arith.constant 0 : index
    %c0_56 = arith.constant 0 : index
    %75 = vector.load %arg7[%c0_54, %c0_55, %c0_56] : memref<3x1x256xf32, #tpu.memory_space<vmem>>, vector<1x1x256xf32>
    %76 = vector.shape_cast %75 : vector<1x1x256xf32> to vector<1x256xf32>
    %77 = vector.broadcast %76 : vector<1x256xf32> to vector<16x256xf32>
    %78 = arith.addf %74, %77 : vector<16x256xf32>
    %c0_57 = arith.constant 0 : index
    %c0_58 = arith.constant 0 : index
    %c0_59 = arith.constant 0 : index
    %79 = vector.load %arg8[%c0_57, %c0_58, %c0_59] : memref<3x1x256xf32, #tpu.memory_space<vmem>>, vector<1x1x256xf32>
    %80 = vector.shape_cast %79 : vector<1x1x256xf32> to vector<1x256xf32>
    %c0_60 = arith.constant 0 : index
    %c0_61 = arith.constant 0 : index
    %c0_62 = arith.constant 0 : index
    %81 = vector.load %arg9[%c0_60, %c0_61, %c0_62] : memref<3x1x256xf32, #tpu.memory_space<vmem>>, vector<1x1x256xf32>
    %82 = vector.shape_cast %81 : vector<1x1x256xf32> to vector<1x256xf32>
    %cst_63 = arith.constant dense<0.000000e+00> : vector<16xf32>
    %83 = vector.multi_reduction <add>, %78, %cst_63 [1] : vector<16x256xf32> to vector<16xf32>
    %84 = vector.shape_cast %83 : vector<16xf32> to vector<16x1xf32>
    %cst_64 = arith.constant 2.560000e+02 : f32
    %85 = vector.broadcast %cst_64 : f32 to vector<16x1xf32>
    %86 = arith.divf %84, %85 : vector<16x1xf32>
    %87 = vector.broadcast %86 : vector<16x1xf32> to vector<16x256xf32>
    %88 = arith.subf %78, %87 : vector<16x256xf32>
    %89 = arith.mulf %88, %88 : vector<16x256xf32>
    %cst_65 = arith.constant dense<0.000000e+00> : vector<16xf32>
    %90 = vector.multi_reduction <add>, %89, %cst_65 [1] : vector<16x256xf32> to vector<16xf32>
    %91 = vector.shape_cast %90 : vector<16xf32> to vector<16x1xf32>
    %cst_66 = arith.constant 2.560000e+02 : f32
    %92 = vector.broadcast %cst_66 : f32 to vector<16x1xf32>
    %93 = arith.divf %91, %92 : vector<16x1xf32>
    %94 = vector.broadcast %86 : vector<16x1xf32> to vector<16x256xf32>
    %95 = arith.subf %78, %94 : vector<16x256xf32>
    %cst_67 = arith.constant 9.99999974E-6 : f32
    %96 = vector.broadcast %cst_67 : f32 to vector<16x1xf32>
    %97 = arith.addf %93, %96 : vector<16x1xf32>
    %98 = math.rsqrt %97 : vector<16x1xf32>
    %99 = vector.broadcast %98 : vector<16x1xf32> to vector<16x256xf32>
    %100 = arith.mulf %95, %99 : vector<16x256xf32>
    %101 = vector.broadcast %80 : vector<1x256xf32> to vector<16x256xf32>
    %102 = arith.mulf %100, %101 : vector<16x256xf32>
    %103 = vector.broadcast %82 : vector<1x256xf32> to vector<16x256xf32>
    %104 = arith.addf %102, %103 : vector<16x256xf32>
    %cst_68 = arith.constant 0.000000e+00 : f32
    %105 = vector.broadcast %cst_68 : f32 to vector<16x256xf32>
    %106 = arith.maximumf %104, %105 : vector<16x256xf32>
    %107 = arith.truncf %106 : vector<16x256xf32> to vector<16x256xbf16>
    %cst_69 = arith.constant dense<0.000000e+00> : vector<16x128xf32>
    %108 = tpu.matmul %107, %45, %cst_69 {dimension_numbers = #tpu.dot_dimension_numbers<[1], [0], [0], [1], [0, 0, 1, 1], [], []>} : vector<16x256xbf16>, vector<256x128xbf16>, vector<16x128xf32> -> vector<16x128xf32>
    %c0_70 = arith.constant 0 : index
    %c0_71 = arith.constant 0 : index
    %c0_72 = arith.constant 0 : index
    %109 = vector.load %arg10[%c0_70, %c0_71, %c0_72] : memref<3x1x128xf32, #tpu.memory_space<vmem>>, vector<1x1x128xf32>
    %110 = vector.shape_cast %109 : vector<1x1x128xf32> to vector<1x128xf32>
    %111 = vector.broadcast %110 : vector<1x128xf32> to vector<16x128xf32>
    %112 = arith.addf %108, %111 : vector<16x128xf32>
    %c0_i32_73 = arith.constant 0 : i32
    %c0_i32_74 = arith.constant 0 : i32
    %c0_i32_75 = arith.constant 0 : i32
    %c0_i32_76 = arith.constant 0 : i32
    %c0_i32_77 = arith.constant 0 : i32
    %c0_i32_78 = arith.constant 0 : i32
    %113 = tpu.memref_slice %arg19[%c0_i32_73, %c0_i32_77, %c0_i32_78] : memref<2x128x256xbf16, #tpu.memory_space<any>> -> memref<1x128x256xbf16, #tpu.memory_space<any>>
    %114 = tpu.memref_squeeze %113 : memref<1x128x256xbf16, #tpu.memory_space<any>> -> memref<128x256xbf16, #tpu.memory_space<any>>
    %c0_i32_79 = arith.constant 0 : i32
    %c0_i32_80 = arith.constant 0 : i32
    %115 = tpu.memref_slice %arg27[%c0_i32_74, %c0_i32_79, %c0_i32_80] : memref<2x128x256xbf16, #tpu.memory_space<vmem>> -> memref<1x128x256xbf16, #tpu.memory_space<vmem>>
    %116 = tpu.memref_squeeze %115 : memref<1x128x256xbf16, #tpu.memory_space<vmem>> -> memref<128x256xbf16, #tpu.memory_space<vmem>>
    %117 = tpu.memref_slice %arg33[%c0_i32_75, %c0_i32_76] : memref<2x2x!tpu.dma_semaphore, #tpu.memory_space<semaphore_mem>> -> memref<1x1x!tpu.dma_semaphore, #tpu.memory_space<semaphore_mem>>
    %118 = tpu.memref_squeeze %117 : memref<1x1x!tpu.dma_semaphore, #tpu.memory_space<semaphore_mem>> -> memref<!tpu.dma_semaphore, #tpu.memory_space<semaphore_mem>>
    tpu.wait_dma2 semaphore(%118 : memref<!tpu.dma_semaphore, #tpu.memory_space<semaphore_mem>>) src(%114 : memref<128x256xbf16, #tpu.memory_space<any>>) dst(%116 : memref<128x256xbf16, #tpu.memory_space<vmem>>)
    %c0_i32_81 = arith.constant 0 : i32
    %c0_i32_82 = arith.constant 0 : i32
    %c0_i32_83 = arith.constant 0 : i32
    %c1_i32_84 = arith.constant 1 : i32
    %c0_i32_85 = arith.constant 0 : i32
    %c0_i32_86 = arith.constant 0 : i32
    %119 = tpu.memref_slice %arg20[%c0_i32_81, %c0_i32_85, %c0_i32_86] : memref<2x256x128xbf16, #tpu.memory_space<any>> -> memref<1x256x128xbf16, #tpu.memory_space<any>>
    %120 = tpu.memref_squeeze %119 : memref<1x256x128xbf16, #tpu.memory_space<any>> -> memref<256x128xbf16, #tpu.memory_space<any>>
    %c0_i32_87 = arith.constant 0 : i32
    %c0_i32_88 = arith.constant 0 : i32
    %121 = tpu.memref_slice %arg28[%c0_i32_82, %c0_i32_87, %c0_i32_88] : memref<2x256x128xbf16, #tpu.memory_space<vmem>> -> memref<1x256x128xbf16, #tpu.memory_space<vmem>>
    %122 = tpu.memref_squeeze %121 : memref<1x256x128xbf16, #tpu.memory_space<vmem>> -> memref<256x128xbf16, #tpu.memory_space<vmem>>
    %123 = tpu.memref_slice %arg33[%c0_i32_83, %c1_i32_84] : memref<2x2x!tpu.dma_semaphore, #tpu.memory_space<semaphore_mem>> -> memref<1x1x!tpu.dma_semaphore, #tpu.memory_space<semaphore_mem>>
    %124 = tpu.memref_squeeze %123 : memref<1x1x!tpu.dma_semaphore, #tpu.memory_space<semaphore_mem>> -> memref<!tpu.dma_semaphore, #tpu.memory_space<semaphore_mem>>
    tpu.wait_dma2 semaphore(%124 : memref<!tpu.dma_semaphore, #tpu.memory_space<semaphore_mem>>) src(%120 : memref<256x128xbf16, #tpu.memory_space<any>>) dst(%122 : memref<256x128xbf16, #tpu.memory_space<vmem>>)
    %c0_89 = arith.constant 0 : index
    %c0_90 = arith.constant 0 : index
    %c0_91 = arith.constant 0 : index
    %125 = vector.load %arg27[%c0_89, %c0_90, %c0_91] : memref<2x128x256xbf16, #tpu.memory_space<vmem>>, vector<1x128x256xbf16>
    %126 = vector.shape_cast %125 : vector<1x128x256xbf16> to vector<128x256xbf16>
    %c0_92 = arith.constant 0 : index
    %c0_93 = arith.constant 0 : index
    %c0_94 = arith.constant 0 : index
    %127 = vector.load %arg28[%c0_92, %c0_93, %c0_94] : memref<2x256x128xbf16, #tpu.memory_space<vmem>>, vector<1x256x128xbf16>
    %128 = vector.shape_cast %127 : vector<1x256x128xbf16> to vector<256x128xbf16>
    %cst_95 = arith.constant 0.000000e+00 : f32
    %129 = vector.broadcast %cst_95 : f32 to vector<16x128xf32>
    %130 = arith.maximumf %112, %129 : vector<16x128xf32>
    %cst_96 = arith.constant 1.000000e-07 : f32
    %131 = vector.broadcast %cst_96 : f32 to vector<16x128xf32>
    %132 = arith.addf %130, %131 : vector<16x128xf32>
    %cst_97 = arith.constant dense<0xFF800000> : vector<128xf32>
    %133 = vector.multi_reduction <maximumf>, %132, %cst_97 [0] : vector<16x128xf32> to vector<128xf32>
    %134 = vector.shape_cast %133 : vector<128xf32> to vector<1x128xf32>
    %135 = vector.broadcast %134 : vector<1x128xf32> to vector<16x128xf32>
    %136 = arith.subf %132, %135 : vector<16x128xf32>
    %137 = vector.broadcast %1 : f32 to vector<16x128xf32>
    %138 = arith.mulf %137, %136 : vector<16x128xf32>
    %139 = math.exp %138 : vector<16x128xf32>
    %140 = arith.mulf %139, %132 : vector<16x128xf32>
    %141 = tpu.concatenate %139, %140 in 1 : vector<16x128xf32>, vector<16x128xf32> -> vector<16x256xf32>
    %142 = arith.truncf %141 : vector<16x256xf32> to vector<16x256xbf16>
    %cst_98 = arith.constant dense<0.000000e+00> : vector<16x256xf32>
    %143 = tpu.matmul %35, %142, %cst_98 {dimension_numbers = #tpu.dot_dimension_numbers<[1], [0], [0], [1], [0, 0, 1, 1], [], []>} : vector<16x16xbf16>, vector<16x256xbf16>, vector<16x256xf32> -> vector<16x256xf32>
    %144 = vector.extract_strided_slice %143 {offsets = [0, 0], sizes = [16, 128], strides = [1, 1]} : vector<16x256xf32> to vector<16x128xf32>
    %145 = vector.extract_strided_slice %143 {offsets = [0, 128], sizes = [16, 128], strides = [1, 1]} : vector<16x256xf32> to vector<16x128xf32>
    %cst_99 = arith.constant 0.000000e+00 : f32
    %146 = vector.broadcast %cst_99 : f32 to vector<16x128xf32>
    %147 = arith.cmpf ogt, %144, %146 : vector<16x128xf32>
    %cst_100 = arith.constant 1.000000e+00 : f32
    %148 = vector.broadcast %cst_100 : f32 to vector<16x128xf32>
    %149 = arith.select %147, %144, %148 : vector<16x128xi1>, vector<16x128xf32>
    %cst_101 = arith.constant 0.000000e+00 : f32
    %150 = vector.broadcast %cst_101 : f32 to vector<16x128xf32>
    %151 = arith.cmpf ogt, %144, %150 : vector<16x128xf32>
    %152 = arith.divf %145, %149 : vector<16x128xf32>
    %cst_102 = arith.constant 0.000000e+00 : f32
    %153 = vector.broadcast %cst_102 : f32 to vector<16x128xf32>
    %154 = arith.select %151, %152, %153 : vector<16x128xi1>, vector<16x128xf32>
    %155 = arith.addf %154, %112 : vector<16x128xf32>
    %156 = arith.truncf %155 : vector<16x128xf32> to vector<16x128xbf16>
    %cst_103 = arith.constant dense<0.000000e+00> : vector<16x256xf32>
    %157 = tpu.matmul %156, %126, %cst_103 {dimension_numbers = #tpu.dot_dimension_numbers<[1], [0], [0], [1], [0, 0, 1, 1], [], []>} : vector<16x128xbf16>, vector<128x256xbf16>, vector<16x256xf32> -> vector<16x256xf32>
    %c1_104 = arith.constant 1 : index
    %c0_105 = arith.constant 0 : index
    %c0_106 = arith.constant 0 : index
    %158 = vector.load %arg7[%c1_104, %c0_105, %c0_106] : memref<3x1x256xf32, #tpu.memory_space<vmem>>, vector<1x1x256xf32>
    %159 = vector.shape_cast %158 : vector<1x1x256xf32> to vector<1x256xf32>
    %160 = vector.broadcast %159 : vector<1x256xf32> to vector<16x256xf32>
    %161 = arith.addf %157, %160 : vector<16x256xf32>
    %c1_107 = arith.constant 1 : index
    %c0_108 = arith.constant 0 : index
    %c0_109 = arith.constant 0 : index
    %162 = vector.load %arg8[%c1_107, %c0_108, %c0_109] : memref<3x1x256xf32, #tpu.memory_space<vmem>>, vector<1x1x256xf32>
    %163 = vector.shape_cast %162 : vector<1x1x256xf32> to vector<1x256xf32>
    %c1_110 = arith.constant 1 : index
    %c0_111 = arith.constant 0 : index
    %c0_112 = arith.constant 0 : index
    %164 = vector.load %arg9[%c1_110, %c0_111, %c0_112] : memref<3x1x256xf32, #tpu.memory_space<vmem>>, vector<1x1x256xf32>
    %165 = vector.shape_cast %164 : vector<1x1x256xf32> to vector<1x256xf32>
    %cst_113 = arith.constant dense<0.000000e+00> : vector<16xf32>
    %166 = vector.multi_reduction <add>, %161, %cst_113 [1] : vector<16x256xf32> to vector<16xf32>
    %167 = vector.shape_cast %166 : vector<16xf32> to vector<16x1xf32>
    %cst_114 = arith.constant 2.560000e+02 : f32
    %168 = vector.broadcast %cst_114 : f32 to vector<16x1xf32>
    %169 = arith.divf %167, %168 : vector<16x1xf32>
    %170 = vector.broadcast %169 : vector<16x1xf32> to vector<16x256xf32>
    %171 = arith.subf %161, %170 : vector<16x256xf32>
    %172 = arith.mulf %171, %171 : vector<16x256xf32>
    %cst_115 = arith.constant dense<0.000000e+00> : vector<16xf32>
    %173 = vector.multi_reduction <add>, %172, %cst_115 [1] : vector<16x256xf32> to vector<16xf32>
    %174 = vector.shape_cast %173 : vector<16xf32> to vector<16x1xf32>
    %cst_116 = arith.constant 2.560000e+02 : f32
    %175 = vector.broadcast %cst_116 : f32 to vector<16x1xf32>
    %176 = arith.divf %174, %175 : vector<16x1xf32>
    %177 = vector.broadcast %169 : vector<16x1xf32> to vector<16x256xf32>
    %178 = arith.subf %161, %177 : vector<16x256xf32>
    %cst_117 = arith.constant 9.99999974E-6 : f32
    %179 = vector.broadcast %cst_117 : f32 to vector<16x1xf32>
    %180 = arith.addf %176, %179 : vector<16x1xf32>
    %181 = math.rsqrt %180 : vector<16x1xf32>
    %182 = vector.broadcast %181 : vector<16x1xf32> to vector<16x256xf32>
    %183 = arith.mulf %178, %182 : vector<16x256xf32>
    %184 = vector.broadcast %163 : vector<1x256xf32> to vector<16x256xf32>
    %185 = arith.mulf %183, %184 : vector<16x256xf32>
    %186 = vector.broadcast %165 : vector<1x256xf32> to vector<16x256xf32>
    %187 = arith.addf %185, %186 : vector<16x256xf32>
    %cst_118 = arith.constant 0.000000e+00 : f32
    %188 = vector.broadcast %cst_118 : f32 to vector<16x256xf32>
    %189 = arith.maximumf %187, %188 : vector<16x256xf32>
    %190 = arith.truncf %189 : vector<16x256xf32> to vector<16x256xbf16>
    %cst_119 = arith.constant dense<0.000000e+00> : vector<16x128xf32>
    %191 = tpu.matmul %190, %128, %cst_119 {dimension_numbers = #tpu.dot_dimension_numbers<[1], [0], [0], [1], [0, 0, 1, 1], [], []>} : vector<16x256xbf16>, vector<256x128xbf16>, vector<16x128xf32> -> vector<16x128xf32>
    %c1_120 = arith.constant 1 : index
    %c0_121 = arith.constant 0 : index
    %c0_122 = arith.constant 0 : index
    %192 = vector.load %arg10[%c1_120, %c0_121, %c0_122] : memref<3x1x128xf32, #tpu.memory_space<vmem>>, vector<1x1x128xf32>
    %193 = vector.shape_cast %192 : vector<1x1x128xf32> to vector<1x128xf32>
    %194 = vector.broadcast %193 : vector<1x128xf32> to vector<16x128xf32>
    %195 = arith.addf %191, %194 : vector<16x128xf32>
    %c0_123 = arith.constant 0 : index
    %c0_124 = arith.constant 0 : index
    %c0_125 = arith.constant 0 : index
    %196 = vector.load %arg11[%c0_123, %c0_124, %c0_125] : memref<2x1x128xf32, #tpu.memory_space<vmem>>, vector<1x1x128xf32>
    %197 = vector.shape_cast %196 : vector<1x1x128xf32> to vector<1x128xf32>
    %c0_126 = arith.constant 0 : index
    %c0_127 = arith.constant 0 : index
    %c0_128 = arith.constant 0 : index
    %198 = vector.load %arg12[%c0_126, %c0_127, %c0_128] : memref<2x1x128xf32, #tpu.memory_space<vmem>>, vector<1x1x128xf32>
    %199 = vector.shape_cast %198 : vector<1x1x128xf32> to vector<1x128xf32>
    %cst_129 = arith.constant dense<0.000000e+00> : vector<16xf32>
    %200 = vector.multi_reduction <add>, %195, %cst_129 [1] : vector<16x128xf32> to vector<16xf32>
    %201 = vector.shape_cast %200 : vector<16xf32> to vector<16x1xf32>
    %cst_130 = arith.constant 1.280000e+02 : f32
    %202 = vector.broadcast %cst_130 : f32 to vector<16x1xf32>
    %203 = arith.divf %201, %202 : vector<16x1xf32>
    %204 = vector.broadcast %203 : vector<16x1xf32> to vector<16x128xf32>
    %205 = arith.subf %195, %204 : vector<16x128xf32>
    %206 = arith.mulf %205, %205 : vector<16x128xf32>
    %cst_131 = arith.constant dense<0.000000e+00> : vector<16xf32>
    %207 = vector.multi_reduction <add>, %206, %cst_131 [1] : vector<16x128xf32> to vector<16xf32>
    %208 = vector.shape_cast %207 : vector<16xf32> to vector<16x1xf32>
    %cst_132 = arith.constant 1.280000e+02 : f32
    %209 = vector.broadcast %cst_132 : f32 to vector<16x1xf32>
    %210 = arith.divf %208, %209 : vector<16x1xf32>
    %211 = vector.broadcast %203 : vector<16x1xf32> to vector<16x128xf32>
    %212 = arith.subf %195, %211 : vector<16x128xf32>
    %cst_133 = arith.constant 9.99999974E-6 : f32
    %213 = vector.broadcast %cst_133 : f32 to vector<16x1xf32>
    %214 = arith.addf %210, %213 : vector<16x1xf32>
    %215 = math.rsqrt %214 : vector<16x1xf32>
    %216 = vector.broadcast %215 : vector<16x1xf32> to vector<16x128xf32>
    %217 = arith.mulf %212, %216 : vector<16x128xf32>
    %218 = vector.broadcast %197 : vector<1x128xf32> to vector<16x128xf32>
    %219 = arith.mulf %217, %218 : vector<16x128xf32>
    %220 = vector.broadcast %199 : vector<1x128xf32> to vector<16x128xf32>
    %221 = arith.addf %219, %220 : vector<16x128xf32>
    %cst_134 = arith.constant 0.000000e+00 : f32
    %222 = vector.broadcast %cst_134 : f32 to vector<16x128xf32>
    %223 = arith.maximumf %221, %222 : vector<16x128xf32>
    %224 = arith.addf %112, %223 : vector<16x128xf32>
    %c1_i32_135 = arith.constant 1 : i32
    %c1_i32_136 = arith.constant 1 : i32
    %c1_i32_137 = arith.constant 1 : i32
    %c0_i32_138 = arith.constant 0 : i32
    %c0_i32_139 = arith.constant 0 : i32
    %c0_i32_140 = arith.constant 0 : i32
    %225 = tpu.memref_slice %arg19[%c1_i32_135, %c0_i32_139, %c0_i32_140] : memref<2x128x256xbf16, #tpu.memory_space<any>> -> memref<1x128x256xbf16, #tpu.memory_space<any>>
    %226 = tpu.memref_squeeze %225 : memref<1x128x256xbf16, #tpu.memory_space<any>> -> memref<128x256xbf16, #tpu.memory_space<any>>
    %c0_i32_141 = arith.constant 0 : i32
    %c0_i32_142 = arith.constant 0 : i32
    %227 = tpu.memref_slice %arg27[%c1_i32_136, %c0_i32_141, %c0_i32_142] : memref<2x128x256xbf16, #tpu.memory_space<vmem>> -> memref<1x128x256xbf16, #tpu.memory_space<vmem>>
    %228 = tpu.memref_squeeze %227 : memref<1x128x256xbf16, #tpu.memory_space<vmem>> -> memref<128x256xbf16, #tpu.memory_space<vmem>>
    %229 = tpu.memref_slice %arg33[%c1_i32_137, %c0_i32_138] : memref<2x2x!tpu.dma_semaphore, #tpu.memory_space<semaphore_mem>> -> memref<1x1x!tpu.dma_semaphore, #tpu.memory_space<semaphore_mem>>
    %230 = tpu.memref_squeeze %229 : memref<1x1x!tpu.dma_semaphore, #tpu.memory_space<semaphore_mem>> -> memref<!tpu.dma_semaphore, #tpu.memory_space<semaphore_mem>>
    tpu.wait_dma2 semaphore(%230 : memref<!tpu.dma_semaphore, #tpu.memory_space<semaphore_mem>>) src(%226 : memref<128x256xbf16, #tpu.memory_space<any>>) dst(%228 : memref<128x256xbf16, #tpu.memory_space<vmem>>)
    %c1_i32_143 = arith.constant 1 : i32
    %c1_i32_144 = arith.constant 1 : i32
    %c1_i32_145 = arith.constant 1 : i32
    %c1_i32_146 = arith.constant 1 : i32
    %c0_i32_147 = arith.constant 0 : i32
    %c0_i32_148 = arith.constant 0 : i32
    %231 = tpu.memref_slice %arg20[%c1_i32_143, %c0_i32_147, %c0_i32_148] : memref<2x256x128xbf16, #tpu.memory_space<any>> -> memref<1x256x128xbf16, #tpu.memory_space<any>>
    %232 = tpu.memref_squeeze %231 : memref<1x256x128xbf16, #tpu.memory_space<any>> -> memref<256x128xbf16, #tpu.memory_space<any>>
    %c0_i32_149 = arith.constant 0 : i32
    %c0_i32_150 = arith.constant 0 : i32
    %233 = tpu.memref_slice %arg28[%c1_i32_144, %c0_i32_149, %c0_i32_150] : memref<2x256x128xbf16, #tpu.memory_space<vmem>> -> memref<1x256x128xbf16, #tpu.memory_space<vmem>>
    %234 = tpu.memref_squeeze %233 : memref<1x256x128xbf16, #tpu.memory_space<vmem>> -> memref<256x128xbf16, #tpu.memory_space<vmem>>
    %235 = tpu.memref_slice %arg33[%c1_i32_145, %c1_i32_146] : memref<2x2x!tpu.dma_semaphore, #tpu.memory_space<semaphore_mem>> -> memref<1x1x!tpu.dma_semaphore, #tpu.memory_space<semaphore_mem>>
    %236 = tpu.memref_squeeze %235 : memref<1x1x!tpu.dma_semaphore, #tpu.memory_space<semaphore_mem>> -> memref<!tpu.dma_semaphore, #tpu.memory_space<semaphore_mem>>
    tpu.wait_dma2 semaphore(%236 : memref<!tpu.dma_semaphore, #tpu.memory_space<semaphore_mem>>) src(%232 : memref<256x128xbf16, #tpu.memory_space<any>>) dst(%234 : memref<256x128xbf16, #tpu.memory_space<vmem>>)
    %c1_151 = arith.constant 1 : index
    %c0_152 = arith.constant 0 : index
    %c0_153 = arith.constant 0 : index
    %237 = vector.load %arg27[%c1_151, %c0_152, %c0_153] : memref<2x128x256xbf16, #tpu.memory_space<vmem>>, vector<1x128x256xbf16>
    %238 = vector.shape_cast %237 : vector<1x128x256xbf16> to vector<128x256xbf16>
    %c1_154 = arith.constant 1 : index
    %c0_155 = arith.constant 0 : index
    %c0_156 = arith.constant 0 : index
    %239 = vector.load %arg28[%c1_154, %c0_155, %c0_156] : memref<2x256x128xbf16, #tpu.memory_space<vmem>>, vector<1x256x128xbf16>
    %240 = vector.shape_cast %239 : vector<1x256x128xbf16> to vector<256x128xbf16>
    %cst_157 = arith.constant 0.000000e+00 : f32
    %241 = vector.broadcast %cst_157 : f32 to vector<16x128xf32>
    %242 = arith.maximumf %224, %241 : vector<16x128xf32>
    %cst_158 = arith.constant 1.000000e-07 : f32
    %243 = vector.broadcast %cst_158 : f32 to vector<16x128xf32>
    %244 = arith.addf %242, %243 : vector<16x128xf32>
    %cst_159 = arith.constant dense<0xFF800000> : vector<128xf32>
    %245 = vector.multi_reduction <maximumf>, %244, %cst_159 [0] : vector<16x128xf32> to vector<128xf32>
    %246 = vector.shape_cast %245 : vector<128xf32> to vector<1x128xf32>
    %247 = vector.broadcast %246 : vector<1x128xf32> to vector<16x128xf32>
    %248 = arith.subf %244, %247 : vector<16x128xf32>
    %249 = vector.broadcast %2 : f32 to vector<16x128xf32>
    %250 = arith.mulf %249, %248 : vector<16x128xf32>
    %251 = math.exp %250 : vector<16x128xf32>
    %252 = arith.mulf %251, %244 : vector<16x128xf32>
    %253 = tpu.concatenate %251, %252 in 1 : vector<16x128xf32>, vector<16x128xf32> -> vector<16x256xf32>
    %254 = arith.truncf %253 : vector<16x256xf32> to vector<16x256xbf16>
    %cst_160 = arith.constant dense<0.000000e+00> : vector<16x256xf32>
    %255 = tpu.matmul %35, %254, %cst_160 {dimension_numbers = #tpu.dot_dimension_numbers<[1], [0], [0], [1], [0, 0, 1, 1], [], []>} : vector<16x16xbf16>, vector<16x256xbf16>, vector<16x256xf32> -> vector<16x256xf32>
    %256 = vector.extract_strided_slice %255 {offsets = [0, 0], sizes = [16, 128], strides = [1, 1]} : vector<16x256xf32> to vector<16x128xf32>
    %257 = vector.extract_strided_slice %255 {offsets = [0, 128], sizes = [16, 128], strides = [1, 1]} : vector<16x256xf32> to vector<16x128xf32>
    %cst_161 = arith.constant 0.000000e+00 : f32
    %258 = vector.broadcast %cst_161 : f32 to vector<16x128xf32>
    %259 = arith.cmpf ogt, %256, %258 : vector<16x128xf32>
    %cst_162 = arith.constant 1.000000e+00 : f32
    %260 = vector.broadcast %cst_162 : f32 to vector<16x128xf32>
    %261 = arith.select %259, %256, %260 : vector<16x128xi1>, vector<16x128xf32>
    %cst_163 = arith.constant 0.000000e+00 : f32
    %262 = vector.broadcast %cst_163 : f32 to vector<16x128xf32>
    %263 = arith.cmpf ogt, %256, %262 : vector<16x128xf32>
    %264 = arith.divf %257, %261 : vector<16x128xf32>
    %cst_164 = arith.constant 0.000000e+00 : f32
    %265 = vector.broadcast %cst_164 : f32 to vector<16x128xf32>
    %266 = arith.select %263, %264, %265 : vector<16x128xi1>, vector<16x128xf32>
    %267 = arith.addf %266, %224 : vector<16x128xf32>
    %268 = arith.truncf %267 : vector<16x128xf32> to vector<16x128xbf16>
    %cst_165 = arith.constant dense<0.000000e+00> : vector<16x256xf32>
    %269 = tpu.matmul %268, %238, %cst_165 {dimension_numbers = #tpu.dot_dimension_numbers<[1], [0], [0], [1], [0, 0, 1, 1], [], []>} : vector<16x128xbf16>, vector<128x256xbf16>, vector<16x256xf32> -> vector<16x256xf32>
    %c2_166 = arith.constant 2 : index
    %c0_167 = arith.constant 0 : index
    %c0_168 = arith.constant 0 : index
    %270 = vector.load %arg7[%c2_166, %c0_167, %c0_168] : memref<3x1x256xf32, #tpu.memory_space<vmem>>, vector<1x1x256xf32>
    %271 = vector.shape_cast %270 : vector<1x1x256xf32> to vector<1x256xf32>
    %272 = vector.broadcast %271 : vector<1x256xf32> to vector<16x256xf32>
    %273 = arith.addf %269, %272 : vector<16x256xf32>
    %c2_169 = arith.constant 2 : index
    %c0_170 = arith.constant 0 : index
    %c0_171 = arith.constant 0 : index
    %274 = vector.load %arg8[%c2_169, %c0_170, %c0_171] : memref<3x1x256xf32, #tpu.memory_space<vmem>>, vector<1x1x256xf32>
    %275 = vector.shape_cast %274 : vector<1x1x256xf32> to vector<1x256xf32>
    %c2_172 = arith.constant 2 : index
    %c0_173 = arith.constant 0 : index
    %c0_174 = arith.constant 0 : index
    %276 = vector.load %arg9[%c2_172, %c0_173, %c0_174] : memref<3x1x256xf32, #tpu.memory_space<vmem>>, vector<1x1x256xf32>
    %277 = vector.shape_cast %276 : vector<1x1x256xf32> to vector<1x256xf32>
    %cst_175 = arith.constant dense<0.000000e+00> : vector<16xf32>
    %278 = vector.multi_reduction <add>, %273, %cst_175 [1] : vector<16x256xf32> to vector<16xf32>
    %279 = vector.shape_cast %278 : vector<16xf32> to vector<16x1xf32>
    %cst_176 = arith.constant 2.560000e+02 : f32
    %280 = vector.broadcast %cst_176 : f32 to vector<16x1xf32>
    %281 = arith.divf %279, %280 : vector<16x1xf32>
    %282 = vector.broadcast %281 : vector<16x1xf32> to vector<16x256xf32>
    %283 = arith.subf %273, %282 : vector<16x256xf32>
    %284 = arith.mulf %283, %283 : vector<16x256xf32>
    %cst_177 = arith.constant dense<0.000000e+00> : vector<16xf32>
    %285 = vector.multi_reduction <add>, %284, %cst_177 [1] : vector<16x256xf32> to vector<16xf32>
    %286 = vector.shape_cast %285 : vector<16xf32> to vector<16x1xf32>
    %cst_178 = arith.constant 2.560000e+02 : f32
    %287 = vector.broadcast %cst_178 : f32 to vector<16x1xf32>
    %288 = arith.divf %286, %287 : vector<16x1xf32>
    %289 = vector.broadcast %281 : vector<16x1xf32> to vector<16x256xf32>
    %290 = arith.subf %273, %289 : vector<16x256xf32>
    %cst_179 = arith.constant 9.99999974E-6 : f32
    %291 = vector.broadcast %cst_179 : f32 to vector<16x1xf32>
    %292 = arith.addf %288, %291 : vector<16x1xf32>
    %293 = math.rsqrt %292 : vector<16x1xf32>
    %294 = vector.broadcast %293 : vector<16x1xf32> to vector<16x256xf32>
    %295 = arith.mulf %290, %294 : vector<16x256xf32>
    %296 = vector.broadcast %275 : vector<1x256xf32> to vector<16x256xf32>
    %297 = arith.mulf %295, %296 : vector<16x256xf32>
    %298 = vector.broadcast %277 : vector<1x256xf32> to vector<16x256xf32>
    %299 = arith.addf %297, %298 : vector<16x256xf32>
    %cst_180 = arith.constant 0.000000e+00 : f32
    %300 = vector.broadcast %cst_180 : f32 to vector<16x256xf32>
    %301 = arith.maximumf %299, %300 : vector<16x256xf32>
    %302 = arith.truncf %301 : vector<16x256xf32> to vector<16x256xbf16>
    %cst_181 = arith.constant dense<0.000000e+00> : vector<16x128xf32>
    %303 = tpu.matmul %302, %240, %cst_181 {dimension_numbers = #tpu.dot_dimension_numbers<[1], [0], [0], [1], [0, 0, 1, 1], [], []>} : vector<16x256xbf16>, vector<256x128xbf16>, vector<16x128xf32> -> vector<16x128xf32>
    %c2_182 = arith.constant 2 : index
    %c0_183 = arith.constant 0 : index
    %c0_184 = arith.constant 0 : index
    %304 = vector.load %arg10[%c2_182, %c0_183, %c0_184] : memref<3x1x128xf32, #tpu.memory_space<vmem>>, vector<1x1x128xf32>
    %305 = vector.shape_cast %304 : vector<1x1x128xf32> to vector<1x128xf32>
    %306 = vector.broadcast %305 : vector<1x128xf32> to vector<16x128xf32>
    %307 = arith.addf %303, %306 : vector<16x128xf32>
    %c1_185 = arith.constant 1 : index
    %c0_186 = arith.constant 0 : index
    %c0_187 = arith.constant 0 : index
    %308 = vector.load %arg11[%c1_185, %c0_186, %c0_187] : memref<2x1x128xf32, #tpu.memory_space<vmem>>, vector<1x1x128xf32>
    %309 = vector.shape_cast %308 : vector<1x1x128xf32> to vector<1x128xf32>
    %c1_188 = arith.constant 1 : index
    %c0_189 = arith.constant 0 : index
    %c0_190 = arith.constant 0 : index
    %310 = vector.load %arg12[%c1_188, %c0_189, %c0_190] : memref<2x1x128xf32, #tpu.memory_space<vmem>>, vector<1x1x128xf32>
    %311 = vector.shape_cast %310 : vector<1x1x128xf32> to vector<1x128xf32>
    %cst_191 = arith.constant dense<0.000000e+00> : vector<16xf32>
    %312 = vector.multi_reduction <add>, %307, %cst_191 [1] : vector<16x128xf32> to vector<16xf32>
    %313 = vector.shape_cast %312 : vector<16xf32> to vector<16x1xf32>
    %cst_192 = arith.constant 1.280000e+02 : f32
    %314 = vector.broadcast %cst_192 : f32 to vector<16x1xf32>
    %315 = arith.divf %313, %314 : vector<16x1xf32>
    %316 = vector.broadcast %315 : vector<16x1xf32> to vector<16x128xf32>
    %317 = arith.subf %307, %316 : vector<16x128xf32>
    %318 = arith.mulf %317, %317 : vector<16x128xf32>
    %cst_193 = arith.constant dense<0.000000e+00> : vector<16xf32>
    %319 = vector.multi_reduction <add>, %318, %cst_193 [1] : vector<16x128xf32> to vector<16xf32>
    %320 = vector.shape_cast %319 : vector<16xf32> to vector<16x1xf32>
    %cst_194 = arith.constant 1.280000e+02 : f32
    %321 = vector.broadcast %cst_194 : f32 to vector<16x1xf32>
    %322 = arith.divf %320, %321 : vector<16x1xf32>
    %323 = vector.broadcast %315 : vector<16x1xf32> to vector<16x128xf32>
    %324 = arith.subf %307, %323 : vector<16x128xf32>
    %cst_195 = arith.constant 9.99999974E-6 : f32
    %325 = vector.broadcast %cst_195 : f32 to vector<16x1xf32>
    %326 = arith.addf %322, %325 : vector<16x1xf32>
    %327 = math.rsqrt %326 : vector<16x1xf32>
    %328 = vector.broadcast %327 : vector<16x1xf32> to vector<16x128xf32>
    %329 = arith.mulf %324, %328 : vector<16x128xf32>
    %330 = vector.broadcast %309 : vector<1x128xf32> to vector<16x128xf32>
    %331 = arith.mulf %329, %330 : vector<16x128xf32>
    %332 = vector.broadcast %311 : vector<1x128xf32> to vector<16x128xf32>
    %333 = arith.addf %331, %332 : vector<16x128xf32>
    %cst_196 = arith.constant 0.000000e+00 : f32
    %334 = vector.broadcast %cst_196 : f32 to vector<16x128xf32>
    %335 = arith.maximumf %333, %334 : vector<16x128xf32>
    %336 = arith.addf %224, %335 : vector<16x128xf32>
    %337 = tpu.concatenate %43, %112, %224, %336 in 1 : vector<16x128xf32>, vector<16x128xf32>, vector<16x128xf32>, vector<16x128xf32> -> vector<16x512xf32>
    %338 = arith.truncf %337 : vector<16x512xf32> to vector<16x512xbf16>
    %c0_i32_197 = arith.constant 0 : i32
    %339 = tpu.memref_slice %arg34[%c0_i32_197] : memref<4x!tpu.dma_semaphore, #tpu.memory_space<semaphore_mem>> -> memref<1x!tpu.dma_semaphore, #tpu.memory_space<semaphore_mem>>
    %340 = tpu.memref_squeeze %339 : memref<1x!tpu.dma_semaphore, #tpu.memory_space<semaphore_mem>> -> memref<!tpu.dma_semaphore, #tpu.memory_space<semaphore_mem>>
    tpu.wait_dma2 semaphore(%340 : memref<!tpu.dma_semaphore, #tpu.memory_space<semaphore_mem>>) src(%arg21 : memref<512x512xbf16, #tpu.memory_space<any>>) dst(%arg29 : memref<512x512xbf16, #tpu.memory_space<vmem>>)
    %c0_198 = arith.constant 0 : index
    %c0_199 = arith.constant 0 : index
    %341 = vector.load %arg29[%c0_198, %c0_199] : memref<512x512xbf16, #tpu.memory_space<vmem>>, vector<512x512xbf16>
    %cst_200 = arith.constant dense<0.000000e+00> : vector<16x512xf32>
    %342 = tpu.matmul %338, %341, %cst_200 {dimension_numbers = #tpu.dot_dimension_numbers<[1], [0], [0], [1], [0, 0, 1, 1], [], []>} : vector<16x512xbf16>, vector<512x512xbf16>, vector<16x512xf32> -> vector<16x512xf32>
    %c0_201 = arith.constant 0 : index
    %c0_202 = arith.constant 0 : index
    %343 = vector.load %arg13[%c0_201, %c0_202] : memref<1x512xf32, #tpu.memory_space<vmem>>, vector<1x512xf32>
    %344 = vector.broadcast %343 : vector<1x512xf32> to vector<16x512xf32>
    %345 = arith.addf %342, %344 : vector<16x512xf32>
    %cst_203 = arith.constant 0.000000e+00 : f32
    %346 = vector.broadcast %cst_203 : f32 to vector<16x512xf32>
    %347 = arith.maximumf %345, %346 : vector<16x512xf32>
    %c1_i32_204 = arith.constant 1 : i32
    %348 = tpu.memref_slice %arg34[%c1_i32_204] : memref<4x!tpu.dma_semaphore, #tpu.memory_space<semaphore_mem>> -> memref<1x!tpu.dma_semaphore, #tpu.memory_space<semaphore_mem>>
    %349 = tpu.memref_squeeze %348 : memref<1x!tpu.dma_semaphore, #tpu.memory_space<semaphore_mem>> -> memref<!tpu.dma_semaphore, #tpu.memory_space<semaphore_mem>>
    tpu.wait_dma2 semaphore(%349 : memref<!tpu.dma_semaphore, #tpu.memory_space<semaphore_mem>>) src(%arg22 : memref<512x1024xbf16, #tpu.memory_space<any>>) dst(%arg30 : memref<512x1024xbf16, #tpu.memory_space<vmem>>)
    %350 = arith.truncf %347 : vector<16x512xf32> to vector<16x512xbf16>
    %c0_205 = arith.constant 0 : index
    %c0_206 = arith.constant 0 : index
    %351 = vector.load %arg30[%c0_205, %c0_206] : memref<512x1024xbf16, #tpu.memory_space<vmem>>, vector<512x1024xbf16>
    %cst_207 = arith.constant dense<0.000000e+00> : vector<16x1024xf32>
    %352 = tpu.matmul %350, %351, %cst_207 {dimension_numbers = #tpu.dot_dimension_numbers<[1], [0], [0], [1], [0, 0, 1, 1], [], []>} : vector<16x512xbf16>, vector<512x1024xbf16>, vector<16x1024xf32> -> vector<16x1024xf32>
    %c0_208 = arith.constant 0 : index
    %c0_209 = arith.constant 0 : index
    %353 = vector.load %arg14[%c0_208, %c0_209] : memref<1x1024xf32, #tpu.memory_space<vmem>>, vector<1x1024xf32>
    %354 = vector.broadcast %353 : vector<1x1024xf32> to vector<16x1024xf32>
    %355 = arith.addf %352, %354 : vector<16x1024xf32>
    %356 = vector.extract_strided_slice %355 {offsets = [0, 0], sizes = [16, 512], strides = [1, 1]} : vector<16x1024xf32> to vector<16x512xf32>
    %357 = math.tanh %356 : vector<16x512xf32>
    %358 = vector.extract_strided_slice %355 {offsets = [0, 512], sizes = [16, 512], strides = [1, 1]} : vector<16x1024xf32> to vector<16x512xf32>
    %359 = arith.negf %358 : vector<16x512xf32>
    %360 = math.exp %359 : vector<16x512xf32>
    %cst_210 = arith.constant 1.000000e+00 : f32
    %361 = vector.broadcast %cst_210 : f32 to vector<16x512xf32>
    %362 = arith.addf %361, %360 : vector<16x512xf32>
    %363 = arith.divf %361, %362 : vector<16x512xf32>
    %364 = arith.mulf %357, %363 : vector<16x512xf32>
    %c0_211 = arith.constant 0 : index
    %c0_212 = arith.constant 0 : index
    %365 = vector.load %arg15[%c0_211, %c0_212] : memref<1x512xf32, #tpu.memory_space<vmem>>, vector<1x512xf32>
    %366 = vector.broadcast %365 : vector<1x512xf32> to vector<16x512xf32>
    %367 = arith.mulf %364, %366 : vector<16x512xf32>
    %cst_213 = arith.constant dense<0.000000e+00> : vector<16xf32>
    %368 = vector.multi_reduction <add>, %367, %cst_213 [1] : vector<16x512xf32> to vector<16xf32>
    %369 = vector.shape_cast %368 : vector<16xf32> to vector<16x1xf32>
    %c0_214 = arith.constant 0 : index
    %c0_215 = arith.constant 0 : index
    %370 = vector.load %arg16[%c0_214, %c0_215] : memref<1x1xf32, #tpu.memory_space<vmem>>, vector<1x1xf32>
    %371 = vector.broadcast %370 : vector<1x1xf32> to vector<16x1xf32>
    %372 = arith.addf %369, %371 : vector<16x1xf32>
    %373 = vector.shape_cast %372 : vector<16x1xf32> to vector<16x1xf32>
    %374 = vector.broadcast %373 : vector<16x1xf32> to vector<16x128xf32>
    %c0_216 = arith.constant 0 : index
    %c0_217 = arith.constant 0 : index
    %375 = vector.load %arg26[%c0_216, %c0_217] : memref<16x128xf32, #tpu.memory_space<vmem>>, vector<16x128xf32>
    tpu.vector_store %arg26[%c0_216, %c0_217], %374 {strides = array<i32>} : memref<16x128xf32, #tpu.memory_space<vmem>>, vector<16x128xf32>,
    %cst_218 = arith.constant dense<0xFF800000> : vector<1xf32>
    %376 = vector.multi_reduction <maximumf>, %372, %cst_218 [0] : vector<16x1xf32> to vector<1xf32>
    %377 = vector.shape_cast %376 : vector<1xf32> to vector<1x1xf32>
    %378 = vector.broadcast %377 : vector<1x1xf32> to vector<16x1xf32>
    %379 = arith.subf %372, %378 : vector<16x1xf32>
    %380 = math.exp %379 : vector<16x1xf32>
    %cst_219 = arith.constant dense<0.000000e+00> : vector<1xf32>
    %381 = vector.multi_reduction <add>, %380, %cst_219 [0] : vector<16x1xf32> to vector<1xf32>
    %382 = vector.shape_cast %381 : vector<1xf32> to vector<1x1xf32>
    %383 = vector.broadcast %382 : vector<1x1xf32> to vector<16x1xf32>
    %384 = arith.divf %380, %383 : vector<16x1xf32>
    %385 = vector.broadcast %384 : vector<16x1xf32> to vector<16x512xf32>
    %386 = arith.mulf %385, %347 : vector<16x512xf32>
    %cst_220 = arith.constant dense<0.000000e+00> : vector<512xf32>
    %387 = vector.multi_reduction <add>, %386, %cst_220 [0] : vector<16x512xf32> to vector<512xf32>
    %388 = vector.shape_cast %387 : vector<512xf32> to vector<1x512xf32>
    %c2_i32_221 = arith.constant 2 : i32
    %389 = tpu.memref_slice %arg34[%c2_i32_221] : memref<4x!tpu.dma_semaphore, #tpu.memory_space<semaphore_mem>> -> memref<1x!tpu.dma_semaphore, #tpu.memory_space<semaphore_mem>>
    %390 = tpu.memref_squeeze %389 : memref<1x!tpu.dma_semaphore, #tpu.memory_space<semaphore_mem>> -> memref<!tpu.dma_semaphore, #tpu.memory_space<semaphore_mem>>
    tpu.wait_dma2 semaphore(%390 : memref<!tpu.dma_semaphore, #tpu.memory_space<semaphore_mem>>) src(%arg23 : memref<512x512xbf16, #tpu.memory_space<any>>) dst(%arg31 : memref<512x512xbf16, #tpu.memory_space<vmem>>)
    %391 = arith.truncf %388 : vector<1x512xf32> to vector<1x512xbf16>
    %c0_222 = arith.constant 0 : index
    %c0_223 = arith.constant 0 : index
    %392 = vector.load %arg31[%c0_222, %c0_223] : memref<512x512xbf16, #tpu.memory_space<vmem>>, vector<512x512xbf16>
    %cst_224 = arith.constant dense<0.000000e+00> : vector<1x512xf32>
    %393 = tpu.matmul %391, %392, %cst_224 {dimension_numbers = #tpu.dot_dimension_numbers<[1], [0], [0], [1], [0, 0, 1, 1], [], []>} : vector<1x512xbf16>, vector<512x512xbf16>, vector<1x512xf32> -> vector<1x512xf32>
    %c0_225 = arith.constant 0 : index
    %c0_226 = arith.constant 0 : index
    %394 = vector.load %arg17[%c0_225, %c0_226] : memref<1x512xf32, #tpu.memory_space<vmem>>, vector<1x512xf32>
    %395 = arith.addf %393, %394 : vector<1x512xf32>
    %cst_227 = arith.constant 0.000000e+00 : f32
    %396 = vector.broadcast %cst_227 : f32 to vector<1x512xf32>
    %397 = arith.maximumf %395, %396 : vector<1x512xf32>
    %c3_i32_228 = arith.constant 3 : i32
    %398 = tpu.memref_slice %arg34[%c3_i32_228] : memref<4x!tpu.dma_semaphore, #tpu.memory_space<semaphore_mem>> -> memref<1x!tpu.dma_semaphore, #tpu.memory_space<semaphore_mem>>
    %399 = tpu.memref_squeeze %398 : memref<1x!tpu.dma_semaphore, #tpu.memory_space<semaphore_mem>> -> memref<!tpu.dma_semaphore, #tpu.memory_space<semaphore_mem>>
    tpu.wait_dma2 semaphore(%399 : memref<!tpu.dma_semaphore, #tpu.memory_space<semaphore_mem>>) src(%arg24 : memref<512x128xbf16, #tpu.memory_space<any>>) dst(%arg32 : memref<512x128xbf16, #tpu.memory_space<vmem>>)
    %400 = arith.truncf %397 : vector<1x512xf32> to vector<1x512xbf16>
    %c0_229 = arith.constant 0 : index
    %c0_230 = arith.constant 0 : index
    %401 = vector.load %arg32[%c0_229, %c0_230] : memref<512x128xbf16, #tpu.memory_space<vmem>>, vector<512x128xbf16>
    %cst_231 = arith.constant dense<0.000000e+00> : vector<1x128xf32>
    %402 = tpu.matmul %400, %401, %cst_231 {dimension_numbers = #tpu.dot_dimension_numbers<[1], [0], [0], [1], [0, 0, 1, 1], [], []>} : vector<1x512xbf16>, vector<512x128xbf16>, vector<1x128xf32> -> vector<1x128xf32>
    %c0_232 = arith.constant 0 : index
    %c0_233 = arith.constant 0 : index
    %403 = vector.load %arg18[%c0_232, %c0_233] : memref<1x128xf32, #tpu.memory_space<vmem>>, vector<1x128xf32>
    %404 = arith.addf %402, %403 : vector<1x128xf32>
    %c0_234 = arith.constant 0 : index
    %c0_235 = arith.constant 0 : index
    %405 = vector.load %arg25[%c0_234, %c0_235] : memref<1x128xf32, #tpu.memory_space<vmem>>, vector<1x128xf32>
    tpu.vector_store %arg25[%c0_234, %c0_235], %404 {strides = array<i32>} : memref<1x128xf32, #tpu.memory_space<vmem>>, vector<1x128xf32>,
    return
  }
}

</mosaic_0001>

<bundles_post_ra>
// kernel: tpu_custom_call.1
= control target key start
LH: loop header
LB: loop body
LE: loop exit
PB: predicated region body
PF: predicated region fallthrough
CT: control target
= control target key end

     0   :  { %s5462_s0 = inlined_call_operand.hbm [shape: bf16[16,768], index: 0, kind: input, shape index: {}]   ;;  %s5463_s1 = inlined_call_operand.hbm [shape: bf16[16,16], index: 1, kind: input, shape index: {}]   ;;  %s5464_s2 = inlined_call_operand.hbm [shape: f32[3], index: 2, kind: input, shape index: {}]   ;;  %s5465_s3 = inlined_call_operand.hbm [shape: bf16[768,128], index: 3, kind: input, shape index: {}]   ;;  %s5466_s4 = inlined_call_operand.hbm [shape: f32[1,128], index: 4, kind: input, shape index: {}]   ;;  %s5467_s5 = inlined_call_operand.hbm [shape: bf16[128,256], index: 5, kind: input, shape index: {}]   ;;  %s5468_s6 = inlined_call_operand.hbm [shape: bf16[256,128], index: 6, kind: input, shape index: {}]   ;;  %s5469_s7 = inlined_call_operand.vmem [shape: f32[3,1,256], index: 7, kind: input, shape index: {}]   ;;  %s5470_s8 = inlined_call_operand.vmem [shape: f32[3,1,256], index: 8, kind: input, shape index: {}]   ;;  %s5471_s9 = inlined_call_operand.vmem [shape: f32[3,1,256], index: 9, kind: input, shape index: {}]   ;;  %s5472_s10 = inlined_call_operand.vmem [shape: f32[3,1,128], index: 10, kind: input, shape index: {}]   ;;  %s5473_s11 = inlined_call_operand.vmem [shape: f32[2,1,128], index: 11, kind: input, shape index: {}]   ;;  %s5474_s12 = inlined_call_operand.vmem [shape: f32[2,1,128], index: 12, kind: input, shape index: {}]   ;;  %s5475_s13 = inlined_call_operand.vmem [shape: f32[1,512], index: 13, kind: input, shape index: {}]   ;;  %s5476_s14 = inlined_call_operand.vmem [shape: f32[1,1024], index: 14, kind: input, shape index: {}]   ;;  %s5477_s15 = inlined_call_operand.vmem [shape: f32[1,512], index: 15, kind: input, shape index: {}]   ;;  %s5478_s16 = inlined_call_operand.<no memory space> [shape: f32[1,1], index: 16, kind: input, shape index: {}]   ;;  %s5479_s17 = inlined_call_operand.vmem [shape: f32[1,512], index: 17, kind: input, shape index: {}]   ;;  %s5480_s18 = inlined_call_operand.vmem [shape: f32[1,128], index: 18, kind: input, shape index: {}]   ;;  %s5481_s19 = inlined_call_operand.hbm [shape: bf16[2,128,256], index: 19, kind: input, shape index: {}]   ;;  %s5482_s20 = inlined_call_operand.hbm [shape: bf16[2,256,128], index: 20, kind: input, shape index: {}]   ;;  %s5483_s21 = inlined_call_operand.hbm [shape: bf16[512,512], index: 21, kind: input, shape index: {}]   ;;  %s5484_s22 = inlined_call_operand.hbm [shape: bf16[512,1024], index: 22, kind: input, shape index: {}]   ;;  %s5485_s23 = inlined_call_operand.hbm [shape: bf16[512,512], index: 23, kind: input, shape index: {}]   ;;  %s5486_s24 = inlined_call_operand.hbm [shape: bf16[512,128], index: 24, kind: input, shape index: {}]   ;;  %s5487_s25 = inlined_call_operand.hbm [shape: f32[1,128], index: 25, kind: output, shape index: {0}]   ;;  %s5488_s26 = inlined_call_operand.hbm [shape: f32[16,128], index: 26, kind: output, shape index: {1}]  }
   0x1   :  { %5514 = sst [smem:[#allocation61_spill]] %s5462_s0  ;;  %v32_v0 = vstv %s5478_s16 }
   0x2   :  { %5515 = sst [smem:[#allocation62_spill]] %s5463_s1  ;;  %33 = vst [vmem:[#allocation10] sm:$0x1] %v32_v0 }
   0x3   :  { %5516 = sst [smem:[#allocation63_spill]] %s5464_s2 }
   0x4   :  { %5517 = sst [smem:[#allocation64_spill]] %s5465_s3 }
   0x5   :  { %5518 = sst [smem:[#allocation65_spill]] %s5466_s4 }
   0x6   :  { %5519 = sst [smem:[#allocation66_spill]] %s5467_s5 }
   0x7   :  { %5520 = sst [smem:[#allocation67_spill]] %s5468_s6 }
   0x8   :  { %5521 = sst [smem:[#allocation68_spill]] %s5469_s7 }
   0x9   :  { %5522 = sst [smem:[#allocation69_spill]] %s5470_s8 }
   0xa   :  { %5523 = sst [smem:[#allocation70_spill]] %s5471_s9 }
   0xb   :  { %5524 = sst [smem:[#allocation71_spill]] %s5472_s10 }
   0xc   :  { %5525 = sst [smem:[#allocation72_spill]] %s5477_s15 }
   0xd   :  { %5526 = sst [smem:[#allocation73_spill]] %s5479_s17 }
   0xe   :  { %5527 = sst [smem:[#allocation74_spill]] %s5480_s18 }
   0xf   :  { %5528 = sst [smem:[#allocation75_spill]] %s5487_s25 }
  0x10   :  { %5529 = sst [smem:[#allocation76_spill]] %s5488_s26 }
  0x11   :  { %34 = vsyncpa [#allocation12], 0 }
  0x12   :  { %35 = vsyncpa [#allocation16], 0 }
  0x13   :  { %36 = vsyncpa [#allocation14], 0 }
  0x14   :  { %37 = vsyncpa [#allocation20], 0 }
  0x15   :  { %38 = vsyncpa [#allocation23], 0 }
  0x16   :  { %39 = vsyncpa [#allocation13], 0 }
  0x17   :  { %40 = vsyncpa [#allocation26], 0  ;;  %s4721_s7 = smov [#allocation15]   ;;  %s5530_s29 = sld [smem:[#allocation62_spill]] }
  0x18   :  { %s58_s28 = sshll.u32 %s4721_s7, 4  ;;  %s59_s28 = int_to_ptr.vmem [resolvable:$true] %s58_s28 }
  0x1d   :  { %s4434_s0 = scalar_lea.hbm %s5530_s29, 128 }
  0x1e   :  { %p4435_p0 = scmp.ne.s32.totalorder %s5530_s29, %s4434_s0  ;;  %p4438_p1 = scmp.lt.u32.totalorder %s4434_s0, %s5530_s29 }
  0x20   :  { %p4440_p2 = pnand %p4438_p1, %p4435_p0 }
  0x22   :  { %4443 = shalt.err (!%p4440_p2)
}
  0x23   :  { %s4444_s5 = scalar_lea.vmem %s59_s28, 128  ;;  %p4449_p4 = scmp.lt.s32.totalorder %s59_s28, %s59_s28 }
  0x24   :  { %p4445_p3 = scmp.ne.s32.totalorder %s59_s28, %s4444_s5  ;;  %p4450_p5 = scmp.lt.s32.totalorder %s4444_s5, %s4444_s5 }
  0x26   :  { %p4451_p6 = por %p4450_p5, %p4449_p4 }
  0x28   :  { %p4452_p7 = pnand %p4451_p6, %p4445_p3 }
  0x2a   :  { %4455 = shalt.err (!%p4452_p7)
}
  0x2b   :  { %s5501_s10 = smov 64   ;;  %s5503_s6 = smov 4  }
  0x2c   :  { %64 = dma.hbm_to_vmem [thread:$0]  %s5530_s29, 128, %s59_s28, [#allocation16], %s5501_s10, %s5501_s10, %s5503_s6  }
  0x2d   :  { %s4724_s3 = smov [#allocation19]   ;;  %s4725_s8 = smov [#allocation11]  }
  0x2e   :  { %s91_s7 = sshll.u32 %s4724_s3, 4  ;;  %s46_s4 = sshll.u32 %s4725_s8, 4  ;;  %s92_s7 = int_to_ptr.vmem [resolvable:$true] %s91_s7  ;;  %s47_s4 = int_to_ptr.vmem [resolvable:$true] %s46_s4 }
  0x2f   :  { %s5531_s30 = sld [smem:[#allocation65_spill]] }
  0x35   :  { %s4456_s16 = scalar_lea.hbm %s5531_s30, 16 }
  0x36   :  { %p4457_p8 = scmp.ne.s32.totalorder %s5531_s30, %s4456_s16  ;;  %p4460_p9 = scmp.lt.u32.totalorder %s4456_s16, %s5531_s30 }
  0x38   :  { %p4462_p10 = pnand %p4460_p9, %p4457_p8 }
  0x3a   :  { %4465 = shalt.err (!%p4462_p10)
}
  0x3b   :  { %s4466_s28 = scalar_lea.vmem %s92_s7, 16  ;;  %s4470_s29 = scalar_lea.vmem %s92_s7, 32 }
  0x3c   :  { %p4467_p11 = scmp.ne.s32.totalorder %s92_s7, %s4466_s28  ;;  %p4471_p12 = scmp.lt.s32.totalorder %s92_s7, %s92_s7 }
  0x3d   :  { %p4472_p13 = scmp.lt.s32.totalorder %s4470_s29, %s4466_s28 }
  0x3f   :  { %p4473_p0 = por %p4472_p13, %p4471_p12 }
  0x41   :  { %p4474_p1 = pnand %p4473_p0, %p4467_p11 }
  0x43   :  { %4477 = shalt.err (!%p4474_p1)
}
  0x44   :  { %94 = dma.hbm_to_vmem [thread:$0]  %s5531_s30, 16, %s92_s7, [#allocation20]  }
  0x45   :  { %s5532_s0 = sld [smem:[#allocation61_spill]] }
  0x4b   :  { %s4478_s18 = scalar_lea.hbm %s5532_s0, 768 }
  0x4c   :  { %p4479_p2 = scmp.ne.s32.totalorder %s5532_s0, %s4478_s18  ;;  %p4482_p3 = scmp.lt.u32.totalorder %s4478_s18, %s5532_s0 }
  0x4e   :  { %p4484_p4 = pnand %p4482_p3, %p4479_p2 }
  0x50   :  { %4487 = shalt.err (!%p4484_p4)
}
  0x51   :  { %s4488_s5 = scalar_lea.vmem %s47_s4, 768  ;;  %p4493_p6 = scmp.lt.s32.totalorder %s47_s4, %s47_s4 }
  0x52   :  { %p4489_p5 = scmp.ne.s32.totalorder %s47_s4, %s4488_s5  ;;  %p4494_p7 = scmp.lt.s32.totalorder %s4488_s5, %s4488_s5 }
  0x54   :  { %p4495_p8 = por %p4494_p7, %p4493_p6 }
  0x56   :  { %p4496_p9 = pnand %p4495_p8, %p4489_p5 }
  0x58   :  { %4499 = shalt.err (!%p4496_p9)
}
  0x59   :  { %s4726_s7 = smov 384   ;;  %s4727_s30 = smov 24  }
  0x5a   :  { %52 = dma.hbm_to_vmem [thread:$0]  %s5532_s0, 768, %s47_s4, [#allocation12], %s4726_s7, %s4726_s7, %s4727_s30  }
  0x5b   :  { %s5533_s3 = sld [smem:[#allocation63_spill]] }
  0x61   :  { %s4500_s8 = scalar_lea.hbm %s5533_s3, 16 }
  0x62   :  { %p4501_p10 = scmp.ne.s32.totalorder %s5533_s3, %s4500_s8  ;;  %p4504_p11 = scmp.lt.u32.totalorder %s4500_s8, %s5533_s3 }
  0x64   :  { %p4506_p12 = pnand %p4504_p11, %p4501_p10 }
  0x66   :  { %4509 = shalt.err (!%p4506_p12)
}
  0x67   :  { %s4728_s2 = smov [#allocation17]   ;;  %s4729_s4 = smov [#allocation18]  }
  0x68   :  { %72 = dma.hbm_to_smem %s5533_s3, 16, %s4728_s2, [#allocation14]  }
  0x69   :  { %s78_s0 = sshll.u32 %s4729_s4, 4  ;;  %s4730_s7 = smov [#allocation21]   ;;  %s79_s0 = int_to_ptr.vmem [resolvable:$true] %s78_s0 }
  0x6a   :  { %s100_s30 = sshll.u32 %s4730_s7, 4  ;;  %s5534_s1 = sld [smem:[#allocation64_spill]]  ;;  %s4948_s30 = int_to_ptr.vmem [resolvable:$true] %s100_s30 }
  0x70   :  { %s4510_s27 = scalar_lea.hbm %s5534_s1, 6144 }
  0x71   :  { %p4511_p13 = scmp.ne.s32.totalorder %s5534_s1, %s4510_s27  ;;  %p4514_p0 = scmp.lt.u32.totalorder %s4510_s27, %s5534_s1 }
  0x73   :  { %p4516_p1 = pnand %p4514_p0, %p4511_p13 }
  0x75   :  { %4519 = shalt.err (!%p4516_p1)
}
  0x76   :  { %s4520_s10 = scalar_lea.vmem %s79_s0, 6144  ;;  %p4525_p3 = scmp.lt.s32.totalorder %s79_s0, %s79_s0 }
  0x77   :  { %p4521_p2 = scmp.ne.s32.totalorder %s79_s0, %s4520_s10  ;;  %p4526_p4 = scmp.lt.s32.totalorder %s4520_s10, %s4520_s10 }
  0x79   :  { %p4527_p5 = por %p4526_p4, %p4525_p3 }
  0x7b   :  { %p4528_p6 = pnand %p4527_p5, %p4521_p2 }
  0x7d   :  { %4531 = shalt.err (!%p4528_p6)
}
  0x7e   :  { %s5535_s3 = smov 64   ;;  %s5536_s7 = sld [smem:[#allocation66_spill]] }
  0x7f   :  { %84 = dma.hbm_to_vmem [thread:$0]  %s5534_s1, 6144, %s79_s0, [#allocation16], %s5535_s3, %s5535_s3, %s5503_s6  }
  0x84   :  { %s4532_s28 = scalar_lea.hbm %s5536_s7, 2048 }
  0x85   :  { %p4533_p7 = scmp.ne.s32.totalorder %s5536_s7, %s4532_s28  ;;  %p4536_p8 = scmp.lt.u32.totalorder %s4532_s28, %s5536_s7 }
  0x87   :  { %p4538_p9 = pnand %p4536_p8, %p4533_p7 }
  0x89   :  { %4541 = shalt.err (!%p4538_p9)
}
  0x8a   :  { %s4542_s25 = scalar_lea.vmem %s4948_s30, 2048  ;;  %p4547_p11 = scmp.lt.s32.totalorder %s4948_s30, %s4948_s30 }
  0x8b   :  { %p4543_p10 = scmp.ne.s32.totalorder %s4948_s30, %s4542_s25  ;;  %p4548_p12 = scmp.lt.s32.totalorder %s4542_s25, %s4542_s25 }
  0x8d   :  { %p4549_p13 = por %p4548_p12, %p4547_p11 }
  0x8f   :  { %p4550_p0 = pnand %p4549_p13, %p4543_p10 }
  0x91   :  { %4553 = shalt.err (!%p4550_p0)
}
  0x92   :  { %s5507_s0 = smov 128   ;;  %s5505_s1 = smov 8  }
  0x93   :  { %106 = dma.hbm_to_vmem [thread:$0]  %s5536_s7, 2048, %s4948_s30, [#allocation20], %s5507_s0, %s5507_s0, %s5505_s1  }
  0x94   :  { %s4733_s16 = smov [#allocation22]   ;;  %s5537_s28 = sld [smem:[#allocation67_spill]] }
  0x95   :  { %s112_s2 = sshll.u32 %s4733_s16, 4  ;;  %s113_s2 = int_to_ptr.vmem [resolvable:$true] %s112_s2 }
  0x9a   :  { %s4554_s29 = scalar_lea.hbm %s5537_s28, 2048 }
  0x9b   :  { %p4555_p1 = scmp.ne.s32.totalorder %s5537_s28, %s4554_s29  ;;  %p4558_p2 = scmp.lt.u32.totalorder %s4554_s29, %s5537_s28 }
  0x9d   :  { %p4560_p3 = pnand %p4558_p2, %p4555_p1 }
  0x9f   :  { %4563 = shalt.err (!%p4560_p3)
}
  0xa0   :  { %s4564_s6 = scalar_lea.vmem %s113_s2, 2048  ;;  %p4569_p5 = scmp.lt.s32.totalorder %s113_s2, %s113_s2 }
  0xa1   :  { %p4565_p4 = scmp.ne.s32.totalorder %s113_s2, %s4564_s6  ;;  %p4570_p6 = scmp.lt.s32.totalorder %s4564_s6, %s4564_s6 }
  0xa3   :  { %p4571_p7 = por %p4570_p6, %p4569_p5 }
  0xa5   :  { %p4572_p8 = pnand %p4571_p7, %p4565_p4 }
  0xa7   :  { %4575 = shalt.err (!%p4572_p8)
}
  0xa8   :  { %s5538_s30 = smov 4  }
  0xa9   :  { %118 = dma.hbm_to_vmem [thread:$0]  %s5537_s28, 2048, %s113_s2, [#allocation23], %s5535_s3, %s5535_s3, %s5538_s30  }
  0xaa   :  { %4689 = dma.done.wait [#allocation12], 768  }
  0xab   :  { %4690 = vsyncadd [#allocation12], 4294966528 }
  0xac   :  { %4691 = dma.done.wait [#allocation16], 128  }
  0xad   :  { %4692 = vsyncadd [#allocation16], 4294967168 }
  0xae   :  { %4693 = dma.done.wait [#allocation14], 16  }
  0xaf   :  { %4694 = vsyncadd [#allocation14], 4294967280 }
  0xb0   :  { %4695 = dma.done.wait [#allocation16], 6144  }
  0xb1   :  { %4696 = vsyncadd [#allocation16], 4294961152 }
  0xb2   :  { %4697 = dma.done.wait [#allocation20], 2064  }
  0xb3   :  { %4698 = vsyncadd [#allocation20], 4294965232 }
  0xb4   :  { %4699 = dma.done.wait [#allocation23], 2048  }
  0xb5   :  { %4700 = vsyncadd [#allocation23], 4294965248 }
  0xb6   :  { %164 = sfence }
  0xb7   :  { %s5000_s6 = sld [smem:[#allocation17]]  ;;  %s5002_s10 = sld [smem:[#allocation17 + $0x1]] }
  0xb8   :  { %s5004_s16 = sld [smem:[#allocation17 + $0x2]]  ;;  %s173_s2 = sld [smem:[#allocation0]]  }
  0xb9   :  { %s4734_s5 = smov [#allocation2]   ;;  %s5510_s28 = smov 256  }
  0xba   :  { %s181_s4 = sshll.u32 %s4734_s5, 4  ;;  %185 = sst [smem:[#allocation28]] %s5510_s28  ;;  %s182_s4 = int_to_ptr.vmem [resolvable:$true] %s181_s4 }
  0xbb   :  { %187 = sst [smem:[#allocation28 + $0x1]] %s5510_s28  ;;  %s5512_s29 = smov 2  }
  0xbc   :  { %191 = sst [smem:[#allocation28 + $0x3]] %s5535_s3  ;;  %s4737_s8 = smov [#allocation3]  }
  0xbd   :  { %189 = sst [smem:[#allocation28 + $0x2]] %s5512_s29  ;;  %s212_s25 = sshll.u32 %s4737_s8, 4  ;;  %s5022_s25 = int_to_ptr.vmem [resolvable:$true] %s212_s25 }
  0xbe   :  { %s3827_s27 = sshll.u32 %s173_s2, 26  ;;  %193 = sst [smem:[#allocation28 + $0x4]] %s5507_s0 }
  0xbf   :  { %s5011_s18 = sadd.s32 134217728, %s3827_s27  ;;  %195 = sst [smem:[#allocation28 + $0x5]] %s5512_s29 }
  0xc0   :  { %197 = sst [smem:[#allocation28 + $0x6]] %s5507_s0  ;;  %s4738_s7 = smov [#allocation8]  }
  0xc1   :  { %199 = sst [smem:[#allocation28 + $0x7]] %s5535_s3  ;;  %s4739_s9 = smov [#allocation27]  }
  0xc2   :  { %201 = sst [smem:[#allocation28 + $0x8]] %s5538_s30  ;;  %s216_s0 = scalar_lea.hbm %s5481_s19, 2048 }
  0xc3   :  { %203 = dma.general %s5481_s19, 2048, %s182_s4, %s4738_s7, %s4739_s9, [#allocation28], %s5011_s18, 0  }
  0xc4   :  { %234 = sst [smem:[#allocation34]] %s5510_s28  ;;  %s4740_s8 = smov [#allocation2 + $0x80]  }
  0xc5   :  { %236 = sst [smem:[#allocation34 + $0x1]] %s5510_s28  ;;  %s5030_s26 = sshll.u32 %s4740_s8, 4  ;;  %s231_s26 = int_to_ptr.vmem [resolvable:$true] %s5030_s26 }
  0xc6   :  { %238 = sst [smem:[#allocation34 + $0x2]] %s5512_s29  ;;  %s5539_s17 = smov 128  }
  0xc7   :  { %240 = sst [smem:[#allocation34 + $0x3]] %s5535_s3  ;;  %s5041_s7 = scalar_lea.hbm %s5482_s20, 2048 }
  0xc8   :  { %242 = sst [smem:[#allocation34 + $0x4]] %s5539_s17  ;;  %p4577_p9 = scmp.ne.s32.totalorder %s5482_s20, %s5041_s7 }
  0xc9   :  { %244 = sst [smem:[#allocation34 + $0x5]] %s5512_s29  ;;  %s5050_s8 = scalar_lea.hbm %s5482_s20, 4096 }
  0xca   :  { %246 = sst [smem:[#allocation34 + $0x6]] %s5539_s17  ;;  %p4579_p10 = scmp.lt.u32.totalorder %s5050_s8, %s5041_s7 }
  0xcb   :  { %248 = sst [smem:[#allocation34 + $0x7]] %s5535_s3  ;;  %p4580_p11 = scmp.lt.u32.totalorder %s5041_s7, %s5482_s20 }
  0xcc   :  { %250 = sst [smem:[#allocation34 + $0x8]] %s5538_s30 }
  0xcd   :  { %p4581_p12 = por %p4580_p11, %p4579_p10 }
  0xcf   :  { %p4582_p13 = pnand %p4581_p12, %p4577_p9 }
  0xd1   :  { %4585 = shalt.err (!%p4582_p13)  }
  0xd2   :  { %s4586_s5 = scalar_lea.vmem %s5022_s25, 2048  ;;  %s4590_s2 = scalar_lea.vmem %s5022_s25, 4096 }
  0xd3   :  { %p4587_p0 = scmp.ne.s32.totalorder %s5022_s25, %s4586_s5  ;;  %p4591_p1 = scmp.lt.s32.totalorder %s5022_s25, %s5022_s25 }
  0xd4   :  { %p4592_p2 = scmp.lt.s32.totalorder %s4590_s2, %s4586_s5 }
  0xd6   :  { %p4593_p3 = por %p4592_p2, %p4591_p1 }
  0xd8   :  { %p4594_p4 = pnand %p4593_p3, %p4587_p0 }
  0xda   :  { %4597 = shalt.err (!%p4594_p4)  }
  0xdb   :  { %215 = dma.hbm_to_vmem [thread:$0]  %s5482_s20, 2048, %s5022_s25, [#allocation8 + $0x1] }
  0xdc   :  { %s4741_s1 = smov [#allocation8 + $0x2]   ;;  %s4742_s4 = smov [#allocation33]  }
  0xdd   :  { %252 = dma.general %s216_s0, 2048, %s231_s26, %s4741_s1, %s4742_s4, [#allocation34], %s5011_s18, 0  }
  0xde   :  { %s4743_s15 = smov 512   ;;  %s4744_s5 = smov [#allocation3 + $0x80]  }
  0xdf   :  { %282 = sst [smem:[#allocation38]] %s4743_s15  ;;  %s263_s28 = sshll.u32 %s4744_s5, 4  ;;  %s264_s28 = int_to_ptr.vmem [resolvable:$true] %s263_s28 }
  0xe0   :  { %284 = sst [smem:[#allocation38 + $0x1]] %s4743_s15  ;;  %s4745_s19 = smov [#allocation4]  }
  0xe1   :  { %286 = sst [smem:[#allocation38 + $0x2]] %s5538_s30  ;;  %s278_s26 = sshll.u32 %s4745_s19, 4  ;;  %s279_s26 = int_to_ptr.vmem [resolvable:$true] %s278_s26 }
  0xe2   :  { %288 = sst [smem:[#allocation38 + $0x3]] %s5535_s3  ;;  %s5540_s0 = smov 2  }
  0xe3   :  { %290 = sst [smem:[#allocation38 + $0x4]] %s5539_s17  ;;  %s5541_s29 = smov 256  }
  0xe4   :  { %292 = sst [smem:[#allocation38 + $0x5]] %s5540_s0  ;;  %p4599_p5 = scmp.ne.s32.totalorder %s5041_s7, %s5050_s8 }
  0xe5   :  { %294 = sst [smem:[#allocation38 + $0x6]] %s5541_s29  ;;  %p4602_p6 = scmp.lt.u32.totalorder %s5050_s8, %s5050_s8 }
  0xe6   :  { %296 = sst [smem:[#allocation38 + $0x7]] %s5535_s3 }
  0xe7   :  { %298 = sst [smem:[#allocation38 + $0x8]] %s5538_s30  ;;  %p4603_p7 = por %p4602_p6, %p4580_p11 }
  0xe9   :  { %p4605_p8 = por %p4603_p7, %p4579_p10 }
  0xeb   :  { %p4606_p9 = pnand %p4605_p8, %p4599_p5 }
  0xed   :  { %4609 = shalt.err (!%p4606_p9)  }
  0xee   :  { %s4610_s4 = scalar_lea.vmem %s264_s28, 2048  ;;  %p4615_p13 = scmp.lt.s32.totalorder %s264_s28, %s5022_s25 }
  0xef   :  { %p4611_p12 = scmp.ne.s32.totalorder %s264_s28, %s4610_s4  ;;  %p4616_p0 = scmp.lt.s32.totalorder %s4590_s2, %s4610_s4 }
  0xf1   :  { %p4617_p1 = por %p4616_p0, %p4615_p13 }
  0xf3   :  { %p4618_p2 = pnand %p4617_p1, %p4611_p12 }
  0xf5   :  { %4621 = shalt.err (!%p4618_p2)  }
  0xf6   :  { %266 = dma.hbm_to_vmem [thread:$0]  %s5041_s7, 2048, %s264_s28, [#allocation8 + $0x3]  ;;  %v4755_v55 = vmov 0   ;;  %vm1014_vm0 = vcmask 130048  }
  0xf7   :  { %s4746_s9 = smov [#allocation9]   ;;  %s4747_s20 = smov [#allocation37]  }
  0xf8   :  { %300 = dma.general %s5483_s21, 16384, %s279_s26, %s4746_s9, %s4747_s20, [#allocation38], %s5011_s18, 0  }
  0xf9   :  { %s4748_s19 = smov 1024   ;;  %s4749_s27 = smov [#allocation5]  }
  0xfa   :  { %317 = sst [smem:[#allocation40]] %s4748_s19  ;;  %s313_s1 = sshll.u32 %s4749_s27, 4  ;;  %s314_s1 = int_to_ptr.vmem [resolvable:$true] %s313_s1 }
  0xfb   :  { %319 = sst [smem:[#allocation40 + $0x1]] %s4748_s19  ;;  %s5542_s25 = smov 8  }
  0xfc   :  { %321 = sst [smem:[#allocation40 + $0x2]] %s5542_s25  ;;  %s4750_s21 = smov [#allocation9 + $0x1]  }
  0xfd   :  { %323 = sst [smem:[#allocation40 + $0x3]] %s5535_s3  ;;  %s4751_s7 = smov [#allocation39]  }
  0xfe   :  { %325 = sst [smem:[#allocation40 + $0x4]] %s5539_s17  ;;  %s4752_s26 = smov [#allocation6]  }
  0xff   :  { %327 = sst [smem:[#allocation40 + $0x5]] %s5540_s0  ;;  %s348_s4 = sshll.u32 %s4752_s26, 4  ;;  %s349_s4 = int_to_ptr.vmem [resolvable:$true] %s348_s4 }
 0x100   :  { %329 = sst [smem:[#allocation40 + $0x6]] %s4743_s15  ;;  %s4754_s9 = smov [#allocation41]  }
 0x101   :  { %331 = sst [smem:[#allocation40 + $0x7]] %s5535_s3  ;;  %s4756_s19 = smov [#allocation7]  }
 0x102   :  { %333 = sst [smem:[#allocation40 + $0x8]] %s5538_s30  ;;  %s379_s27 = sshll.u32 %s4756_s19, 4  ;;  %s380_s27 = int_to_ptr.vmem [resolvable:$true] %s379_s27 }
 0x103   :  { %335 = dma.general %s5484_s22, 32768, %s314_s1, %s4750_s21, %s4751_s7, [#allocation40], %s5011_s18, 0  }
 0x104   :  { %352 = sst [smem:[#allocation42]] %s4743_s15  ;;  %s4753_s22 = smov [#allocation9 + $0x2]  }
 0x105   :  { %354 = sst [smem:[#allocation42 + $0x1]] %s4743_s15  ;;  %s4623_s7 = scalar_lea.hbm %s5486_s24, 4096 }
 0x106   :  { %356 = sst [smem:[#allocation42 + $0x2]] %s5538_s30  ;;  %p4624_p10 = scmp.ne.s32.totalorder %s5486_s24, %s4623_s7 }
 0x107   :  { %358 = sst [smem:[#allocation42 + $0x3]] %s5535_s3  ;;  %p4627_p11 = scmp.lt.u32.totalorder %s4623_s7, %s5486_s24 }
 0x108   :  { %360 = sst [smem:[#allocation42 + $0x4]] %s5539_s17 }
 0x109   :  { %362 = sst [smem:[#allocation42 + $0x5]] %s5540_s0  ;;  %p4629_p3 = pnand %p4627_p11, %p4624_p10 }
 0x10a   :  { %364 = sst [smem:[#allocation42 + $0x6]] %s5541_s29 }
 0x10b   :  { %366 = sst [smem:[#allocation42 + $0x7]] %s5535_s3 }
 0x10c   :  { %368 = sst [smem:[#allocation42 + $0x8]] %s5538_s30 }
 0x10d   :  { %370 = dma.general %s5485_s23, 16384, %s349_s4, %s4753_s22, %s4754_s9, [#allocation42], %s5011_s18, 0  }
 0x10e   :  { %v4236_v1 = vld [vmem:[#allocation18 + $0x40] sm:$0xff]   ;;  %v4240_v5 = vld [vmem:[#allocation18 + $0x48] sm:$0xff]   ;;  %v4244_v9 = vld [vmem:[#allocation18 + $0x50] sm:$0xff]   ;;  %s5543_s30 = sld [smem:[#allocation68_spill]]  ;;  %s5544_s0 = sld [smem:[#allocation69_spill]] }
 0x10f   :  { %v4237_v2 = vld [vmem:[#allocation18] sm:$0xff]   ;;  %3962 = vmatprep.subr.bf16.mxu0 %v4236_v1  ;;  %v4241_v6 = vld [vmem:[#allocation18 + $0x8] sm:$0xff]   ;;  %v4245_v10 = vld [vmem:[#allocation18 + $0x10] sm:$0xff]   ;;  %s5545_s8 = sld [smem:[#allocation70_spill]] }
 0x110   :  { %v4238_v3 = vld [vmem:[#allocation18 + $0xc0] sm:$0xff]   ;;  %3963 = vmatpush3.bf16.msra.mxu0 %v4237_v2  ;;  %v4242_v7 = vld [vmem:[#allocation18 + $0xc8] sm:$0xff]   ;;  %v4246_v11 = vld [vmem:[#allocation18 + $0xd0] sm:$0xff]  }
 0x111   :  { %v4239_v4 = vld [vmem:[#allocation18 + $0x80] sm:$0xff]   ;;  %3984 = vmatprep.subr.bf16.mxu1 %v4238_v3  ;;  %3964 = vmatprep.subr.bf16.mxu0 %v4240_v5  ;;  %v4243_v8 = vld [vmem:[#allocation18 + $0x88] sm:$0xff]   ;;  %v4247_v12 = vld [vmem:[#allocation18 + $0x90] sm:$0xff]  }
 0x112   :  { %3985 = vmatpush3.bf16.msra.mxu1 %v4239_v4  ;;  %v4248_v13 = vld [vmem:[#allocation18 + $0x58] sm:$0xff]   ;;  %v4252_v17 = vld [vmem:[#allocation18 + $0x60] sm:$0xff]   ;;  %v4256_v21 = vld [vmem:[#allocation18 + $0x68] sm:$0xff]  }
 0x113   :  { %3986 = vmatprep.subr.bf16.mxu1 %v4242_v7  ;;  %v4249_v14 = vld [vmem:[#allocation18 + $0x18] sm:$0xff]   ;;  %v4253_v18 = vld [vmem:[#allocation18 + $0x20] sm:$0xff]   ;;  %v4257_v22 = vld [vmem:[#allocation18 + $0x28] sm:$0xff]  }
 0x114   :  { %3965 = vmatpush3.bf16.msra.mxu0 %v4241_v6  ;;  %v4250_v15 = vld [vmem:[#allocation18 + $0xd8] sm:$0xff]   ;;  %v4254_v19 = vld [vmem:[#allocation18 + $0xe0] sm:$0xff]   ;;  %v4258_v23 = vld [vmem:[#allocation18 + $0xe8] sm:$0xff]  }
 0x115   :  { %3966 = vmatprep.subr.bf16.mxu0 %v4244_v9  ;;  %v4251_v16 = vld [vmem:[#allocation18 + $0x98] sm:$0xff]   ;;  %v4255_v20 = vld [vmem:[#allocation18 + $0xa0] sm:$0xff]   ;;  %v4259_v24 = vld [vmem:[#allocation18 + $0xa8] sm:$0xff]  }
 0x116   :  { %3987 = vmatpush3.bf16.msra.mxu1 %v4243_v8  ;;  %v4260_v25 = vld [vmem:[#allocation18 + $0x70] sm:$0xff]   ;;  %v4264_v29 = vld [vmem:[#allocation18 + $0x78] sm:$0xff]   ;;  %v4267_v32 = vld [vmem:[#allocation11] ss:$24 sps:$4 sm:$0xff]  }
 0x117   :  { %3988 = vmatprep.subr.bf16.mxu1 %v4246_v11  ;;  %v4261_v26 = vld [vmem:[#allocation18 + $0x30] sm:$0xff]   ;;  %v4265_v30 = vld [vmem:[#allocation18 + $0x38] sm:$0xff]   ;;  %v4269_v33 = vld [vmem:[#allocation11 + $0x4] ss:$24 sps:$4 sm:$0xff]  }
 0x118   :  { %3967 = vmatpush3.bf16.msra.mxu0 %v4245_v10  ;;  %v4262_v27 = vld [vmem:[#allocation18 + $0xf0] sm:$0xff]   ;;  %v4266_v31 = vld [vmem:[#allocation18 + $0xf8] sm:$0xff]   ;;  %844 = vmatprep.mubr.bf16.mxu0 %v4269_v33  ;;  %v4271_v35 = vld [vmem:[#allocation18 + $0x140] sm:$0xff]  }
 0x119   :  { %3968 = vmatprep.subr.bf16.mxu0 %v4248_v13  ;;  %v4263_v28 = vld [vmem:[#allocation18 + $0xb0] sm:$0xff]   ;;  %v4270_v34 = vld [vmem:[#allocation18 + $0xb8] sm:$0xff]   ;;  %v4275_v38 = vld [vmem:[#allocation18 + $0x100] sm:$0xff]  }
 0x11a   :  { %3989 = vmatpush3.bf16.msra.mxu1 %v4247_v12  ;;  %v4272_v36 = vld [vmem:[#allocation11 + $0x8] ss:$24 sps:$4 sm:$0xff]   ;;  %v4274_v37 = vld [vmem:[#allocation11 + $0xc] ss:$24 sps:$4 sm:$0xff]   ;;  %v4280_v43 = vld [vmem:[#allocation18 + $0x158] sm:$0xff]  }
 0x11b   :  { %3990 = vmatprep.subr.bf16.mxu1 %v4250_v15  ;;  %885 = vmatprep.mubr.bf16.mxu1 %v4274_v37  ;;  %v4276_v39 = vld [vmem:[#allocation18 + $0x148] sm:$0xff]   ;;  %v4278_v41 = vld [vmem:[#allocation18 + $0x150] sm:$0xff]   ;;  %v4281_v44 = vld [vmem:[#allocation18 + $0x118] sm:$0xff]  }
 0x11c   :  { %3969 = vmatpush3.bf16.msra.mxu0 %v4249_v14  ;;  %v4277_v40 = vld [vmem:[#allocation18 + $0x108] sm:$0xff]   ;;  %v4279_v42 = vld [vmem:[#allocation18 + $0x110] sm:$0xff]   ;;  %v4282_v45 = vld [vmem:[#allocation18 + $0x160] sm:$0xff]  }
 0x11d   :  { %3970 = vmatprep.subr.bf16.mxu0 %v4252_v17  ;;  %v4283_v46 = vld [vmem:[#allocation18 + $0x120] sm:$0xff]   ;;  %v4284_v47 = vld [vmem:[#allocation18 + $0x168] sm:$0xff]   ;;  %v4292_v48 = vld [vmem:[#allocation11 + $0x14] ss:$24 sps:$4 sm:$0xff]  }
 0x11e   :  { %3991 = vmatpush3.bf16.msra.mxu1 %v4251_v16  ;;  %v4285_v49 = vld [vmem:[#allocation18 + $0x128] sm:$0xff]   ;;  %v4286_v50 = vld [vmem:[#allocation18 + $0x170] sm:$0xff]   ;;  %v4288_v52 = vld [vmem:[#allocation18 + $0x178] sm:$0xff]  }
 0x11f   :  { %3992 = vmatprep.subr.bf16.mxu1 %v4254_v19  ;;  %v4287_v51 = vld [vmem:[#allocation18 + $0x130] sm:$0xff]   ;;  %v4289_v53 = vld [vmem:[#allocation18 + $0x138] sm:$0xff]   ;;  %v3837_v57 = vld [vmem:[#allocation19] ss:$0 sm:$0xff] }
 0x120   :  { %3971 = vmatpush3.bf16.msra.mxu0 %v4253_v18  ;;  %v4290_v54 = vld [vmem:[#allocation11 + $0x10] ss:$24 sps:$4 sm:$0xff]  }
 0x121   :  { %3972 = vmatprep.subr.bf16.mxu0 %v4256_v21 }
 0x122   :  { %3993 = vmatpush3.bf16.msra.mxu1 %v4255_v20 }
 0x123   :  { %3994 = vmatprep.subr.bf16.mxu1 %v4258_v23 }
 0x124   :  { %3973 = vmatpush3.bf16.msra.mxu0 %v4257_v22 }
 0x125   :  { %3974 = vmatprep.subr.bf16.mxu0 %v4260_v25 }
 0x126   :  { %3995 = vmatpush3.bf16.msra.mxu1 %v4259_v24 }
 0x127   :  { %3996 = vmatprep.subr.bf16.mxu1 %v4262_v27 }
 0x128   :  { %3975 = vmatpush3.bf16.msra.mxu0 %v4261_v26 }
 0x129   :  { %3976 = vmatprep.subr.bf16.mxu0 %v4264_v29 }
 0x12a   :  { %3997 = vmatpush3.bf16.msra.mxu1 %v4263_v28 }
 0x12b   :  { %3998 = vmatprep.subr.bf16.mxu1 %v4266_v31 }
 0x12c   :  { %3977 = vmatpush3.bf16.msra.mxu0 %v4265_v30  ;;  %v998_v30 = vstv %s5000_s6 }
 0x12d   :  { %4006 = vmatprep.subr.bf16.mxu0 %v4271_v35 }
 0x12e   :  { %3999 = vmatpush3.bf16.msra.mxu1 %v4270_v34 }
 0x12f   :  { %845 = vmatmul.mubr.bf16.vlgmr.msra.gmra.mrb[0].mxu0 %v4267_v32 }
 0x130   :  { %4007 = vmatpush3.bf16.msra.mxu0 %v4275_v38  ;;  %926 = vmatprep.mubr.bf16.mxu0 %v4292_v48  ;;  %v4302_v48 = vld [vmem:[#allocation21 + $0x24] ss:$8 sps:$4 sm:$0xff]  }
 0x131   :  { %886 = vmatmul.mubr.bf16.vlgmr.msra.gmra.mrb[0].mxu1 %v4272_v36  ;;  %4008 = vmatprep.subr.bf16.mxu0 %v4276_v39 }
 0x132   :  { %1050 = vmatprep.mubr.bf16.mxu1 %v4755_v55 }
 0x134   :  { %4009 = vmatpush3.bf16.msra.mxu0 %v4277_v40 }
 0x135   :  { %4010 = vmatprep.subr.bf16.mxu0 %v4278_v41 }
 0x138   :  { %4011 = vmatpush3.bf16.msra.mxu0 %v4279_v42  ;;  %v4296_v42 = vld [vmem:[#allocation21 + $0x4] ss:$8 sps:$4 sm:$0xff]  }
 0x139   :  { %4012 = vmatprep.subr.bf16.mxu0 %v4280_v43 }
 0x13c   :  { %4013 = vmatpush3.bf16.msra.mxu0 %v4281_v44  ;;  %v5143_v44 = vld [vmem:[#allocation15] sm:$0xff]  }
 0x13d   :  { %4014 = vmatprep.subr.bf16.mxu0 %v4282_v45  ;;  %v4294_v45 = vld [vmem:[#allocation21] ss:$8 sps:$4 sm:$0xff]  }
 0x140   :  { %4015 = vmatpush3.bf16.msra.mxu0 %v4283_v46  ;;  %v4299_v46 = vld [vmem:[#allocation21 + $0x14] ss:$8 sps:$4 sm:$0xff]  }
 0x141   :  { %4016 = vmatprep.subr.bf16.mxu0 %v4284_v47  ;;  %v4297_v47 = vld [vmem:[#allocation21 + $0x10] ss:$8 sps:$4 sm:$0xff]  }
 0x144   :  { %4017 = vmatpush3.bf16.msra.mxu0 %v4285_v49  ;;  %v4300_v49 = vld [vmem:[#allocation21 + $0x20] ss:$8 sps:$4 sm:$0xff]  }
 0x145   :  { %4018 = vmatprep.subr.bf16.mxu0 %v4286_v50  ;;  %v4305_v50 = vld [vmem:[#allocation21 + $0x34] ss:$8 sps:$4 sm:$0xff]  }
 0x148   :  { %4019 = vmatpush3.bf16.msra.mxu0 %v4287_v51  ;;  %v4303_v51 = vld [vmem:[#allocation21 + $0x30] ss:$8 sps:$4 sm:$0xff]  }
 0x149   :  { %4020 = vmatprep.subr.bf16.mxu0 %v4288_v52  ;;  %v4308_v52 = vld [vmem:[#allocation21 + $0x44] ss:$8 sps:$4 sm:$0xff]  }
 0x14c   :  { %4021 = vmatpush3.bf16.msra.mxu0 %v4289_v53  ;;  %v4306_v53 = vld [vmem:[#allocation21 + $0x40] ss:$8 sps:$4 sm:$0xff]  }
 0x14f   :  { %927 = vmatmul.mubr.bf16.vlgmr.msra.gmra.mrb[4].mxu0 %v4290_v54  ;;  %v4311_v54 = vld [vmem:[#allocation21 + $0x54] ss:$8 sps:$4 sm:$0xff]  }
 0x202   :  { %v3978_v56 = vpop.f32.mrb[0].mxu0 }
 0x203   :  { %v3979_v58 = vpop.f32.mrb[1].mxu0 }
 0x204   :  { %v3980_v59 = vadd.f32 %v3979_v58, %v3978_v56  ;;  %v3981_v60 = vpop.f32.mrb[2].mxu0  ;;  %v4000_v61 = vpop.f32.mrb[0].mxu1  ;;  %v4309_v56 = vld [vmem:[#allocation21 + $0x50] ss:$8 sps:$4 sm:$0xff]   ;;  %v4312_v58 = vld [vmem:[#allocation21 + $0x60] ss:$8 sps:$4 sm:$0xff]  }
 0x205   :  { %v3982_v62 = vpop.f32.mrb[3].mxu0  ;;  %v4001_v1 = vpop.f32.mrb[1].mxu1 }
 0x206   :  { %v847_v63 = vadd.f32 %v3980_v59, %v3837_v57  ;;  %v3983_v0 = vadd.f32 %v3982_v62, %v3981_v60  ;;  %v4002_v2 = vadd.f32 %v4001_v1, %v4000_v61  ;;  %v4003_v3 = vpop.f32.mrb[2].mxu1  ;;  %v4317_v59 = vld [vmem:[#allocation21 + $0x74] ss:$8 sps:$4 sm:$0xff]   ;;  %v4315_v60 = vld [vmem:[#allocation21 + $0x70] ss:$8 sps:$4 sm:$0xff]  }
 0x207   :  { %v4004_v5 = vpop.f32.mrb[3].mxu1 }
 0x208   :  { %v850_v4 = vadd.f32 %v3983_v0, %v3837_v57  ;;  %v888_v6 = vadd.f32 %v4002_v2, %v847_v63  ;;  %v4005_v7 = vadd.f32 %v4004_v5, %v4003_v3  ;;  %v4314_v57 = vld [vmem:[#allocation21 + $0x64] ss:$8 sps:$4 sm:$0xff]  }
 0x20a   :  { %v891_v8 = vadd.f32 %v4005_v7, %v850_v4 }
 0x222   :  { %v4022_v9 = vpop.f32.mrb[4].mxu0 }
 0x223   :  { %v4023_v10 = vpop.f32.mrb[5].mxu0 }
 0x224   :  { %v4024_v11 = vadd.f32 %v4023_v10, %v4022_v9  ;;  %v4025_v12 = vpop.f32.mrb[6].mxu0 }
 0x225   :  { %v4026_v13 = vpop.f32.mrb[7].mxu0 }
 0x226   :  { %v929_v14 = vadd.f32 %v4024_v11, %v888_v6  ;;  %v4027_v15 = vadd.f32 %v4026_v13, %v4025_v12  ;;  %v1076_v12 = vlaneseq }
 0x228   :  { %v5136_v16 = vmax.f32 %v929_v14, 0.0  ;;  %v932_v17 = vadd.f32 %v4027_v15, %v891_v8  ;;  %v5150_v13 = vshrl.u32 %v1076_v12, 7  ;;  %v1074_v15 = vld [vmem:[%s5543_s30] sm:$0x3] }
 0x22a   :  { %v985_v18 = vmax.f32 %v5136_v16, 0.0  ;;  %v5139_v19 = vmax.f32 %v932_v17, 0.0  ;;  %v5153_v14 = vsub.s32 0, %v5150_v13  ;;  %v5159_v17 = vsub.s32 1, %v5150_v13 }
 0x22c   :  { %v986_v20 = vmax.f32 %v5139_v19, 0.0  ;;  %v987_v21 = vadd.f32 1e-07, %v985_v18  ;;  %v1079_v18 = vrot.slane %v1074_v15, %v5153_v14 }
 0x22e   :  { %v988_v22 = vadd.f32 1e-07, %v986_v20  ;;  %v1083_v20 = vrot.slane %v1074_v15, %v5159_v17 }
 0x230   :  { %v989_v23 = vmax.f32 %v987_v21, %v988_v22 }
 0x232   :  { %v990_v24 = vrot.slane %v989_v23, 4 }
 0x234   :  { %v991_v25 = vmax.f32 %v989_v23, %v990_v24 }
 0x236   :  { %v992_v26 = vrot.slane %v991_v25, 2 }
 0x238   :  { %v993_v27 = vmax.f32 %v991_v25, %v992_v26 }
 0x23a   :  { %v994_v28 = vrot.slane %v993_v27, 1 }
 0x23c   :  { %v995_v29 = vmax.f32 %v993_v27, %v994_v28 }
 0x23e   :  { %v996_v31 = vsub.f32 %v987_v21, %v995_v29  ;;  %v997_v32 = vsub.f32 %v988_v22, %v995_v29 }
 0x240   :  { %v999_v33 = vmul.f32 %v998_v30, %v996_v31  ;;  %v1000_v34 = vmul.f32 %v998_v30, %v997_v32  ;;  %v4318_v31 = vld [vmem:[#allocation22 + $0x40] sm:$0xff]  }
 0x241   :  { %v4319_v32 = vld [vmem:[#allocation22] sm:$0xff]   ;;  %4028 = vmatprep.subr.bf16.mxu0 %v4318_v31 }
 0x242   :  { %v1001_v35 = vmul.f32 1.442695, %v999_v33  ;;  %v1003_v36 = vmul.f32 1.442695, %v1000_v34  ;;  %4029 = vmatpush3.bf16.msra.mxu0 %v4319_v32 }
 0x244   :  { %4334 = vpow2.f32 %v1001_v35 }
 0x245   :  { %4336 = vpow2.f32 %v1003_v36 }
 0x24e   :  { %v4335_v37 = vpop.eup %4334 }
 0x24f   :  { %v4337_v38 = vpop.eup %4336  ;;  %v1005_v39 = vmul.f32 %v4335_v37, %v987_v21 }
 0x250   :  { %v1006_v40 = vmul.f32 %v4337_v38, %v988_v22  ;;  %v1007_v43 = vpack.c.bf16 %v4337_v38, %v4335_v37 }
 0x252   :  { %v1008_v41 = vpack.c.bf16 %v1006_v40, %v1005_v39 }
 0x254   :  { %1018 = vmatprep.subr.bf16.mxu1 %v1008_v41 }
 0x255   :  { %1019 = vmatpush1.bf16.msra.mxu1 %v1007_v43 }
 0x256   :  { %1166 = vmatprep.subr.bf16.mxu1 %v4296_v42 }
 0x258   :  { %3893 = vmatmul.mubr.msk.bf16.vlgmr.msra.gmra.mrb[4].mxu1 %vm1014_vm0, %v5143_v44 }
 0x259   :  { %1167 = vmatpush1.bf16.msra.mxu1 %v4294_v45  ;;  %1198 = vmatprep.mubr.bf16.mxu1 %v4755_v55 }
 0x25a   :  { %1168 = vmatprep.subr.bf16.mxu1 %v4299_v46 }
 0x25d   :  { %1169 = vmatpush1.bf16.msra.mxu1 %v4297_v47 }
 0x25e   :  { %1170 = vmatprep.subr.bf16.mxu1 %v4302_v48  ;;  %v4320_v48 = vld [vmem:[#allocation22 + $0x48] sm:$0xff]  }
 0x25f   :  { %4030 = vmatprep.subr.bf16.mxu0 %v4320_v48 }
 0x261   :  { %1171 = vmatpush1.bf16.msra.mxu1 %v4300_v49  ;;  %v4321_v49 = vld [vmem:[#allocation22 + $0x8] sm:$0xff]  }
 0x262   :  { %1172 = vmatprep.subr.bf16.mxu1 %v4305_v50  ;;  %4031 = vmatpush3.bf16.msra.mxu0 %v4321_v49  ;;  %v4322_v50 = vld [vmem:[#allocation22 + $0x50] sm:$0xff]  }
 0x263   :  { %4032 = vmatprep.subr.bf16.mxu0 %v4322_v50 }
 0x265   :  { %1173 = vmatpush1.bf16.msra.mxu1 %v4303_v51  ;;  %v4323_v51 = vld [vmem:[#allocation22 + $0x10] sm:$0xff]  }
 0x266   :  { %1174 = vmatprep.subr.bf16.mxu1 %v4308_v52  ;;  %4033 = vmatpush3.bf16.msra.mxu0 %v4323_v51  ;;  %v4324_v52 = vld [vmem:[#allocation22 + $0x58] sm:$0xff]  }
 0x267   :  { %4034 = vmatprep.subr.bf16.mxu0 %v4324_v52 }
 0x269   :  { %1175 = vmatpush1.bf16.msra.mxu1 %v4306_v53  ;;  %v4325_v53 = vld [vmem:[#allocation22 + $0x18] sm:$0xff]  }
 0x26a   :  { %1176 = vmatprep.subr.bf16.mxu1 %v4311_v54  ;;  %4035 = vmatpush3.bf16.msra.mxu0 %v4325_v53  ;;  %v4326_v54 = vld [vmem:[#allocation22 + $0x60] sm:$0xff]  }
 0x26b   :  { %4036 = vmatprep.subr.bf16.mxu0 %v4326_v54 }
 0x26d   :  { %1177 = vmatpush1.bf16.msra.mxu1 %v4309_v56  ;;  %v4327_v56 = vld [vmem:[#allocation22 + $0x20] sm:$0xff]  }
 0x26e   :  { %1178 = vmatprep.subr.bf16.mxu1 %v4314_v57  ;;  %4037 = vmatpush3.bf16.msra.mxu0 %v4327_v56  ;;  %v4328_v57 = vld [vmem:[#allocation22 + $0x68] sm:$0xff]  }
 0x26f   :  { %4038 = vmatprep.subr.bf16.mxu0 %v4328_v57 }
 0x271   :  { %1179 = vmatpush1.bf16.msra.mxu1 %v4312_v58  ;;  %v4329_v58 = vld [vmem:[#allocation22 + $0x28] sm:$0xff]  }
 0x272   :  { %1180 = vmatprep.subr.bf16.mxu1 %v4317_v59  ;;  %4039 = vmatpush3.bf16.msra.mxu0 %v4329_v58  ;;  %v4330_v59 = vld [vmem:[#allocation22 + $0x70] sm:$0xff]  }
 0x273   :  { %4040 = vmatprep.subr.bf16.mxu0 %v4330_v59 }
 0x275   :  { %1181 = vmatpush1.bf16.msra.mxu1 %v4315_v60  ;;  %v4331_v60 = vld [vmem:[#allocation22 + $0x30] sm:$0xff]  }
 0x276   :  { %4041 = vmatpush3.bf16.msra.mxu0 %v4331_v60 }
 0x32b   :  { %v1052_v61 = vpop.f32.mrb[4].mxu1 }
 0x32c   :  { %vm1061_vm1 = vcmp.gt.f32.partialorder %v1052_v61, 0.0  ;;  %v1054_v62 = vpop.f32.mrb[5].mxu1 }
 0x32d   :  { %v1063_v63 = vsel %vm1061_vm1, %v1052_v61, 1.0  ;;  %v1056_v0 = vpop.f32.mrb[6].mxu1  ;;  %v4332_v61 = vld [vmem:[#allocation22 + $0x78] sm:$0xff]  }
 0x32e   :  { %4338 = vrcp.f32 %v1063_v63  ;;  %vm1062_vm2 = vcmp.gt.f32.partialorder %v1056_v0, 0.0  ;;  %v1058_v1 = vpop.f32.mrb[7].mxu1  ;;  %4042 = vmatprep.subr.bf16.mxu0 %v4332_v61 }
 0x32f   :  { %v1064_v2 = vsel %vm1062_vm2, %v1056_v0, 1.0 }
 0x330   :  { %4340 = vrcp.f32 %v1064_v2 }
 0x338   :  { %v4339_v3 = vpop.eup %4338 }
 0x339   :  { %v1066_v4 = vmul.f32 %v4339_v3, %v1054_v62  ;;  %v4333_v62 = vld [vmem:[#allocation22 + $0x38] sm:$0xff]  }
 0x33a   :  { %v4341_v5 = vpop.eup %4340  ;;  %4043 = vmatpush3.bf16.msra.mxu0 %v4333_v62 }
 0x33b   :  { %v1069_v6 = vsel %vm1061_vm1, %v1066_v4, 0.0  ;;  %v1068_v7 = vmul.f32 %v4341_v5, %v1058_v1  ;;  %v1209_v5 = vld [vmem:[%s5544_s0] sm:$0x3] }
 0x33c   :  { %v1071_v9 = vadd.f32 %v1069_v6, %v5136_v16  ;;  %v1248_v6 = vrot.slane %v1209_v5, %v5153_v14 }
 0x33d   :  { %v1070_v8 = vsel %vm1062_vm2, %v1068_v7, 0.0  ;;  %v1252_v7 = vrot.slane %v1209_v5, %v5159_v17 }
 0x33e   :  { %v1072_v10 = vadd.f32 %v1070_v8, %v5139_v19 }
 0x340   :  { %v1073_v11 = vpack.c.bf16 %v1072_v10, %v1071_v9  ;;  %v1210_v9 = vld [vmem:[%s5545_s8] sm:$0x3] }
 0x341   :  { %v1263_v15 = vrot.slane %v1210_v9, %v5153_v14 }
 0x342   :  { %1199 = vmatmul.mubr.bf16.vlgmr.msra.gmra.mrb[8].mxu1 %v1073_v11 }
 0x415   :  { %v1200_v21 = vpop.f32.mrb[8].mxu1 }
 0x416   :  { %v1201_v22 = vadd.f32 %v1200_v21, %v1079_v18  ;;  %v1202_v23 = vpop.f32.mrb[9].mxu1 }
 0x417   :  { %v1203_v24 = vadd.f32 %v1202_v23, %v1083_v20  ;;  %v1204_v25 = vpop.f32.mrb[10].mxu1 }
 0x418   :  { %v1206_v26 = vpop.f32.mrb[11].mxu1  ;;  %v1205_v27 = vadd.f32 %v1204_v25, %v1079_v18  ;;  %v1267_v18 = vrot.slane %v1210_v9, %v5159_v17 }
 0x419   :  { %v1207_v28 = vadd.f32 %v1206_v26, %v1083_v20  ;;  %v1211_v29 = vadd.f32 %v1203_v24, %v1201_v22 }
 0x41b   :  { %1212 = vadd.xlane.f32.xlu0 %v1211_v29  ;;  %v1214_v30 = vadd.f32 %v1207_v28, %v1205_v27 }
 0x41f   :  { %1215 = vadd.xlane.f32.xlu0 %v1214_v30 }
 0x4a8   :  { %v1213_v33 = vpop.xlane.xlu0 %1212 }
 0x4a9   :  { %v1218_v34 = vmul.f32 0.00390625, %v1213_v33 }
 0x4ab   :  { %v1220_v35 = vsub.f32 %v1201_v22, %v1218_v34  ;;  %v1221_v36 = vsub.f32 %v1203_v24, %v1218_v34 }
 0x4ac   :  { %v1216_v37 = vpop.xlane.xlu0 %1215 }
 0x4ad   :  { %v1219_v38 = vmul.f32 0.00390625, %v1216_v37  ;;  %v1224_v39 = vmul.f32 %v1220_v35, %v1220_v35  ;;  %v1225_v40 = vmul.f32 %v1221_v36, %v1221_v36 }
 0x4af   :  { %v1222_v41 = vsub.f32 %v1205_v27, %v1219_v38  ;;  %v1223_v42 = vsub.f32 %v1207_v28, %v1219_v38  ;;  %v1228_v43 = vadd.f32 %v1225_v40, %v1224_v39 }
 0x4b1   :  { %1229 = vadd.xlane.f32.xlu1 %v1228_v43  ;;  %v1226_v45 = vmul.f32 %v1222_v41, %v1222_v41  ;;  %v1227_v46 = vmul.f32 %v1223_v42, %v1223_v42 }
 0x4b3   :  { %v1231_v47 = vadd.f32 %v1227_v46, %v1226_v45 }
 0x4b5   :  { %1232 = vadd.xlane.f32.xlu1 %v1231_v47 }
 0x53e   :  { %v1230_v63 = vpop.xlane.xlu1 %1229 }
 0x53f   :  { %v1234_v0 = vmul.f32 0.00390625, %v1230_v63 }
 0x541   :  { %v1236_v1 = vadd.f32 1e-05, %v1234_v0 }
 0x542   :  { %v1233_v2 = vpop.xlane.xlu1 %1232 }
 0x543   :  { %4342 = vrsqrt.f32 %v1236_v1  ;;  %v1235_v3 = vmul.f32 0.00390625, %v1233_v2 }
 0x545   :  { %v1237_v4 = vadd.f32 1e-05, %v1235_v3 }
 0x547   :  { %4344 = vrsqrt.f32 %v1237_v4 }
 0x54d   :  { %v4343_v8 = vpop.eup %4342 }
 0x54e   :  { %v1240_v10 = vmul.f32 %v4343_v8, %v1220_v35  ;;  %v1241_v11 = vmul.f32 %v4343_v8, %v1221_v36 }
 0x550   :  { %v1256_v12 = vmul.f32 %v1252_v7, %v1241_v11  ;;  %v1255_v20 = vmul.f32 %v1248_v6, %v1240_v10 }
 0x551   :  { %v4345_v21 = vpop.eup %4344 }
 0x552   :  { %v1242_v22 = vmul.f32 %v4345_v21, %v1222_v41  ;;  %v1243_v23 = vmul.f32 %v4345_v21, %v1223_v42  ;;  %v1271_v25 = vadd.f32 %v1267_v18, %v1256_v12  ;;  %v1270_v27 = vadd.f32 %v1263_v15, %v1255_v20 }
 0x554   :  { %v1258_v24 = vmul.f32 %v1252_v7, %v1243_v23  ;;  %v1257_v26 = vmul.f32 %v1248_v6, %v1242_v22  ;;  %v1275_v30 = vmax.f32 %v1271_v25, 0.0  ;;  %v1274_v32 = vmax.f32 %v1270_v27, 0.0 }
 0x556   :  { %v1273_v28 = vadd.f32 %v1267_v18, %v1258_v24  ;;  %v1272_v29 = vadd.f32 %v1263_v15, %v1257_v26 }
 0x558   :  { %v1277_v31 = vmax.f32 %v1273_v28, 0.0  ;;  %v1276_v33 = vmax.f32 %v1272_v29, 0.0 }
 0x55a   :  { %v1279_v34 = vpack.c.bf16 %v1277_v31, %v1275_v30  ;;  %v1278_v35 = vpack.c.bf16 %v1276_v33, %v1274_v32 }
 0x55c   :  { %1415 = vmatprep.mubr.bf16.mxu0 %v1279_v34 }
 0x55d   :  { %1416 = vmatmul.mubr.bf16.vlgmr.msra.gmra.mrb[8].mxu0 %v1278_v35 }
 0x55e   :  { %4632 = shalt.err (!%p4629_p3)  }
 0x55f   :  { %s4633_s22 = scalar_lea.vmem %s380_s27, 4096  ;;  %p4638_p5 = scmp.lt.s32.totalorder %s380_s27, %s380_s27 }
 0x560   :  { %p4634_p4 = scmp.ne.s32.totalorder %s380_s27, %s4633_s22  ;;  %p4639_p6 = scmp.lt.s32.totalorder %s4633_s22, %s4633_s22 }
 0x562   :  { %p4640_p7 = por %p4639_p6, %p4638_p5 }
 0x564   :  { %p4641_p8 = pnand %p4640_p7, %p4634_p4 }
 0x566   :  { %4644 = shalt.err (!%p4641_p8)  }
 0x567   :  { %382 = dma.hbm_to_vmem [thread:$0]  %s5486_s24, 4096, %s380_s27, [#allocation9 + $0x3] }
 0x568   :  { %s5546_s3 = sld [smem:[#allocation71_spill]] }
 0x56e   :  { %v3910_v37 = vld [vmem:[%s5546_s3] ss:$0 sm:$0xff] }
 0x630   :  { %v4044_v36 = vpop.f32.mrb[8].mxu0 }
 0x631   :  { %v4045_v38 = vpop.f32.mrb[9].mxu0 }
 0x632   :  { %v4046_v39 = vadd.f32 %v4045_v38, %v4044_v36  ;;  %v4047_v40 = vpop.f32.mrb[10].mxu0 }
 0x633   :  { %v4048_v41 = vpop.f32.mrb[11].mxu0 }
 0x634   :  { %v5188_v42 = vadd.f32 %v4046_v39, %v3910_v37  ;;  %v4049_v43 = vadd.f32 %v4048_v41, %v4047_v40 }
 0x636   :  { %v5190_v45 = vadd.f32 %v4049_v43, %v3910_v37 }
 0x637   :  { %4701 = dma.done.wait [#allocation8], 2048 }
 0x638   :  { %4702 = vsyncadd [#allocation8], 4294965248  ;;  %v1464_v46 = vmax.f32 %v5188_v42, 0.0  ;;  %v1465_v47 = vmax.f32 %v5190_v45, 0.0  ;;  %1520 = vmatprep.mubr.bf16.mxu1 %v4755_v55 }
 0x639   :  { %4703 = dma.done.wait [#allocation8 + $0x1], 2048 }
 0x63a   :  { %4704 = vsyncadd [#allocation8 + $0x1], 4294965248  ;;  %v1466_v48 = vadd.f32 1e-07, %v1464_v46  ;;  %v1467_v49 = vadd.f32 1e-07, %v1465_v47  ;;  %v1477_v58 = vstv %s5002_s10 }
 0x63b   :  { %v1433_v7 = vld [vmem:[#allocation2 + $0x8] sm:$0xff]  ;;  %v1432_v8 = vld [vmem:[#allocation2] sm:$0xff]  ;;  %v1435_v9 = vld [vmem:[#allocation2 + $0x18] sm:$0xff] }
 0x63c   :  { %v1468_v50 = vmax.f32 %v1466_v48, %v1467_v49  ;;  %v1434_v10 = vld [vmem:[#allocation2 + $0x10] sm:$0xff]  ;;  %v1437_v11 = vld [vmem:[#allocation2 + $0x28] sm:$0xff]  ;;  %v1436_v12 = vld [vmem:[#allocation2 + $0x20] sm:$0xff] }
 0x63d   :  { %v1439_v15 = vld [vmem:[#allocation2 + $0x38] sm:$0xff]  ;;  %v1438_v18 = vld [vmem:[#allocation2 + $0x30] sm:$0xff]  ;;  %v1441_v20 = vld [vmem:[#allocation2 + $0x48] sm:$0xff] }
 0x63e   :  { %v1469_v51 = vrot.slane %v1468_v50, 4  ;;  %v1440_v21 = vld [vmem:[#allocation2 + $0x40] sm:$0xff]  ;;  %v1443_v22 = vld [vmem:[#allocation2 + $0x58] sm:$0xff]  ;;  %v1442_v23 = vld [vmem:[#allocation2 + $0x50] sm:$0xff] }
 0x63f   :  { %v1445_v24 = vld [vmem:[#allocation2 + $0x68] sm:$0xff]  ;;  %v1444_v25 = vld [vmem:[#allocation2 + $0x60] sm:$0xff]  ;;  %v1447_v26 = vld [vmem:[#allocation2 + $0x78] sm:$0xff] }
 0x640   :  { %v1470_v52 = vmax.f32 %v1468_v50, %v1469_v51  ;;  %v1446_v27 = vld [vmem:[#allocation2 + $0x70] sm:$0xff]  ;;  %v3928_v46 = vld [vmem:[%s5543_s30 + $0x2] sm:$0x3] }
 0x641   :  { %v1550_v47 = vrot.slane %v3928_v46, %v5153_v14 }
 0x642   :  { %v1471_v53 = vrot.slane %v1470_v52, 2 }
 0x644   :  { %v1472_v54 = vmax.f32 %v1470_v52, %v1471_v53 }
 0x646   :  { %v1473_v56 = vrot.slane %v1472_v54, 1 }
 0x648   :  { %v1474_v57 = vmax.f32 %v1472_v54, %v1473_v56 }
 0x64a   :  { %v1475_v59 = vsub.f32 %v1466_v48, %v1474_v57  ;;  %v1476_v60 = vsub.f32 %v1467_v49, %v1474_v57 }
 0x64c   :  { %v1478_v61 = vmul.f32 %v1477_v58, %v1475_v59  ;;  %v1479_v62 = vmul.f32 %v1477_v58, %v1476_v60  ;;  %v1456_v60 = vld [vmem:[#allocation3 + $0x40] sm:$0xff] }
 0x64d   :  { %4050 = vmatprep.subr.bf16.mxu0 %v1456_v60 }
 0x64e   :  { %v1480_v63 = vmul.f32 1.442695, %v1478_v61  ;;  %v1482_v0 = vmul.f32 1.442695, %v1479_v62  ;;  %v1448_v61 = vld [vmem:[#allocation3] sm:$0xff] }
 0x64f   :  { %4051 = vmatpush3.bf16.msra.mxu0 %v1448_v61 }
 0x650   :  { %4346 = vpow2.f32 %v1480_v63 }
 0x651   :  { %4348 = vpow2.f32 %v1482_v0 }
 0x65a   :  { %v4347_v1 = vpop.eup %4346 }
 0x65b   :  { %v4349_v2 = vpop.eup %4348  ;;  %v1484_v3 = vmul.f32 %v4347_v1, %v1466_v48  ;;  %v1554_v48 = vrot.slane %v3928_v46, %v5159_v17 }
 0x65c   :  { %v1485_v4 = vmul.f32 %v4349_v2, %v1467_v49  ;;  %v1486_v5 = vpack.c.bf16 %v4349_v2, %v4347_v1 }
 0x65e   :  { %v1487_v6 = vpack.c.bf16 %v1485_v4, %v1484_v3 }
 0x660   :  { %1488 = vmatprep.subr.bf16.mxu1 %v1487_v6 }
 0x661   :  { %1489 = vmatpush1.bf16.msra.mxu1 %v1486_v5 }
 0x662   :  { %1557 = vmatprep.subr.bf16.mxu1 %v1433_v7 }
 0x664   :  { %3927 = vmatmul.mubr.msk.bf16.vlgmr.msra.gmra.mrb[12].mxu1 %vm1014_vm0, %v5143_v44 }
 0x665   :  { %1558 = vmatpush1.bf16.msra.mxu1 %v1432_v8  ;;  %1589 = vmatprep.mubr.bf16.mxu1 %v4755_v55 }
 0x666   :  { %1559 = vmatprep.subr.bf16.mxu1 %v1435_v9 }
 0x669   :  { %1560 = vmatpush1.bf16.msra.mxu1 %v1434_v10 }
 0x66a   :  { %1561 = vmatprep.subr.bf16.mxu1 %v1437_v11 }
 0x66d   :  { %1562 = vmatpush1.bf16.msra.mxu1 %v1436_v12  ;;  %v1457_v12 = vld [vmem:[#allocation3 + $0x48] sm:$0xff] }
 0x66e   :  { %1563 = vmatprep.subr.bf16.mxu1 %v1439_v15  ;;  %4052 = vmatprep.subr.bf16.mxu0 %v1457_v12  ;;  %v1449_v15 = vld [vmem:[#allocation3 + $0x8] sm:$0xff] }
 0x66f   :  { %4053 = vmatpush3.bf16.msra.mxu0 %v1449_v15 }
 0x671   :  { %1564 = vmatpush1.bf16.msra.mxu1 %v1438_v18  ;;  %v1458_v18 = vld [vmem:[#allocation3 + $0x50] sm:$0xff] }
 0x672   :  { %1565 = vmatprep.subr.bf16.mxu1 %v1441_v20  ;;  %4054 = vmatprep.subr.bf16.mxu0 %v1458_v18  ;;  %v1450_v20 = vld [vmem:[#allocation3 + $0x10] sm:$0xff] }
 0x673   :  { %4055 = vmatpush3.bf16.msra.mxu0 %v1450_v20 }
 0x675   :  { %1566 = vmatpush1.bf16.msra.mxu1 %v1440_v21  ;;  %v1459_v21 = vld [vmem:[#allocation3 + $0x58] sm:$0xff] }
 0x676   :  { %1567 = vmatprep.subr.bf16.mxu1 %v1443_v22  ;;  %v1451_v22 = vld [vmem:[#allocation3 + $0x18] sm:$0xff]  ;;  %4056 = vmatprep.subr.bf16.mxu0 %v1459_v21 }
 0x677   :  { %4057 = vmatpush3.bf16.msra.mxu0 %v1451_v22 }
 0x679   :  { %1568 = vmatpush1.bf16.msra.mxu1 %v1442_v23  ;;  %v1460_v23 = vld [vmem:[#allocation3 + $0x60] sm:$0xff] }
 0x67a   :  { %1569 = vmatprep.subr.bf16.mxu1 %v1445_v24  ;;  %4058 = vmatprep.subr.bf16.mxu0 %v1460_v23  ;;  %v1452_v24 = vld [vmem:[#allocation3 + $0x20] sm:$0xff] }
 0x67b   :  { %4059 = vmatpush3.bf16.msra.mxu0 %v1452_v24 }
 0x67d   :  { %1570 = vmatpush1.bf16.msra.mxu1 %v1444_v25  ;;  %v1461_v25 = vld [vmem:[#allocation3 + $0x68] sm:$0xff] }
 0x67e   :  { %1571 = vmatprep.subr.bf16.mxu1 %v1447_v26  ;;  %4060 = vmatprep.subr.bf16.mxu0 %v1461_v25  ;;  %v1453_v26 = vld [vmem:[#allocation3 + $0x28] sm:$0xff] }
 0x67f   :  { %4061 = vmatpush3.bf16.msra.mxu0 %v1453_v26 }
 0x681   :  { %1572 = vmatpush1.bf16.msra.mxu1 %v1446_v27  ;;  %v1462_v27 = vld [vmem:[#allocation3 + $0x70] sm:$0xff] }
 0x682   :  { %4062 = vmatprep.subr.bf16.mxu0 %v1462_v27 }
 0x737   :  { %v1522_v28 = vpop.f32.mrb[12].mxu1 }
 0x738   :  { %vm1531_vm3 = vcmp.gt.f32.partialorder %v1522_v28, 0.0  ;;  %v1524_v29 = vpop.f32.mrb[13].mxu1 }
 0x739   :  { %v1533_v30 = vsel %vm1531_vm3, %v1522_v28, 1.0  ;;  %v1526_v31 = vpop.f32.mrb[14].mxu1  ;;  %v1454_v28 = vld [vmem:[#allocation3 + $0x30] sm:$0xff] }
 0x73a   :  { %4350 = vrcp.f32 %v1533_v30  ;;  %vm1532_vm4 = vcmp.gt.f32.partialorder %v1526_v31, 0.0  ;;  %v1528_v32 = vpop.f32.mrb[15].mxu1  ;;  %4063 = vmatpush3.bf16.msra.mxu0 %v1454_v28  ;;  %v1455_v30 = vld [vmem:[#allocation3 + $0x38] sm:$0xff] }
 0x73b   :  { %v1534_v33 = vsel %vm1532_vm4, %v1526_v31, 1.0 }
 0x73c   :  { %4352 = vrcp.f32 %v1534_v33 }
 0x744   :  { %v4351_v34 = vpop.eup %4350 }
 0x745   :  { %v1536_v35 = vmul.f32 %v4351_v34, %v1524_v29  ;;  %v1463_v29 = vld [vmem:[#allocation3 + $0x78] sm:$0xff] }
 0x746   :  { %v4353_v36 = vpop.eup %4352  ;;  %4064 = vmatprep.subr.bf16.mxu0 %v1463_v29 }
 0x747   :  { %v1539_v37 = vsel %vm1531_vm3, %v1536_v35, 0.0  ;;  %v1538_v38 = vmul.f32 %v4353_v36, %v1528_v32  ;;  %4065 = vmatpush3.bf16.msra.mxu0 %v1455_v30 }
 0x748   :  { %v1541_v40 = vadd.f32 %v1539_v37, %v5188_v42  ;;  %v3929_v37 = vld [vmem:[%s5544_s0 + $0x2] sm:$0x3] }
 0x749   :  { %v1540_v39 = vsel %vm1532_vm4, %v1538_v38, 0.0  ;;  %v1640_v38 = vrot.slane %v3929_v37, %v5153_v14 }
 0x74a   :  { %v1542_v41 = vadd.f32 %v1540_v39, %v5190_v45  ;;  %v1644_v39 = vrot.slane %v3929_v37, %v5159_v17 }
 0x74c   :  { %v1543_v43 = vpack.c.bf16 %v1542_v41, %v1541_v40  ;;  %v3930_v41 = vld [vmem:[%s5545_s8 + $0x2] sm:$0x3] }
 0x74e   :  { %1590 = vmatmul.mubr.bf16.vlgmr.msra.gmra.mrb[16].mxu1 %v1543_v43 }
 0x821   :  { %v1591_v49 = vpop.f32.mrb[16].mxu1 }
 0x822   :  { %v1592_v50 = vadd.f32 %v1591_v49, %v1550_v47  ;;  %v1593_v51 = vpop.f32.mrb[17].mxu1  ;;  %v1659_v49 = vrot.slane %v3930_v41, %v5159_v17 }
 0x823   :  { %v1594_v52 = vadd.f32 %v1593_v51, %v1554_v48  ;;  %v1595_v53 = vpop.f32.mrb[18].mxu1 }
 0x824   :  { %v1597_v54 = vpop.f32.mrb[19].mxu1  ;;  %v1596_v56 = vadd.f32 %v1595_v53, %v1550_v47 }
 0x825   :  { %v1598_v57 = vadd.f32 %v1597_v54, %v1554_v48  ;;  %v1604_v58 = vadd.f32 %v1594_v52, %v1592_v50  ;;  %v1655_v48 = vrot.slane %v3930_v41, %v5153_v14 }
 0x827   :  { %1605 = vadd.xlane.f32.xlu0 %v1604_v58  ;;  %v1607_v59 = vadd.f32 %v1598_v57, %v1596_v56 }
 0x82b   :  { %1608 = vadd.xlane.f32.xlu0 %v1607_v59 }
 0x8b4   :  { %v1606_v62 = vpop.xlane.xlu0 %1605 }
 0x8b5   :  { %v1610_v63 = vmul.f32 0.00390625, %v1606_v62 }
 0x8b7   :  { %v1612_v0 = vsub.f32 %v1592_v50, %v1610_v63  ;;  %v1613_v1 = vsub.f32 %v1594_v52, %v1610_v63 }
 0x8b8   :  { %v1609_v2 = vpop.xlane.xlu0 %1608 }
 0x8b9   :  { %v1611_v3 = vmul.f32 0.00390625, %v1609_v2  ;;  %v1616_v4 = vmul.f32 %v1612_v0, %v1612_v0  ;;  %v1617_v5 = vmul.f32 %v1613_v1, %v1613_v1 }
 0x8bb   :  { %v1614_v6 = vsub.f32 %v1596_v56, %v1611_v3  ;;  %v1615_v7 = vsub.f32 %v1598_v57, %v1611_v3  ;;  %v1620_v8 = vadd.f32 %v1617_v5, %v1616_v4  ;;  %v3932_v5 = vld [vmem:[%s5546_s3 + $0x1] ss:$0 sm:$0xff] }
 0x8bd   :  { %1621 = vadd.xlane.f32.xlu1 %v1620_v8  ;;  %v1618_v9 = vmul.f32 %v1614_v6, %v1614_v6  ;;  %v1619_v10 = vmul.f32 %v1615_v7, %v1615_v7 }
 0x8bf   :  { %v1623_v11 = vadd.f32 %v1619_v10, %v1618_v9 }
 0x8c1   :  { %1624 = vadd.xlane.f32.xlu1 %v1623_v11 }
 0x94a   :  { %v1622_v31 = vpop.xlane.xlu1 %1621 }
 0x94b   :  { %v1626_v32 = vmul.f32 0.00390625, %v1622_v31 }
 0x94d   :  { %v1628_v33 = vadd.f32 1e-05, %v1626_v32  ;;  %v3933_v32 = vld [vmem:[%s5473_s11] ss:$0 sm:$0xff] }
 0x94e   :  { %v1625_v34 = vpop.xlane.xlu1 %1624 }
 0x94f   :  { %4354 = vrsqrt.f32 %v1628_v33  ;;  %v1627_v35 = vmul.f32 0.00390625, %v1625_v34 }
 0x951   :  { %v1629_v36 = vadd.f32 1e-05, %v1627_v35  ;;  %v3934_v35 = vld [vmem:[%s5474_s12] ss:$0 sm:$0xff] }
 0x953   :  { %4356 = vrsqrt.f32 %v1629_v36 }
 0x959   :  { %v4355_v40 = vpop.eup %4354 }
 0x95a   :  { %v1633_v43 = vmul.f32 %v4355_v40, %v1613_v1  ;;  %v1632_v46 = vmul.f32 %v4355_v40, %v1612_v0 }
 0x95c   :  { %v1648_v47 = vmul.f32 %v1644_v39, %v1633_v43  ;;  %v1647_v50 = vmul.f32 %v1640_v38, %v1632_v46 }
 0x95d   :  { %v4357_v51 = vpop.eup %4356 }
 0x95e   :  { %v1635_v52 = vmul.f32 %v4357_v51, %v1615_v7  ;;  %v1634_v53 = vmul.f32 %v4357_v51, %v1614_v6  ;;  %v1663_v56 = vadd.f32 %v1659_v49, %v1648_v47  ;;  %v1662_v58 = vadd.f32 %v1655_v48, %v1647_v50 }
 0x960   :  { %v1650_v54 = vmul.f32 %v1644_v39, %v1635_v52  ;;  %v1649_v57 = vmul.f32 %v1640_v38, %v1634_v53  ;;  %v1667_v61 = vmax.f32 %v1663_v56, 0.0  ;;  %v1666_v63 = vmax.f32 %v1662_v58, 0.0 }
 0x962   :  { %v1665_v59 = vadd.f32 %v1659_v49, %v1650_v54  ;;  %v1664_v60 = vadd.f32 %v1655_v48, %v1649_v57 }
 0x964   :  { %v1669_v62 = vmax.f32 %v1665_v59, 0.0  ;;  %v1668_v1 = vmax.f32 %v1664_v60, 0.0 }
 0x966   :  { %v1671_v0 = vpack.c.bf16 %v1669_v62, %v1667_v61  ;;  %v1670_v2 = vpack.c.bf16 %v1668_v1, %v1666_v63 }
 0x968   :  { %1712 = vmatprep.mubr.bf16.mxu0 %v1671_v0 }
 0x969   :  { %1713 = vmatmul.mubr.bf16.vlgmr.msra.gmra.mrb[12].mxu0 %v1670_v2 }
 0xa3c   :  { %v4066_v3 = vpop.f32.mrb[12].mxu0 }
 0xa3d   :  { %v4067_v4 = vpop.f32.mrb[13].mxu0 }
 0xa3e   :  { %v4068_v6 = vadd.f32 %v4067_v4, %v4066_v3  ;;  %v4069_v7 = vpop.f32.mrb[14].mxu0 }
 0xa3f   :  { %v4070_v8 = vpop.f32.mrb[15].mxu0 }
 0xa40   :  { %v4071_v9 = vadd.f32 %v4070_v8, %v4069_v7  ;;  %v1715_v10 = vadd.f32 %v4068_v6, %v3932_v5 }
 0xa42   :  { %1723 = vadd.xlane.f32.xlu0 %v1715_v10  ;;  %v1718_v11 = vadd.f32 %v4071_v9, %v3932_v5 }
 0xa44   :  { %1725 = vadd.xlane.f32.xlu1 %v1718_v11 }
 0xacf   :  { %v1724_v12 = vpop.xlane.xlu0 %1723 }
 0xad0   :  { %v1728_v15 = vmul.f32 0.0078125, %v1724_v12 }
 0xad1   :  { %v1726_v18 = vpop.xlane.xlu1 %1725 }
 0xad2   :  { %v1730_v20 = vsub.f32 %v1715_v10, %v1728_v15  ;;  %v1729_v21 = vmul.f32 0.0078125, %v1726_v18 }
 0xad4   :  { %v1731_v22 = vsub.f32 %v1718_v11, %v1729_v21  ;;  %v1732_v23 = vmul.f32 %v1730_v20, %v1730_v20 }
 0xad6   :  { %1734 = vadd.xlane.f32.xlu0 %v1732_v23  ;;  %v1733_v24 = vmul.f32 %v1731_v22, %v1731_v22 }
 0xad8   :  { %1736 = vadd.xlane.f32.xlu1 %v1733_v24 }
 0xb63   :  { %v1735_v25 = vpop.xlane.xlu0 %1734 }
 0xb64   :  { %v1738_v26 = vmul.f32 0.0078125, %v1735_v25 }
 0xb65   :  { %v1737_v27 = vpop.xlane.xlu1 %1736 }
 0xb66   :  { %v1740_v28 = vadd.f32 1e-05, %v1738_v26  ;;  %v1739_v29 = vmul.f32 0.0078125, %v1737_v27 }
 0xb68   :  { %4358 = vrsqrt.f32 %v1740_v28  ;;  %v1741_v30 = vadd.f32 1e-05, %v1739_v29 }
 0xb6a   :  { %4360 = vrsqrt.f32 %v1741_v30 }
 0xb72   :  { %v4359_v31 = vpop.eup %4358 }
 0xb73   :  { %v1744_v33 = vmul.f32 %v4359_v31, %v1730_v20 }
 0xb74   :  { %v4361_v34 = vpop.eup %4360 }
 0xb75   :  { %v1752_v36 = vmul.f32 %v3933_v32, %v1744_v33  ;;  %v1745_v37 = vmul.f32 %v4361_v34, %v1731_v22 }
 0xb77   :  { %v1760_v38 = vadd.f32 %v3934_v35, %v1752_v36  ;;  %v1753_v39 = vmul.f32 %v3933_v32, %v1745_v37 }
 0xb79   :  { %v1762_v40 = vmax.f32 %v1760_v38, 0.0  ;;  %v1761_v41 = vadd.f32 %v3934_v35, %v1753_v39 }
 0xb7b   :  { %v5226_v43 = vadd.f32 %v1762_v40, %v5188_v42  ;;  %v1763_v46 = vmax.f32 %v1761_v41, 0.0 }
 0xb7d   :  { %v5229_v47 = vadd.f32 %v1763_v46, %v5190_v45 }
 0xb7e   :  { %4705 = dma.done.wait [#allocation8 + $0x2], 2048 }
 0xb7f   :  { %4706 = vsyncadd [#allocation8 + $0x2], 4294965248  ;;  %v1802_v48 = vmax.f32 %v5226_v43, 0.0  ;;  %v1803_v49 = vmax.f32 %v5229_v47, 0.0  ;;  %1858 = vmatprep.mubr.bf16.mxu1 %v4755_v55 }
 0xb80   :  { %4707 = dma.done.wait [#allocation8 + $0x3], 2048 }
 0xb81   :  { %4708 = vsyncadd [#allocation8 + $0x3], 4294965248  ;;  %v1804_v50 = vadd.f32 1e-07, %v1802_v48  ;;  %v1805_v51 = vadd.f32 1e-07, %v1803_v49  ;;  %v1815_v60 = vstv %s5004_s16 }
 0xb82   :  { %v1771_v9 = vld [vmem:[#allocation2 + $0x88] sm:$0xff]  ;;  %v1770_v10 = vld [vmem:[#allocation2 + $0x80] sm:$0xff]  ;;  %v1773_v11 = vld [vmem:[#allocation2 + $0x98] sm:$0xff] }
 0xb83   :  { %v1806_v52 = vmax.f32 %v1804_v50, %v1805_v51  ;;  %v1772_v12 = vld [vmem:[#allocation2 + $0x90] sm:$0xff]  ;;  %v1775_v15 = vld [vmem:[#allocation2 + $0xa8] sm:$0xff]  ;;  %v1774_v18 = vld [vmem:[#allocation2 + $0xa0] sm:$0xff] }
 0xb84   :  { %v1777_v20 = vld [vmem:[#allocation2 + $0xb8] sm:$0xff]  ;;  %v1776_v21 = vld [vmem:[#allocation2 + $0xb0] sm:$0xff]  ;;  %v1779_v22 = vld [vmem:[#allocation2 + $0xc8] sm:$0xff] }
 0xb85   :  { %v1807_v53 = vrot.slane %v1806_v52, 4  ;;  %v1778_v23 = vld [vmem:[#allocation2 + $0xc0] sm:$0xff]  ;;  %v1781_v24 = vld [vmem:[#allocation2 + $0xd8] sm:$0xff]  ;;  %v1783_v25 = vld [vmem:[#allocation2 + $0xe8] sm:$0xff] }
 0xb86   :  { %v1782_v26 = vld [vmem:[#allocation2 + $0xe0] sm:$0xff]  ;;  %v1785_v27 = vld [vmem:[#allocation2 + $0xf8] sm:$0xff]  ;;  %v1784_v28 = vld [vmem:[#allocation2 + $0xf0] sm:$0xff] }
 0xb87   :  { %v1808_v54 = vmax.f32 %v1806_v52, %v1807_v53  ;;  %v3936_v49 = vld [vmem:[%s5543_s30 + $0x4] sm:$0x3] }
 0xb89   :  { %v1809_v56 = vrot.slane %v1808_v54, 2 }
 0xb8b   :  { %v1810_v57 = vmax.f32 %v1808_v54, %v1809_v56 }
 0xb8d   :  { %v1811_v58 = vrot.slane %v1810_v57, 1 }
 0xb8f   :  { %v1812_v59 = vmax.f32 %v1810_v57, %v1811_v58 }
 0xb91   :  { %v1813_v61 = vsub.f32 %v1804_v50, %v1812_v59  ;;  %v1814_v62 = vsub.f32 %v1805_v51, %v1812_v59 }
 0xb93   :  { %v1816_v63 = vmul.f32 %v1815_v60, %v1813_v61  ;;  %v1817_v1 = vmul.f32 %v1815_v60, %v1814_v62 }
 0xb95   :  { %v1818_v0 = vmul.f32 1.442695, %v1816_v63  ;;  %v1820_v2 = vmul.f32 1.442695, %v1817_v1  ;;  %v1794_v63 = vld [vmem:[#allocation3 + $0xc0] sm:$0xff] }
 0xb96   :  { %v1786_v1 = vld [vmem:[#allocation3 + $0x80] sm:$0xff]  ;;  %4072 = vmatprep.subr.bf16.mxu0 %v1794_v63 }
 0xb97   :  { %4362 = vpow2.f32 %v1818_v0  ;;  %4073 = vmatpush3.bf16.msra.mxu0 %v1786_v1 }
 0xb98   :  { %4364 = vpow2.f32 %v1820_v2 }
 0xba1   :  { %v4363_v3 = vpop.eup %4362 }
 0xba2   :  { %v4365_v4 = vpop.eup %4364  ;;  %v1822_v5 = vmul.f32 %v4363_v3, %v1804_v50  ;;  %v1888_v50 = vrot.slane %v3936_v49, %v5153_v14 }
 0xba3   :  { %v1823_v6 = vmul.f32 %v4365_v4, %v1805_v51  ;;  %v1824_v7 = vpack.c.bf16 %v4365_v4, %v4363_v3  ;;  %v1892_v51 = vrot.slane %v3936_v49, %v5159_v17 }
 0xba5   :  { %v1825_v8 = vpack.c.bf16 %v1823_v6, %v1822_v5 }
 0xba7   :  { %1826 = vmatprep.subr.bf16.mxu1 %v1825_v8 }
 0xba8   :  { %1827 = vmatpush1.bf16.msra.mxu1 %v1824_v7 }
 0xba9   :  { %1895 = vmatprep.subr.bf16.mxu1 %v1771_v9 }
 0xbab   :  { %3935 = vmatmul.mubr.msk.bf16.vlgmr.msra.gmra.mrb[20].mxu1 %vm1014_vm0, %v5143_v44  ;;  %v1780_v44 = vld [vmem:[#allocation2 + $0xd0] sm:$0xff] }
 0xbac   :  { %1896 = vmatpush1.bf16.msra.mxu1 %v1770_v10  ;;  %1927 = vmatprep.mubr.bf16.mxu1 %v4755_v55 }
 0xbad   :  { %1897 = vmatprep.subr.bf16.mxu1 %v1773_v11 }
 0xbb0   :  { %1898 = vmatpush1.bf16.msra.mxu1 %v1772_v12 }
 0xbb1   :  { %1899 = vmatprep.subr.bf16.mxu1 %v1775_v15 }
 0xbb4   :  { %1900 = vmatpush1.bf16.msra.mxu1 %v1774_v18 }
 0xbb5   :  { %1901 = vmatprep.subr.bf16.mxu1 %v1777_v20  ;;  %v1795_v20 = vld [vmem:[#allocation3 + $0xc8] sm:$0xff] }
 0xbb6   :  { %4074 = vmatprep.subr.bf16.mxu0 %v1795_v20 }
 0xbb8   :  { %1902 = vmatpush1.bf16.msra.mxu1 %v1776_v21  ;;  %v1787_v21 = vld [vmem:[#allocation3 + $0x88] sm:$0xff] }
 0xbb9   :  { %1903 = vmatprep.subr.bf16.mxu1 %v1779_v22  ;;  %4075 = vmatpush3.bf16.msra.mxu0 %v1787_v21  ;;  %v1796_v22 = vld [vmem:[#allocation3 + $0xd0] sm:$0xff] }
 0xbba   :  { %4076 = vmatprep.subr.bf16.mxu0 %v1796_v22 }
 0xbbc   :  { %1904 = vmatpush1.bf16.msra.mxu1 %v1778_v23  ;;  %v1788_v23 = vld [vmem:[#allocation3 + $0x90] sm:$0xff] }
 0xbbd   :  { %1905 = vmatprep.subr.bf16.mxu1 %v1781_v24  ;;  %4077 = vmatpush3.bf16.msra.mxu0 %v1788_v23  ;;  %v1797_v24 = vld [vmem:[#allocation3 + $0xd8] sm:$0xff] }
 0xbbe   :  { %4078 = vmatprep.subr.bf16.mxu0 %v1797_v24 }
 0xbc0   :  { %1906 = vmatpush1.bf16.msra.mxu1 %v1780_v44  ;;  %v1789_v44 = vld [vmem:[#allocation3 + $0x98] sm:$0xff] }
 0xbc1   :  { %1907 = vmatprep.subr.bf16.mxu1 %v1783_v25  ;;  %v1798_v25 = vld [vmem:[#allocation3 + $0xe0] sm:$0xff]  ;;  %4079 = vmatpush3.bf16.msra.mxu0 %v1789_v44 }
 0xbc2   :  { %4080 = vmatprep.subr.bf16.mxu0 %v1798_v25 }
 0xbc4   :  { %1908 = vmatpush1.bf16.msra.mxu1 %v1782_v26  ;;  %v1790_v26 = vld [vmem:[#allocation3 + $0xa0] sm:$0xff] }
 0xbc5   :  { %1909 = vmatprep.subr.bf16.mxu1 %v1785_v27  ;;  %v1799_v27 = vld [vmem:[#allocation3 + $0xe8] sm:$0xff]  ;;  %4081 = vmatpush3.bf16.msra.mxu0 %v1790_v26 }
 0xbc6   :  { %4082 = vmatprep.subr.bf16.mxu0 %v1799_v27 }
 0xbc8   :  { %1910 = vmatpush1.bf16.msra.mxu1 %v1784_v28  ;;  %v1791_v28 = vld [vmem:[#allocation3 + $0xa8] sm:$0xff] }
 0xbc9   :  { %4083 = vmatpush3.bf16.msra.mxu0 %v1791_v28  ;;  %v5260_v28 = vpack.c.bf16 %v5139_v19, %v5136_v16  ;;  %v3943_v16 = vld [vmem:[%s5473_s11 + $0x1] ss:$0 sm:$0xff] }
 0xc7e   :  { %v1860_v29 = vpop.f32.mrb[20].mxu1 }
 0xc7f   :  { %vm1869_vm5 = vcmp.gt.f32.partialorder %v1860_v29, 0.0  ;;  %v1862_v30 = vpop.f32.mrb[21].mxu1 }
 0xc80   :  { %v1871_v31 = vsel %vm1869_vm5, %v1860_v29, 1.0  ;;  %v1864_v32 = vpop.f32.mrb[22].mxu1  ;;  %v1800_v29 = vld [vmem:[#allocation3 + $0xf0] sm:$0xff] }
 0xc81   :  { %4366 = vrcp.f32 %v1871_v31  ;;  %vm1870_vm6 = vcmp.gt.f32.partialorder %v1864_v32, 0.0  ;;  %v1866_v33 = vpop.f32.mrb[23].mxu1  ;;  %4084 = vmatprep.subr.bf16.mxu0 %v1800_v29  ;;  %v1801_v31 = vld [vmem:[#allocation3 + $0xf8] sm:$0xff]  ;;  %v2106_v29 = vpack.c.bf16 %v5190_v45, %v5188_v42  ;;  %v3944_v42 = vld [vmem:[%s5474_s12 + $0x1] ss:$0 sm:$0xff] }
 0xc82   :  { %v1872_v34 = vsel %vm1870_vm6, %v1864_v32, 1.0  ;;  %v1793_v32 = vld [vmem:[#allocation3 + $0xb8] sm:$0xff] }
 0xc83   :  { %4368 = vrcp.f32 %v1872_v34 }
 0xc8b   :  { %v4367_v35 = vpop.eup %4366 }
 0xc8c   :  { %v1874_v36 = vmul.f32 %v4367_v35, %v1862_v30  ;;  %v1792_v30 = vld [vmem:[#allocation3 + $0xb0] sm:$0xff] }
 0xc8d   :  { %v4369_v37 = vpop.eup %4368  ;;  %4085 = vmatpush3.bf16.msra.mxu0 %v1792_v30  ;;  %v5266_v30 = vpack.c.bf16 %v5229_v47, %v5226_v43 }
 0xc8e   :  { %v1877_v38 = vsel %vm1869_vm5, %v1874_v36, 0.0  ;;  %v1876_v39 = vmul.f32 %v4369_v37, %v1866_v33  ;;  %4086 = vmatprep.subr.bf16.mxu0 %v1801_v31 }
 0xc8f   :  { %v1879_v41 = vadd.f32 %v1877_v38, %v5226_v43 }
 0xc90   :  { %v1878_v40 = vsel %vm1870_vm6, %v1876_v39, 0.0  ;;  %v3937_v39 = vld [vmem:[%s5544_s0 + $0x4] sm:$0x3] }
 0xc91   :  { %v1880_v46 = vadd.f32 %v1878_v40, %v5229_v47  ;;  %4087 = vmatpush3.bf16.msra.mxu0 %v1793_v32  ;;  %v1978_v40 = vrot.slane %v3937_v39, %v5153_v14 }
 0xc93   :  { %v1881_v48 = vpack.c.bf16 %v1880_v46, %v1879_v41  ;;  %v1982_v41 = vrot.slane %v3937_v39, %v5159_v17 }
 0xc95   :  { %1928 = vmatmul.mubr.bf16.vlgmr.msra.gmra.mrb[24].mxu1 %v1881_v48  ;;  %v3938_v48 = vld [vmem:[%s5545_s8 + $0x4] sm:$0x3] }
 0xd68   :  { %v1929_v52 = vpop.f32.mrb[24].mxu1 }
 0xd69   :  { %v1930_v53 = vadd.f32 %v1929_v52, %v1888_v50  ;;  %v1931_v54 = vpop.f32.mrb[25].mxu1  ;;  %v1993_v52 = vrot.slane %v3938_v48, %v5153_v14 }
 0xd6a   :  { %v1932_v56 = vadd.f32 %v1931_v54, %v1892_v51  ;;  %v1933_v57 = vpop.f32.mrb[26].mxu1 }
 0xd6b   :  { %v1935_v58 = vpop.f32.mrb[27].mxu1  ;;  %v1934_v59 = vadd.f32 %v1933_v57, %v1888_v50 }
 0xd6c   :  { %v1936_v60 = vadd.f32 %v1935_v58, %v1892_v51  ;;  %v1942_v61 = vadd.f32 %v1932_v56, %v1930_v53 }
 0xd6e   :  { %1943 = vadd.xlane.f32.xlu0 %v1942_v61  ;;  %v1945_v62 = vadd.f32 %v1936_v60, %v1934_v59 }
 0xd72   :  { %1946 = vadd.xlane.f32.xlu0 %v1945_v62 }
 0xdfb   :  { %v1944_v0 = vpop.xlane.xlu0 %1943 }
 0xdfc   :  { %v1948_v2 = vmul.f32 0.00390625, %v1944_v0 }
 0xdfe   :  { %v1950_v3 = vsub.f32 %v1930_v53, %v1948_v2  ;;  %v1951_v4 = vsub.f32 %v1932_v56, %v1948_v2  ;;  %v1997_v53 = vrot.slane %v3938_v48, %v5159_v17 }
 0xdff   :  { %v1947_v5 = vpop.xlane.xlu0 %1946 }
 0xe00   :  { %v1949_v6 = vmul.f32 0.00390625, %v1947_v5  ;;  %v1954_v7 = vmul.f32 %v1950_v3, %v1950_v3  ;;  %v1955_v8 = vmul.f32 %v1951_v4, %v1951_v4 }
 0xe02   :  { %v1952_v9 = vsub.f32 %v1934_v59, %v1949_v6  ;;  %v1953_v10 = vsub.f32 %v1936_v60, %v1949_v6  ;;  %v1958_v11 = vadd.f32 %v1955_v8, %v1954_v7 }
 0xe04   :  { %1959 = vadd.xlane.f32.xlu1 %v1958_v11  ;;  %v1956_v12 = vmul.f32 %v1952_v9, %v1952_v9  ;;  %v1957_v15 = vmul.f32 %v1953_v10, %v1953_v10 }
 0xe06   :  { %v1961_v18 = vadd.f32 %v1957_v15, %v1956_v12 }
 0xe08   :  { %1962 = vadd.xlane.f32.xlu1 %v1961_v18 }
 0xe91   :  { %v1960_v33 = vpop.xlane.xlu1 %1959 }
 0xe92   :  { %v1964_v34 = vmul.f32 0.00390625, %v1960_v33 }
 0xe94   :  { %v1966_v35 = vadd.f32 1e-05, %v1964_v34 }
 0xe95   :  { %v1963_v36 = vpop.xlane.xlu1 %1962 }
 0xe96   :  { %4370 = vrsqrt.f32 %v1966_v35  ;;  %v1965_v37 = vmul.f32 0.00390625, %v1963_v36 }
 0xe98   :  { %v1967_v38 = vadd.f32 1e-05, %v1965_v37 }
 0xe9a   :  { %4372 = vrsqrt.f32 %v1967_v38 }
 0xea0   :  { %v4371_v46 = vpop.eup %4370 }
 0xea1   :  { %v1971_v49 = vmul.f32 %v4371_v46, %v1951_v4  ;;  %v1970_v50 = vmul.f32 %v4371_v46, %v1950_v3 }
 0xea3   :  { %v1986_v51 = vmul.f32 %v1982_v41, %v1971_v49  ;;  %v1985_v54 = vmul.f32 %v1978_v40, %v1970_v50 }
 0xea4   :  { %v4373_v56 = vpop.eup %4372 }
 0xea5   :  { %v1973_v57 = vmul.f32 %v4373_v56, %v1953_v10  ;;  %v1972_v58 = vmul.f32 %v4373_v56, %v1952_v9  ;;  %v2001_v60 = vadd.f32 %v1997_v53, %v1986_v51  ;;  %v2000_v62 = vadd.f32 %v1993_v52, %v1985_v54  ;;  %v3940_v9 = vld [vmem:[%s5546_s3 + $0x2] ss:$0 sm:$0xff] }
 0xea7   :  { %v1988_v59 = vmul.f32 %v1982_v41, %v1973_v57  ;;  %v1987_v61 = vmul.f32 %v1978_v40, %v1972_v58  ;;  %v2005_v0 = vmax.f32 %v2001_v60, 0.0  ;;  %v2004_v5 = vmax.f32 %v2000_v62, 0.0 }
 0xea9   :  { %v2003_v63 = vadd.f32 %v1997_v53, %v1988_v59  ;;  %v2002_v1 = vadd.f32 %v1993_v52, %v1987_v61 }
 0xeab   :  { %v2007_v2 = vmax.f32 %v2003_v63, 0.0  ;;  %v2006_v4 = vmax.f32 %v2002_v1, 0.0 }
 0xead   :  { %v2009_v3 = vpack.c.bf16 %v2007_v2, %v2005_v0  ;;  %v2008_v6 = vpack.c.bf16 %v2006_v4, %v2004_v5 }
 0xeaf   :  { %2050 = vmatprep.mubr.bf16.mxu0 %v2009_v3 }
 0xeb0   :  { %2051 = vmatmul.mubr.bf16.vlgmr.msra.gmra.mrb[16].mxu0 %v2008_v6 }
 0xf83   :  { %v4088_v7 = vpop.f32.mrb[16].mxu0 }
 0xf84   :  { %v4089_v8 = vpop.f32.mrb[17].mxu0 }
 0xf85   :  { %v4090_v10 = vadd.f32 %v4089_v8, %v4088_v7  ;;  %v4091_v11 = vpop.f32.mrb[18].mxu0 }
 0xf86   :  { %v4092_v12 = vpop.f32.mrb[19].mxu0 }
 0xf87   :  { %v4093_v15 = vadd.f32 %v4092_v12, %v4091_v11  ;;  %v2053_v18 = vadd.f32 %v4090_v10, %v3940_v9 }
 0xf89   :  { %2063 = vadd.xlane.f32.xlu0 %v2053_v18  ;;  %v2056_v20 = vadd.f32 %v4093_v15, %v3940_v9 }
 0xf8b   :  { %2065 = vadd.xlane.f32.xlu1 %v2056_v20 }
0x1016   :  { %v2064_v21 = vpop.xlane.xlu0 %2063 }
0x1017   :  { %v2067_v22 = vmul.f32 0.0078125, %v2064_v21 }
0x1018   :  { %v2066_v23 = vpop.xlane.xlu1 %2065 }
0x1019   :  { %v2069_v24 = vsub.f32 %v2053_v18, %v2067_v22  ;;  %v2068_v44 = vmul.f32 0.0078125, %v2066_v23 }
0x101b   :  { %v2070_v25 = vsub.f32 %v2056_v20, %v2068_v44  ;;  %v2071_v26 = vmul.f32 %v2069_v24, %v2069_v24 }
0x101d   :  { %2073 = vadd.xlane.f32.xlu0 %v2071_v26  ;;  %v2072_v27 = vmul.f32 %v2070_v25, %v2070_v25 }
0x101f   :  { %2075 = vadd.xlane.f32.xlu1 %v2072_v27 }
0x10aa   :  { %v2074_v31 = vpop.xlane.xlu0 %2073 }
0x10ab   :  { %v2077_v32 = vmul.f32 0.0078125, %v2074_v31 }
0x10ac   :  { %v2076_v33 = vpop.xlane.xlu1 %2075 }
0x10ad   :  { %v2079_v34 = vadd.f32 1e-05, %v2077_v32  ;;  %v2078_v35 = vmul.f32 0.0078125, %v2076_v33 }
0x10af   :  { %4374 = vrsqrt.f32 %v2079_v34  ;;  %v2080_v36 = vadd.f32 1e-05, %v2078_v35 }
0x10b1   :  { %4376 = vrsqrt.f32 %v2080_v36 }
0x10b9   :  { %v4375_v37 = vpop.eup %4374 }
0x10ba   :  { %v2083_v19 = vmul.f32 %v4375_v37, %v2069_v24 }
0x10bb   :  { %v4377_v38 = vpop.eup %4376 }
0x10bc   :  { %v2091_v45 = vmul.f32 %v3943_v16, %v2083_v19  ;;  %v2084_v39 = vmul.f32 %v4377_v38, %v2070_v25 }
0x10be   :  { %v2099_v40 = vadd.f32 %v3944_v42, %v2091_v45  ;;  %v2092_v41 = vmul.f32 %v3943_v16, %v2084_v39 }
0x10c0   :  { %v2101_v46 = vmax.f32 %v2099_v40, 0.0  ;;  %v2100_v48 = vadd.f32 %v3944_v42, %v2092_v41 }
0x10c2   :  { %v2102_v49 = vmax.f32 %v2100_v48, 0.0  ;;  %v2103_v50 = vadd.f32 %v2101_v46, %v5226_v43 }
0x10c4   :  { %v2104_v51 = vadd.f32 %v2102_v49, %v5229_v47 }
0x10c6   :  { %v5276_v52 = vpack.c.bf16 %v2104_v51, %v2103_v50 }
0x10c7   :  { %4709 = dma.done.wait [#allocation9], 16384 }
0x10c8   :  { %4710 = vsyncadd [#allocation9], 4294950912  ;;  %2295 = vmatprep.mubr.bf16.mxu1 %v2106_v29  ;;  %2381 = vmatprep.mubr.bf16.mxu0 %v2106_v29  ;;  %v2114_v53 = vld [vmem:[#allocation4 + $0x8] sm:$0xff]  ;;  %v2116_v54 = vld [vmem:[#allocation4 + $0x18] sm:$0xff] }
0x10c9   :  { %v2113_v56 = vld [vmem:[#allocation4] sm:$0xff]  ;;  %2263 = vmatprep.subr.bf16.mxu1 %v2114_v53  ;;  %2349 = vmatprep.subr.bf16.mxu0 %v2116_v54  ;;  %v2115_v57 = vld [vmem:[#allocation4 + $0x10] sm:$0xff]  ;;  %v2118_v58 = vld [vmem:[#allocation4 + $0x28] sm:$0xff] }
0x10ca   :  { %v2120_v59 = vld [vmem:[#allocation4 + $0x38] sm:$0xff]  ;;  %2264 = vmatpush1.bf16.msra.mxu1 %v2113_v56  ;;  %2350 = vmatpush1.bf16.msra.mxu0 %v2115_v57  ;;  %v2117_v43 = vld [vmem:[#allocation4 + $0x20] sm:$0xff]  ;;  %v2119_v47 = vld [vmem:[#allocation4 + $0x30] sm:$0xff] }
0x10cb   :  { %2265 = vmatprep.subr.bf16.mxu1 %v2118_v58  ;;  %2351 = vmatprep.subr.bf16.mxu0 %v2120_v59  ;;  %v2122_v60 = vld [vmem:[#allocation4 + $0x48] sm:$0xff]  ;;  %v2124_v61 = vld [vmem:[#allocation4 + $0x58] sm:$0xff]  ;;  %v2121_v62 = vld [vmem:[#allocation4 + $0x40] sm:$0xff] }
0x10cc   :  { %v2123_v63 = vld [vmem:[#allocation4 + $0x50] sm:$0xff]  ;;  %v2126_v1 = vld [vmem:[#allocation4 + $0x68] sm:$0xff]  ;;  %v2128_v0 = vld [vmem:[#allocation4 + $0x78] sm:$0xff] }
0x10cd   :  { %v2125_v2 = vld [vmem:[#allocation4 + $0x60] sm:$0xff]  ;;  %v2127_v5 = vld [vmem:[#allocation4 + $0x70] sm:$0xff]  ;;  %v2130_v4 = vld [vmem:[#allocation4 + $0x88] sm:$0xff] }
0x10ce   :  { %2266 = vmatpush1.bf16.msra.mxu1 %v2117_v43  ;;  %2352 = vmatpush1.bf16.msra.mxu0 %v2119_v47  ;;  %v2132_v3 = vld [vmem:[#allocation4 + $0x98] sm:$0xff]  ;;  %v2129_v6 = vld [vmem:[#allocation4 + $0x80] sm:$0xff]  ;;  %v2131_v7 = vld [vmem:[#allocation4 + $0x90] sm:$0xff] }
0x10cf   :  { %2267 = vmatprep.subr.bf16.mxu1 %v2122_v60  ;;  %2353 = vmatprep.subr.bf16.mxu0 %v2124_v61  ;;  %v2134_v8 = vld [vmem:[#allocation4 + $0xa8] sm:$0xff]  ;;  %v2136_v9 = vld [vmem:[#allocation4 + $0xb8] sm:$0xff]  ;;  %v2133_v10 = vld [vmem:[#allocation4 + $0xa0] sm:$0xff] }
0x10d0   :  { %v2135_v11 = vld [vmem:[#allocation4 + $0xb0] sm:$0xff]  ;;  %v2138_v12 = vld [vmem:[#allocation4 + $0xc8] sm:$0xff]  ;;  %v2140_v15 = vld [vmem:[#allocation4 + $0xd8] sm:$0xff] }
0x10d1   :  { %v2137_v18 = vld [vmem:[#allocation4 + $0xc0] sm:$0xff]  ;;  %v2139_v20 = vld [vmem:[#allocation4 + $0xd0] sm:$0xff]  ;;  %v2142_v21 = vld [vmem:[#allocation4 + $0xe8] sm:$0xff] }
0x10d2   :  { %2268 = vmatpush1.bf16.msra.mxu1 %v2121_v62  ;;  %2354 = vmatpush1.bf16.msra.mxu0 %v2123_v63  ;;  %v2144_v22 = vld [vmem:[#allocation4 + $0xf8] sm:$0xff]  ;;  %v2141_v23 = vld [vmem:[#allocation4 + $0xe0] sm:$0xff]  ;;  %v2143_v24 = vld [vmem:[#allocation4 + $0xf0] sm:$0xff] }
0x10d3   :  { %2269 = vmatprep.subr.bf16.mxu1 %v2126_v1  ;;  %2355 = vmatprep.subr.bf16.mxu0 %v2128_v0  ;;  %v2146_v44 = vld [vmem:[#allocation4 + $0x108] sm:$0xff]  ;;  %v2148_v25 = vld [vmem:[#allocation4 + $0x118] sm:$0xff]  ;;  %v2145_v26 = vld [vmem:[#allocation4 + $0x100] sm:$0xff] }
0x10d4   :  { %v2147_v27 = vld [vmem:[#allocation4 + $0x110] sm:$0xff]  ;;  %v2150_v29 = vld [vmem:[#allocation4 + $0x128] sm:$0xff]  ;;  %v2152_v31 = vld [vmem:[#allocation4 + $0x138] sm:$0xff] }
0x10d5   :  { %v2149_v32 = vld [vmem:[#allocation4 + $0x120] sm:$0xff]  ;;  %v2151_v33 = vld [vmem:[#allocation4 + $0x130] sm:$0xff]  ;;  %v2154_v34 = vld [vmem:[#allocation4 + $0x148] sm:$0xff] }
0x10d6   :  { %2270 = vmatpush1.bf16.msra.mxu1 %v2125_v2  ;;  %2356 = vmatpush1.bf16.msra.mxu0 %v2127_v5  ;;  %v2156_v35 = vld [vmem:[#allocation4 + $0x158] sm:$0xff]  ;;  %v2153_v36 = vld [vmem:[#allocation4 + $0x140] sm:$0xff]  ;;  %v2155_v37 = vld [vmem:[#allocation4 + $0x150] sm:$0xff] }
0x10d7   :  { %2271 = vmatprep.subr.bf16.mxu1 %v2130_v4  ;;  %2357 = vmatprep.subr.bf16.mxu0 %v2132_v3  ;;  %v2158_v16 = vld [vmem:[#allocation4 + $0x168] sm:$0xff]  ;;  %v2160_v19 = vld [vmem:[#allocation4 + $0x178] sm:$0xff]  ;;  %v2157_v38 = vld [vmem:[#allocation4 + $0x160] sm:$0xff] }
0x10d8   :  { %v2159_v42 = vld [vmem:[#allocation4 + $0x170] sm:$0xff]  ;;  %v2162_v45 = vld [vmem:[#allocation4 + $0x188] sm:$0xff]  ;;  %v2164_v39 = vld [vmem:[#allocation4 + $0x198] sm:$0xff] }
0x10d9   :  { %v2161_v40 = vld [vmem:[#allocation4 + $0x180] sm:$0xff]  ;;  %v2163_v41 = vld [vmem:[#allocation4 + $0x190] sm:$0xff]  ;;  %v2166_v46 = vld [vmem:[#allocation4 + $0x1a8] sm:$0xff] }
0x10da   :  { %2272 = vmatpush1.bf16.msra.mxu1 %v2129_v6  ;;  %2358 = vmatpush1.bf16.msra.mxu0 %v2131_v7  ;;  %v2168_v48 = vld [vmem:[#allocation4 + $0x1b8] sm:$0xff]  ;;  %v2165_v49 = vld [vmem:[#allocation4 + $0x1a0] sm:$0xff]  ;;  %v2167_v50 = vld [vmem:[#allocation4 + $0x1b0] sm:$0xff] }
0x10db   :  { %2273 = vmatprep.subr.bf16.mxu1 %v2134_v8  ;;  %2359 = vmatprep.subr.bf16.mxu0 %v2136_v9  ;;  %v2170_v51 = vld [vmem:[#allocation4 + $0x1c8] sm:$0xff]  ;;  %v2172_v53 = vld [vmem:[#allocation4 + $0x1d8] sm:$0xff]  ;;  %v2169_v54 = vld [vmem:[#allocation4 + $0x1c0] sm:$0xff] }
0x10dc   :  { %v2171_v56 = vld [vmem:[#allocation4 + $0x1d0] sm:$0xff]  ;;  %v2174_v57 = vld [vmem:[#allocation4 + $0x1e8] sm:$0xff]  ;;  %v2176_v58 = vld [vmem:[#allocation4 + $0x1f8] sm:$0xff] }
0x10dd   :  { %v2173_v59 = vld [vmem:[#allocation4 + $0x1e0] sm:$0xff]  ;;  %v2175_v43 = vld [vmem:[#allocation4 + $0x1f0] sm:$0xff]  ;;  %v2178_v47 = vld [vmem:[#allocation4 + $0x208] sm:$0xff] }
0x10de   :  { %2274 = vmatpush1.bf16.msra.mxu1 %v2133_v10  ;;  %2360 = vmatpush1.bf16.msra.mxu0 %v2135_v11  ;;  %v2180_v60 = vld [vmem:[#allocation4 + $0x218] sm:$0xff]  ;;  %v2177_v61 = vld [vmem:[#allocation4 + $0x200] sm:$0xff]  ;;  %v2179_v62 = vld [vmem:[#allocation4 + $0x210] sm:$0xff] }
0x10df   :  { %2275 = vmatprep.subr.bf16.mxu1 %v2138_v12  ;;  %2361 = vmatprep.subr.bf16.mxu0 %v2140_v15  ;;  %v2182_v63 = vld [vmem:[#allocation4 + $0x228] sm:$0xff]  ;;  %v2184_v1 = vld [vmem:[#allocation4 + $0x238] sm:$0xff]  ;;  %v2181_v0 = vld [vmem:[#allocation4 + $0x220] sm:$0xff] }
0x10e0   :  { %v2183_v2 = vld [vmem:[#allocation4 + $0x230] sm:$0xff]  ;;  %v2186_v5 = vld [vmem:[#allocation4 + $0x248] sm:$0xff]  ;;  %v2188_v4 = vld [vmem:[#allocation4 + $0x258] sm:$0xff] }
0x10e1   :  { %v2185_v3 = vld [vmem:[#allocation4 + $0x240] sm:$0xff]  ;;  %v2187_v6 = vld [vmem:[#allocation4 + $0x250] sm:$0xff]  ;;  %v2190_v7 = vld [vmem:[#allocation4 + $0x268] sm:$0xff] }
0x10e2   :  { %2276 = vmatpush1.bf16.msra.mxu1 %v2137_v18  ;;  %2362 = vmatpush1.bf16.msra.mxu0 %v2139_v20  ;;  %v2189_v8 = vld [vmem:[#allocation4 + $0x260] sm:$0xff]  ;;  %v2191_v9 = vld [vmem:[#allocation4 + $0x270] sm:$0xff]  ;;  %v2194_v10 = vld [vmem:[#allocation4 + $0x288] sm:$0xff] }
0x10e3   :  { %2277 = vmatprep.subr.bf16.mxu1 %v2142_v21  ;;  %2363 = vmatprep.subr.bf16.mxu0 %v2144_v22  ;;  %v2196_v11 = vld [vmem:[#allocation4 + $0x298] sm:$0xff]  ;;  %v2195_v12 = vld [vmem:[#allocation4 + $0x290] sm:$0xff]  ;;  %v2198_v15 = vld [vmem:[#allocation4 + $0x2a8] sm:$0xff] }
0x10e4   :  { %v2200_v18 = vld [vmem:[#allocation4 + $0x2b8] sm:$0xff]  ;;  %v2197_v20 = vld [vmem:[#allocation4 + $0x2a0] sm:$0xff]  ;;  %v2199_v21 = vld [vmem:[#allocation4 + $0x2b0] sm:$0xff] }
0x10e5   :  { %v2202_v22 = vld [vmem:[#allocation4 + $0x2c8] sm:$0xff] }
0x10e6   :  { %2278 = vmatpush1.bf16.msra.mxu1 %v2141_v23  ;;  %2364 = vmatpush1.bf16.msra.mxu0 %v2143_v24  ;;  %v2204_v23 = vld [vmem:[#allocation4 + $0x2d8] sm:$0xff]  ;;  %v2201_v24 = vld [vmem:[#allocation4 + $0x2c0] sm:$0xff] }
0x10e7   :  { %2279 = vmatprep.subr.bf16.mxu1 %v2146_v44  ;;  %2365 = vmatprep.subr.bf16.mxu0 %v2148_v25  ;;  %v2203_v44 = vld [vmem:[#allocation4 + $0x2d0] sm:$0xff]  ;;  %v2206_v25 = vld [vmem:[#allocation4 + $0x2e8] sm:$0xff] }
0x10ea   :  { %2280 = vmatpush1.bf16.msra.mxu1 %v2145_v26  ;;  %2366 = vmatpush1.bf16.msra.mxu0 %v2147_v27  ;;  %v2208_v26 = vld [vmem:[#allocation4 + $0x2f8] sm:$0xff]  ;;  %v2205_v27 = vld [vmem:[#allocation4 + $0x2e0] sm:$0xff] }
0x10eb   :  { %2281 = vmatprep.subr.bf16.mxu1 %v2150_v29  ;;  %2367 = vmatprep.subr.bf16.mxu0 %v2152_v31  ;;  %v2207_v29 = vld [vmem:[#allocation4 + $0x2f0] sm:$0xff]  ;;  %v2210_v31 = vld [vmem:[#allocation4 + $0x308] sm:$0xff] }
0x10ee   :  { %2282 = vmatpush1.bf16.msra.mxu1 %v2149_v32  ;;  %2368 = vmatpush1.bf16.msra.mxu0 %v2151_v33  ;;  %v2212_v32 = vld [vmem:[#allocation4 + $0x318] sm:$0xff]  ;;  %v2209_v33 = vld [vmem:[#allocation4 + $0x300] sm:$0xff] }
0x10ef   :  { %2283 = vmatprep.subr.bf16.mxu1 %v2154_v34  ;;  %2369 = vmatprep.subr.bf16.mxu0 %v2156_v35  ;;  %v2211_v34 = vld [vmem:[#allocation4 + $0x310] sm:$0xff]  ;;  %v2214_v35 = vld [vmem:[#allocation4 + $0x328] sm:$0xff] }
0x10f2   :  { %2284 = vmatpush1.bf16.msra.mxu1 %v2153_v36  ;;  %2370 = vmatpush1.bf16.msra.mxu0 %v2155_v37  ;;  %v2216_v36 = vld [vmem:[#allocation4 + $0x338] sm:$0xff]  ;;  %v2213_v37 = vld [vmem:[#allocation4 + $0x320] sm:$0xff] }
0x10f3   :  { %2285 = vmatprep.subr.bf16.mxu1 %v2158_v16  ;;  %2371 = vmatprep.subr.bf16.mxu0 %v2160_v19  ;;  %v2215_v16 = vld [vmem:[#allocation4 + $0x330] sm:$0xff]  ;;  %v2218_v19 = vld [vmem:[#allocation4 + $0x348] sm:$0xff] }
0x10f6   :  { %2286 = vmatpush1.bf16.msra.mxu1 %v2157_v38  ;;  %2372 = vmatpush1.bf16.msra.mxu0 %v2159_v42  ;;  %v2220_v38 = vld [vmem:[#allocation4 + $0x358] sm:$0xff]  ;;  %v2217_v42 = vld [vmem:[#allocation4 + $0x340] sm:$0xff] }
0x10f7   :  { %2287 = vmatprep.subr.bf16.mxu1 %v2162_v45  ;;  %2373 = vmatprep.subr.bf16.mxu0 %v2164_v39  ;;  %v2219_v45 = vld [vmem:[#allocation4 + $0x350] sm:$0xff]  ;;  %v2222_v39 = vld [vmem:[#allocation4 + $0x368] sm:$0xff] }
0x10fa   :  { %2288 = vmatpush1.bf16.msra.mxu1 %v2161_v40  ;;  %2374 = vmatpush1.bf16.msra.mxu0 %v2163_v41  ;;  %v2224_v40 = vld [vmem:[#allocation4 + $0x378] sm:$0xff]  ;;  %v2221_v41 = vld [vmem:[#allocation4 + $0x360] sm:$0xff] }
0x10fb   :  { %2289 = vmatprep.subr.bf16.mxu1 %v2166_v46  ;;  %2375 = vmatprep.subr.bf16.mxu0 %v2168_v48  ;;  %v2223_v46 = vld [vmem:[#allocation4 + $0x370] sm:$0xff]  ;;  %v2226_v48 = vld [vmem:[#allocation4 + $0x388] sm:$0xff] }
0x10fe   :  { %2290 = vmatpush1.bf16.msra.mxu1 %v2165_v49  ;;  %2376 = vmatpush1.bf16.msra.mxu0 %v2167_v50  ;;  %v2228_v49 = vld [vmem:[#allocation4 + $0x398] sm:$0xff]  ;;  %v2225_v50 = vld [vmem:[#allocation4 + $0x380] sm:$0xff] }
0x10ff   :  { %2291 = vmatprep.subr.bf16.mxu1 %v2170_v51  ;;  %2377 = vmatprep.subr.bf16.mxu0 %v2172_v53  ;;  %v2227_v51 = vld [vmem:[#allocation4 + $0x390] sm:$0xff]  ;;  %v2230_v53 = vld [vmem:[#allocation4 + $0x3a8] sm:$0xff] }
0x1102   :  { %2292 = vmatpush1.bf16.msra.mxu1 %v2169_v54  ;;  %2378 = vmatpush1.bf16.msra.mxu0 %v2171_v56  ;;  %v2232_v54 = vld [vmem:[#allocation4 + $0x3b8] sm:$0xff]  ;;  %v2229_v56 = vld [vmem:[#allocation4 + $0x3a0] sm:$0xff] }
0x1103   :  { %2293 = vmatprep.subr.bf16.mxu1 %v2174_v57  ;;  %2379 = vmatprep.subr.bf16.mxu0 %v2176_v58  ;;  %v2231_v57 = vld [vmem:[#allocation4 + $0x3b0] sm:$0xff]  ;;  %v2234_v58 = vld [vmem:[#allocation4 + $0x3c8] sm:$0xff] }
0x1106   :  { %2294 = vmatpush1.bf16.msra.mxu1 %v2173_v59  ;;  %2380 = vmatpush1.bf16.msra.mxu0 %v2175_v43  ;;  %v2236_v59 = vld [vmem:[#allocation4 + $0x3d8] sm:$0xff]  ;;  %v2233_v43 = vld [vmem:[#allocation4 + $0x3c0] sm:$0xff] }
0x1107   :  { %2306 = vmatprep.subr.bf16.mxu1 %v2178_v47  ;;  %2392 = vmatprep.subr.bf16.mxu0 %v2180_v60  ;;  %v2235_v47 = vld [vmem:[#allocation4 + $0x3d0] sm:$0xff]  ;;  %v2238_v60 = vld [vmem:[#allocation4 + $0x3e8] sm:$0xff] }
0x1109   :  { %2296 = vmatmul.mubr.bf16.vlgmr.msra.gmra.mrb[28].mxu1 %v5260_v28  ;;  %2382 = vmatmul.mubr.bf16.vlgmr.msra.gmra.mrb[20].mxu0 %v5260_v28  ;;  %v2192_v28 = vld [vmem:[#allocation4 + $0x278] sm:$0xff] }
0x110a   :  { %2307 = vmatpush1.bf16.msra.mxu1 %v2177_v61  ;;  %2393 = vmatpush1.bf16.msra.mxu0 %v2179_v62  ;;  %v2240_v61 = vld [vmem:[#allocation4 + $0x3f8] sm:$0xff]  ;;  %v2237_v62 = vld [vmem:[#allocation4 + $0x3e0] sm:$0xff] }
0x110b   :  { %2308 = vmatprep.subr.bf16.mxu1 %v2182_v63  ;;  %2394 = vmatprep.subr.bf16.mxu0 %v2184_v1  ;;  %v2239_v63 = vld [vmem:[#allocation4 + $0x3f0] sm:$0xff]  ;;  %v5285_v1 = vsub.s32 2, %v5150_v13 }
0x110c   :  { %2338 = vmatprep.mubr.bf16.mxu1 %v5276_v52  ;;  %2424 = vmatprep.mubr.bf16.mxu0 %v5276_v52  ;;  %v2193_v52 = vld [vmem:[#allocation4 + $0x280] sm:$0xff] }
0x110e   :  { %2309 = vmatpush1.bf16.msra.mxu1 %v2181_v0  ;;  %2395 = vmatpush1.bf16.msra.mxu0 %v2183_v2  ;;  %v2241_v0 = vld [vmem:[%s5475_s13] sm:$0xf]  ;;  %v5291_v2 = vsub.s32 3, %v5150_v13 }
0x110f   :  { %2310 = vmatprep.subr.bf16.mxu1 %v2186_v5  ;;  %2396 = vmatprep.subr.bf16.mxu0 %v2188_v4  ;;  %v2246_v5 = vrot.slane %v2241_v0, %v5153_v14  ;;  %v2254_v4 = vrot.slane %v2241_v0, %v5285_v1 }
0x1112   :  { %2311 = vmatpush1.bf16.msra.mxu1 %v2185_v3  ;;  %2397 = vmatpush1.bf16.msra.mxu0 %v2187_v6  ;;  %v2250_v3 = vrot.slane %v2241_v0, %v5159_v17  ;;  %v2258_v6 = vrot.slane %v2241_v0, %v5291_v2 }
0x1113   :  { %2312 = vmatprep.subr.bf16.mxu1 %v2190_v7  ;;  %2398 = vmatprep.subr.bf16.mxu0 %v2192_v28 }
0x1116   :  { %2313 = vmatpush1.bf16.msra.mxu1 %v2189_v8  ;;  %2399 = vmatpush1.bf16.msra.mxu0 %v2191_v9 }
0x1117   :  { %2314 = vmatprep.subr.bf16.mxu1 %v2194_v10  ;;  %2400 = vmatprep.subr.bf16.mxu0 %v2196_v11 }
0x111a   :  { %2315 = vmatpush1.bf16.msra.mxu1 %v2193_v52  ;;  %2401 = vmatpush1.bf16.msra.mxu0 %v2195_v12 }
0x111b   :  { %2316 = vmatprep.subr.bf16.mxu1 %v2198_v15  ;;  %2402 = vmatprep.subr.bf16.mxu0 %v2200_v18 }
0x111e   :  { %2317 = vmatpush1.bf16.msra.mxu1 %v2197_v20  ;;  %2403 = vmatpush1.bf16.msra.mxu0 %v2199_v21 }
0x111f   :  { %2318 = vmatprep.subr.bf16.mxu1 %v2202_v22  ;;  %2404 = vmatprep.subr.bf16.mxu0 %v2204_v23 }
0x1122   :  { %2319 = vmatpush1.bf16.msra.mxu1 %v2201_v24  ;;  %2405 = vmatpush1.bf16.msra.mxu0 %v2203_v44 }
0x1123   :  { %2320 = vmatprep.subr.bf16.mxu1 %v2206_v25  ;;  %2406 = vmatprep.subr.bf16.mxu0 %v2208_v26 }
0x1126   :  { %2321 = vmatpush1.bf16.msra.mxu1 %v2205_v27  ;;  %2407 = vmatpush1.bf16.msra.mxu0 %v2207_v29 }
0x1127   :  { %2322 = vmatprep.subr.bf16.mxu1 %v2210_v31  ;;  %2408 = vmatprep.subr.bf16.mxu0 %v2212_v32 }
0x112a   :  { %2323 = vmatpush1.bf16.msra.mxu1 %v2209_v33  ;;  %2409 = vmatpush1.bf16.msra.mxu0 %v2211_v34 }
0x112b   :  { %2324 = vmatprep.subr.bf16.mxu1 %v2214_v35  ;;  %2410 = vmatprep.subr.bf16.mxu0 %v2216_v36 }
0x112e   :  { %2325 = vmatpush1.bf16.msra.mxu1 %v2213_v37  ;;  %2411 = vmatpush1.bf16.msra.mxu0 %v2215_v16 }
0x112f   :  { %2326 = vmatprep.subr.bf16.mxu1 %v2218_v19  ;;  %2412 = vmatprep.subr.bf16.mxu0 %v2220_v38 }
0x1132   :  { %2327 = vmatpush1.bf16.msra.mxu1 %v2217_v42  ;;  %2413 = vmatpush1.bf16.msra.mxu0 %v2219_v45 }
0x1133   :  { %2328 = vmatprep.subr.bf16.mxu1 %v2222_v39  ;;  %2414 = vmatprep.subr.bf16.mxu0 %v2224_v40 }
0x1136   :  { %2329 = vmatpush1.bf16.msra.mxu1 %v2221_v41  ;;  %2415 = vmatpush1.bf16.msra.mxu0 %v2223_v46 }
0x1137   :  { %2330 = vmatprep.subr.bf16.mxu1 %v2226_v48  ;;  %2416 = vmatprep.subr.bf16.mxu0 %v2228_v49 }
0x113a   :  { %2331 = vmatpush1.bf16.msra.mxu1 %v2225_v50  ;;  %2417 = vmatpush1.bf16.msra.mxu0 %v2227_v51 }
0x113b   :  { %2332 = vmatprep.subr.bf16.mxu1 %v2230_v53  ;;  %2418 = vmatprep.subr.bf16.mxu0 %v2232_v54 }
0x113e   :  { %2333 = vmatpush1.bf16.msra.mxu1 %v2229_v56  ;;  %2419 = vmatpush1.bf16.msra.mxu0 %v2231_v57 }
0x113f   :  { %2334 = vmatprep.subr.bf16.mxu1 %v2234_v58  ;;  %2420 = vmatprep.subr.bf16.mxu0 %v2236_v59 }
0x1142   :  { %2335 = vmatpush1.bf16.msra.mxu1 %v2233_v43  ;;  %2421 = vmatpush1.bf16.msra.mxu0 %v2235_v47 }
0x1143   :  { %2336 = vmatprep.subr.bf16.mxu1 %v2238_v60  ;;  %2422 = vmatprep.subr.bf16.mxu0 %v2240_v61 }
0x1146   :  { %2337 = vmatpush1.bf16.msra.mxu1 %v2237_v62  ;;  %2423 = vmatpush1.bf16.msra.mxu0 %v2239_v63 }
0x1149   :  { %2339 = vmatmul.mubr.bf16.vlgmr.msra.gmra.mrb[28].mxu1 %v5266_v30  ;;  %2425 = vmatmul.mubr.bf16.vlgmr.msra.gmra.mrb[20].mxu0 %v5266_v30 }
0x121c   :  { %v2340_v7 = vpop.f32.mrb[28].mxu1  ;;  %v2426_v30 = vpop.f32.mrb[20].mxu0 }
0x121d   :  { %v5297_v28 = vadd.f32 %v2340_v7, %v2246_v5  ;;  %v5299_v8 = vadd.f32 %v2426_v30, %v2254_v4  ;;  %v2342_v9 = vpop.f32.mrb[29].mxu1  ;;  %v2428_v10 = vpop.f32.mrb[21].mxu0 }
0x121e   :  { %v5301_v11 = vadd.f32 %v2342_v9, %v2250_v3  ;;  %v5303_v52 = vadd.f32 %v2428_v10, %v2258_v6  ;;  %v2344_v12 = vpop.f32.mrb[30].mxu1  ;;  %v2430_v15 = vpop.f32.mrb[22].mxu0 }
0x121f   :  { %v2435_v18 = vmax.f32 %v5297_v28, 0.0  ;;  %v2437_v20 = vmax.f32 %v5299_v8, 0.0  ;;  %v5307_v21 = vadd.f32 %v2344_v12, %v2246_v5  ;;  %v5309_v22 = vadd.f32 %v2430_v15, %v2254_v4  ;;  %v2346_v23 = vpop.f32.mrb[31].mxu1  ;;  %v2432_v24 = vpop.f32.mrb[23].mxu0 }
0x1220   :  { %v2436_v44 = vmax.f32 %v5301_v11, 0.0  ;;  %v2438_v25 = vmax.f32 %v5303_v52, 0.0  ;;  %v5313_v26 = vadd.f32 %v2346_v23, %v2250_v3  ;;  %v5315_v27 = vadd.f32 %v2432_v24, %v2258_v6 }
0x1221   :  { %v2439_v29 = vmax.f32 %v5307_v21, 0.0  ;;  %v2441_v31 = vmax.f32 %v5309_v22, 0.0 }
0x1222   :  { %v2440_v32 = vmax.f32 %v5313_v26, 0.0  ;;  %v2442_v33 = vmax.f32 %v5315_v27, 0.0 }
0x1223   :  { %4711 = dma.done.wait [#allocation9 + $0x1], 32768 }
0x1224   :  { %4712 = vsyncadd [#allocation9 + $0x1], 4294934528  ;;  %v5325_v34 = vpack.c.bf16 %v2440_v32, %v2436_v44  ;;  %4379 = vset.pattern.permute.xlu0 %v4755_v55  ;;  %4378 = vset.pattern.permute.xlu1 %v4755_v55  ;;  %v2451_v35 = vld [vmem:[#allocation5 + $0x8] sm:$0xff]  ;;  %v2453_v36 = vld [vmem:[#allocation5 + $0x18] sm:$0xff]  ;;  %s5547_s10 = sld [smem:[#allocation72_spill]]  ;;  %vm3217_vm7 = vcmask 7168  }
0x1225   :  { %v2450_v37 = vld [vmem:[#allocation5] sm:$0xff]  ;;  %2748 = vmatprep.subr.bf16.mxu1 %v2451_v35  ;;  %2834 = vmatprep.subr.bf16.mxu0 %v2453_v36  ;;  %v2452_v16 = vld [vmem:[#allocation5 + $0x10] sm:$0xff]  ;;  %v2459_v19 = vld [vmem:[#allocation5 + $0x48] sm:$0xff] }
0x1226   :  { %2780 = vmatprep.mubr.bf16.mxu1 %v5325_v34  ;;  %2866 = vmatprep.mubr.bf16.mxu0 %v5325_v34  ;;  %v2461_v38 = vld [vmem:[#allocation5 + $0x58] sm:$0xff]  ;;  %v2458_v42 = vld [vmem:[#allocation5 + $0x40] sm:$0xff]  ;;  %v2460_v45 = vld [vmem:[#allocation5 + $0x50] sm:$0xff] }
0x1227   :  { %2749 = vmatpush1.bf16.msra.mxu1 %v2450_v37  ;;  %2835 = vmatpush1.bf16.msra.mxu0 %v2452_v16  ;;  %v2467_v39 = vld [vmem:[#allocation5 + $0x88] sm:$0xff]  ;;  %v2469_v55 = vld [vmem:[#allocation5 + $0x98] sm:$0xff]  ;;  %v2466_v40 = vld [vmem:[#allocation5 + $0x80] sm:$0xff] }
0x1228   :  { %2750 = vmatprep.subr.bf16.mxu1 %v2459_v19  ;;  %2836 = vmatprep.subr.bf16.mxu0 %v2461_v38  ;;  %v2468_v41 = vld [vmem:[#allocation5 + $0x90] sm:$0xff]  ;;  %v2475_v46 = vld [vmem:[#allocation5 + $0xc8] sm:$0xff]  ;;  %v2477_v48 = vld [vmem:[#allocation5 + $0xd8] sm:$0xff] }
0x1229   :  { %v2474_v49 = vld [vmem:[#allocation5 + $0xc0] sm:$0xff]  ;;  %v2476_v50 = vld [vmem:[#allocation5 + $0xd0] sm:$0xff]  ;;  %v2483_v51 = vld [vmem:[#allocation5 + $0x108] sm:$0xff] }
0x122a   :  { %v2485_v53 = vld [vmem:[#allocation5 + $0x118] sm:$0xff]  ;;  %v2482_v54 = vld [vmem:[#allocation5 + $0x100] sm:$0xff]  ;;  %v2484_v56 = vld [vmem:[#allocation5 + $0x110] sm:$0xff] }
0x122b   :  { %2751 = vmatpush1.bf16.msra.mxu1 %v2458_v42  ;;  %2837 = vmatpush1.bf16.msra.mxu0 %v2460_v45  ;;  %v2491_v57 = vld [vmem:[#allocation5 + $0x148] sm:$0xff]  ;;  %v2493_v58 = vld [vmem:[#allocation5 + $0x158] sm:$0xff]  ;;  %v2490_v59 = vld [vmem:[#allocation5 + $0x140] sm:$0xff] }
0x122c   :  { %2752 = vmatprep.subr.bf16.mxu1 %v2467_v39  ;;  %2838 = vmatprep.subr.bf16.mxu0 %v2469_v55  ;;  %v2492_v43 = vld [vmem:[#allocation5 + $0x150] sm:$0xff]  ;;  %v2499_v47 = vld [vmem:[#allocation5 + $0x188] sm:$0xff]  ;;  %v2501_v60 = vld [vmem:[#allocation5 + $0x198] sm:$0xff] }
0x122d   :  { %v2498_v61 = vld [vmem:[#allocation5 + $0x180] sm:$0xff]  ;;  %v2500_v62 = vld [vmem:[#allocation5 + $0x190] sm:$0xff]  ;;  %v2507_v63 = vld [vmem:[#allocation5 + $0x1c8] sm:$0xff] }
0x122e   :  { %v2509_v0 = vld [vmem:[#allocation5 + $0x1d8] sm:$0xff]  ;;  %v2506_v5 = vld [vmem:[#allocation5 + $0x1c0] sm:$0xff]  ;;  %v2508_v4 = vld [vmem:[#allocation5 + $0x1d0] sm:$0xff] }
0x122f   :  { %2753 = vmatpush1.bf16.msra.mxu1 %v2466_v40  ;;  %2839 = vmatpush1.bf16.msra.mxu0 %v2468_v41  ;;  %v2515_v3 = vld [vmem:[#allocation5 + $0x208] sm:$0xff]  ;;  %v2517_v6 = vld [vmem:[#allocation5 + $0x218] sm:$0xff]  ;;  %v2514_v7 = vld [vmem:[#allocation5 + $0x200] sm:$0xff] }
0x1230   :  { %2754 = vmatprep.subr.bf16.mxu1 %v2475_v46  ;;  %2840 = vmatprep.subr.bf16.mxu0 %v2477_v48  ;;  %v2516_v30 = vld [vmem:[#allocation5 + $0x210] sm:$0xff]  ;;  %v2523_v9 = vld [vmem:[#allocation5 + $0x248] sm:$0xff]  ;;  %v2525_v10 = vld [vmem:[#allocation5 + $0x258] sm:$0xff] }
0x1231   :  { %v2522_v12 = vld [vmem:[#allocation5 + $0x240] sm:$0xff]  ;;  %v2524_v15 = vld [vmem:[#allocation5 + $0x250] sm:$0xff]  ;;  %v2531_v23 = vld [vmem:[#allocation5 + $0x288] sm:$0xff] }
0x1232   :  { %v2533_v24 = vld [vmem:[#allocation5 + $0x298] sm:$0xff]  ;;  %v2530_v35 = vld [vmem:[#allocation5 + $0x280] sm:$0xff]  ;;  %v2532_v36 = vld [vmem:[#allocation5 + $0x290] sm:$0xff] }
0x1233   :  { %2755 = vmatpush1.bf16.msra.mxu1 %v2474_v49  ;;  %2841 = vmatpush1.bf16.msra.mxu0 %v2476_v50  ;;  %v2539_v37 = vld [vmem:[#allocation5 + $0x2c8] sm:$0xff]  ;;  %v2541_v16 = vld [vmem:[#allocation5 + $0x2d8] sm:$0xff]  ;;  %v2538_v19 = vld [vmem:[#allocation5 + $0x2c0] sm:$0xff] }
0x1234   :  { %2756 = vmatprep.subr.bf16.mxu1 %v2483_v51  ;;  %2842 = vmatprep.subr.bf16.mxu0 %v2485_v53  ;;  %v2540_v38 = vld [vmem:[#allocation5 + $0x2d0] sm:$0xff]  ;;  %v2547_v42 = vld [vmem:[#allocation5 + $0x308] sm:$0xff]  ;;  %v2549_v45 = vld [vmem:[#allocation5 + $0x318] sm:$0xff] }
0x1235   :  { %v2546_v39 = vld [vmem:[#allocation5 + $0x300] sm:$0xff]  ;;  %v2548_v55 = vld [vmem:[#allocation5 + $0x310] sm:$0xff]  ;;  %v2555_v40 = vld [vmem:[#allocation5 + $0x348] sm:$0xff] }
0x1236   :  { %v2557_v41 = vld [vmem:[#allocation5 + $0x358] sm:$0xff]  ;;  %v2554_v46 = vld [vmem:[#allocation5 + $0x340] sm:$0xff]  ;;  %v2556_v48 = vld [vmem:[#allocation5 + $0x350] sm:$0xff] }
0x1237   :  { %2757 = vmatpush1.bf16.msra.mxu1 %v2482_v54  ;;  %2843 = vmatpush1.bf16.msra.mxu0 %v2484_v56  ;;  %v2563_v49 = vld [vmem:[#allocation5 + $0x388] sm:$0xff]  ;;  %v2565_v50 = vld [vmem:[#allocation5 + $0x398] sm:$0xff]  ;;  %v2562_v51 = vld [vmem:[#allocation5 + $0x380] sm:$0xff] }
0x1238   :  { %2758 = vmatprep.subr.bf16.mxu1 %v2491_v57  ;;  %2844 = vmatprep.subr.bf16.mxu0 %v2493_v58  ;;  %v2564_v53 = vld [vmem:[#allocation5 + $0x390] sm:$0xff]  ;;  %v2571_v54 = vld [vmem:[#allocation5 + $0x3c8] sm:$0xff]  ;;  %v2573_v56 = vld [vmem:[#allocation5 + $0x3d8] sm:$0xff] }
0x1239   :  { %v2570_v57 = vld [vmem:[#allocation5 + $0x3c0] sm:$0xff]  ;;  %v2572_v58 = vld [vmem:[#allocation5 + $0x3d0] sm:$0xff] }
0x123b   :  { %2759 = vmatpush1.bf16.msra.mxu1 %v2490_v59  ;;  %2845 = vmatpush1.bf16.msra.mxu0 %v2492_v43  ;;  %v2579_v59 = vld [vmem:[#allocation5 + $0x408] sm:$0xff]  ;;  %v2581_v43 = vld [vmem:[#allocation5 + $0x418] sm:$0xff] }
0x123c   :  { %2760 = vmatprep.subr.bf16.mxu1 %v2499_v47  ;;  %2846 = vmatprep.subr.bf16.mxu0 %v2501_v60  ;;  %v5335_v47 = vpack.c.bf16 %v2439_v29, %v2435_v18  ;;  %v2578_v60 = vld [vmem:[#allocation5 + $0x400] sm:$0xff] }
0x123f   :  { %2761 = vmatpush1.bf16.msra.mxu1 %v2498_v61  ;;  %2847 = vmatpush1.bf16.msra.mxu0 %v2500_v62  ;;  %v2580_v61 = vld [vmem:[#allocation5 + $0x410] sm:$0xff]  ;;  %v2587_v62 = vld [vmem:[#allocation5 + $0x448] sm:$0xff] }
0x1240   :  { %2762 = vmatprep.subr.bf16.mxu1 %v2507_v63  ;;  %2848 = vmatprep.subr.bf16.mxu0 %v2509_v0  ;;  %v2589_v63 = vld [vmem:[#allocation5 + $0x458] sm:$0xff]  ;;  %v5341_v0 = vpack.c.bf16 %v2442_v33, %v2438_v25 }
0x1243   :  { %2763 = vmatpush1.bf16.msra.mxu1 %v2506_v5  ;;  %2849 = vmatpush1.bf16.msra.mxu0 %v2508_v4  ;;  %v2586_v5 = vld [vmem:[#allocation5 + $0x440] sm:$0xff]  ;;  %v2588_v4 = vld [vmem:[#allocation5 + $0x450] sm:$0xff] }
0x1244   :  { %2764 = vmatprep.subr.bf16.mxu1 %v2515_v3  ;;  %2850 = vmatprep.subr.bf16.mxu0 %v2517_v6  ;;  %v2595_v3 = vld [vmem:[#allocation5 + $0x488] sm:$0xff]  ;;  %v2597_v6 = vld [vmem:[#allocation5 + $0x498] sm:$0xff] }
0x1247   :  { %2765 = vmatpush1.bf16.msra.mxu1 %v2514_v7  ;;  %2851 = vmatpush1.bf16.msra.mxu0 %v2516_v30  ;;  %v2594_v7 = vld [vmem:[#allocation5 + $0x480] sm:$0xff]  ;;  %v2596_v30 = vld [vmem:[#allocation5 + $0x490] sm:$0xff] }
0x1248   :  { %2766 = vmatprep.subr.bf16.mxu1 %v2523_v9  ;;  %2852 = vmatprep.subr.bf16.mxu0 %v2525_v10  ;;  %v2603_v9 = vld [vmem:[#allocation5 + $0x4c8] sm:$0xff]  ;;  %v2605_v10 = vld [vmem:[#allocation5 + $0x4d8] sm:$0xff] }
0x124b   :  { %2767 = vmatpush1.bf16.msra.mxu1 %v2522_v12  ;;  %2853 = vmatpush1.bf16.msra.mxu0 %v2524_v15  ;;  %v2602_v12 = vld [vmem:[#allocation5 + $0x4c0] sm:$0xff]  ;;  %v2604_v15 = vld [vmem:[#allocation5 + $0x4d0] sm:$0xff] }
0x124c   :  { %2768 = vmatprep.subr.bf16.mxu1 %v2531_v23  ;;  %2854 = vmatprep.subr.bf16.mxu0 %v2533_v24  ;;  %v2611_v23 = vld [vmem:[#allocation5 + $0x508] sm:$0xff]  ;;  %v2613_v24 = vld [vmem:[#allocation5 + $0x518] sm:$0xff] }
0x124f   :  { %2769 = vmatpush1.bf16.msra.mxu1 %v2530_v35  ;;  %2855 = vmatpush1.bf16.msra.mxu0 %v2532_v36  ;;  %v2610_v35 = vld [vmem:[#allocation5 + $0x500] sm:$0xff]  ;;  %v2612_v36 = vld [vmem:[#allocation5 + $0x510] sm:$0xff] }
0x1250   :  { %2770 = vmatprep.subr.bf16.mxu1 %v2539_v37  ;;  %2856 = vmatprep.subr.bf16.mxu0 %v2541_v16  ;;  %v2619_v37 = vld [vmem:[#allocation5 + $0x548] sm:$0xff]  ;;  %v2621_v16 = vld [vmem:[#allocation5 + $0x558] sm:$0xff] }
0x1253   :  { %2771 = vmatpush1.bf16.msra.mxu1 %v2538_v19  ;;  %2857 = vmatpush1.bf16.msra.mxu0 %v2540_v38  ;;  %v2618_v19 = vld [vmem:[#allocation5 + $0x540] sm:$0xff]  ;;  %v2620_v38 = vld [vmem:[#allocation5 + $0x550] sm:$0xff] }
0x1254   :  { %2772 = vmatprep.subr.bf16.mxu1 %v2547_v42  ;;  %2858 = vmatprep.subr.bf16.mxu0 %v2549_v45  ;;  %v2627_v42 = vld [vmem:[#allocation5 + $0x588] sm:$0xff]  ;;  %v2629_v45 = vld [vmem:[#allocation5 + $0x598] sm:$0xff] }
0x1257   :  { %2773 = vmatpush1.bf16.msra.mxu1 %v2546_v39  ;;  %2859 = vmatpush1.bf16.msra.mxu0 %v2548_v55  ;;  %v2626_v39 = vld [vmem:[#allocation5 + $0x580] sm:$0xff]  ;;  %v2628_v55 = vld [vmem:[#allocation5 + $0x590] sm:$0xff] }
0x1258   :  { %2774 = vmatprep.subr.bf16.mxu1 %v2555_v40  ;;  %2860 = vmatprep.subr.bf16.mxu0 %v2557_v41  ;;  %v2635_v40 = vld [vmem:[#allocation5 + $0x5c8] sm:$0xff]  ;;  %v2637_v41 = vld [vmem:[#allocation5 + $0x5d8] sm:$0xff] }
0x125b   :  { %2775 = vmatpush1.bf16.msra.mxu1 %v2554_v46  ;;  %2861 = vmatpush1.bf16.msra.mxu0 %v2556_v48  ;;  %v2634_v46 = vld [vmem:[#allocation5 + $0x5c0] sm:$0xff]  ;;  %v2636_v48 = vld [vmem:[#allocation5 + $0x5d0] sm:$0xff] }
0x125c   :  { %2776 = vmatprep.subr.bf16.mxu1 %v2563_v49  ;;  %2862 = vmatprep.subr.bf16.mxu0 %v2565_v50  ;;  %v2643_v49 = vld [vmem:[#allocation5 + $0x608] sm:$0xff]  ;;  %v2645_v50 = vld [vmem:[#allocation5 + $0x618] sm:$0xff] }
0x125f   :  { %2777 = vmatpush1.bf16.msra.mxu1 %v2562_v51  ;;  %2863 = vmatpush1.bf16.msra.mxu0 %v2564_v53  ;;  %v2642_v51 = vld [vmem:[#allocation5 + $0x600] sm:$0xff]  ;;  %v2644_v53 = vld [vmem:[#allocation5 + $0x610] sm:$0xff] }
0x1260   :  { %2778 = vmatprep.subr.bf16.mxu1 %v2571_v54  ;;  %2864 = vmatprep.subr.bf16.mxu0 %v2573_v56  ;;  %v2651_v54 = vld [vmem:[#allocation5 + $0x648] sm:$0xff]  ;;  %v2653_v56 = vld [vmem:[#allocation5 + $0x658] sm:$0xff] }
0x1263   :  { %2779 = vmatpush1.bf16.msra.mxu1 %v2570_v57  ;;  %2865 = vmatpush1.bf16.msra.mxu0 %v2572_v58  ;;  %v2650_v57 = vld [vmem:[#allocation5 + $0x640] sm:$0xff]  ;;  %v2652_v58 = vld [vmem:[#allocation5 + $0x650] sm:$0xff] }
0x1264   :  { %2791 = vmatprep.subr.bf16.mxu1 %v2579_v59  ;;  %2877 = vmatprep.subr.bf16.mxu0 %v2581_v43  ;;  %v2659_v59 = vld [vmem:[#allocation5 + $0x688] sm:$0xff]  ;;  %v2661_v43 = vld [vmem:[#allocation5 + $0x698] sm:$0xff] }
0x1266   :  { %2781 = vmatmul.mubr.bf16.vlgmr.msra.gmra.mrb[32].mxu1 %v5335_v47  ;;  %2867 = vmatmul.mubr.bf16.vlgmr.msra.gmra.mrb[24].mxu0 %v5335_v47 }
0x1267   :  { %2792 = vmatpush1.bf16.msra.mxu1 %v2578_v60  ;;  %2878 = vmatpush1.bf16.msra.mxu0 %v2580_v61  ;;  %v2658_v60 = vld [vmem:[#allocation5 + $0x680] sm:$0xff]  ;;  %v2660_v61 = vld [vmem:[#allocation5 + $0x690] sm:$0xff] }
0x1268   :  { %2793 = vmatprep.subr.bf16.mxu1 %v2587_v62  ;;  %2879 = vmatprep.subr.bf16.mxu0 %v2589_v63  ;;  %v2667_v62 = vld [vmem:[#allocation5 + $0x6c8] sm:$0xff]  ;;  %v2669_v63 = vld [vmem:[#allocation5 + $0x6d8] sm:$0xff] }
0x1269   :  { %2823 = vmatprep.mubr.bf16.mxu1 %v5341_v0  ;;  %2909 = vmatprep.mubr.bf16.mxu0 %v5341_v0 }
0x126b   :  { %2794 = vmatpush1.bf16.msra.mxu1 %v2586_v5  ;;  %2880 = vmatpush1.bf16.msra.mxu0 %v2588_v4  ;;  %v2666_v5 = vld [vmem:[#allocation5 + $0x6c0] sm:$0xff]  ;;  %v2668_v4 = vld [vmem:[#allocation5 + $0x6d0] sm:$0xff] }
0x126c   :  { %2795 = vmatprep.subr.bf16.mxu1 %v2595_v3  ;;  %2881 = vmatprep.subr.bf16.mxu0 %v2597_v6  ;;  %v2675_v3 = vld [vmem:[#allocation5 + $0x708] sm:$0xff]  ;;  %v2677_v6 = vld [vmem:[#allocation5 + $0x718] sm:$0xff] }
0x126f   :  { %2796 = vmatpush1.bf16.msra.mxu1 %v2594_v7  ;;  %2882 = vmatpush1.bf16.msra.mxu0 %v2596_v30  ;;  %v2674_v7 = vld [vmem:[#allocation5 + $0x700] sm:$0xff]  ;;  %v2676_v30 = vld [vmem:[#allocation5 + $0x710] sm:$0xff] }
0x1270   :  { %2797 = vmatprep.subr.bf16.mxu1 %v2603_v9  ;;  %2883 = vmatprep.subr.bf16.mxu0 %v2605_v10  ;;  %v2683_v9 = vld [vmem:[#allocation5 + $0x748] sm:$0xff]  ;;  %v2685_v10 = vld [vmem:[#allocation5 + $0x758] sm:$0xff] }
0x1273   :  { %2798 = vmatpush1.bf16.msra.mxu1 %v2602_v12  ;;  %2884 = vmatpush1.bf16.msra.mxu0 %v2604_v15  ;;  %v2682_v12 = vld [vmem:[#allocation5 + $0x740] sm:$0xff]  ;;  %v2684_v15 = vld [vmem:[#allocation5 + $0x750] sm:$0xff] }
0x1274   :  { %2799 = vmatprep.subr.bf16.mxu1 %v2611_v23  ;;  %2885 = vmatprep.subr.bf16.mxu0 %v2613_v24  ;;  %v2691_v23 = vld [vmem:[#allocation5 + $0x788] sm:$0xff]  ;;  %v2693_v24 = vld [vmem:[#allocation5 + $0x798] sm:$0xff] }
0x1277   :  { %2800 = vmatpush1.bf16.msra.mxu1 %v2610_v35  ;;  %2886 = vmatpush1.bf16.msra.mxu0 %v2612_v36  ;;  %v2690_v35 = vld [vmem:[#allocation5 + $0x780] sm:$0xff]  ;;  %v2692_v36 = vld [vmem:[#allocation5 + $0x790] sm:$0xff] }
0x1278   :  { %2801 = vmatprep.subr.bf16.mxu1 %v2619_v37  ;;  %2887 = vmatprep.subr.bf16.mxu0 %v2621_v16  ;;  %v2699_v37 = vld [vmem:[#allocation5 + $0x7c8] sm:$0xff]  ;;  %v2701_v16 = vld [vmem:[#allocation5 + $0x7d8] sm:$0xff] }
0x127b   :  { %2802 = vmatpush1.bf16.msra.mxu1 %v2618_v19  ;;  %2888 = vmatpush1.bf16.msra.mxu0 %v2620_v38  ;;  %v2698_v19 = vld [vmem:[#allocation5 + $0x7c0] sm:$0xff]  ;;  %v2700_v38 = vld [vmem:[#allocation5 + $0x7d0] sm:$0xff] }
0x127c   :  { %2803 = vmatprep.subr.bf16.mxu1 %v2627_v42  ;;  %2889 = vmatprep.subr.bf16.mxu0 %v2629_v45  ;;  %v2455_v42 = vld [vmem:[#allocation5 + $0x28] sm:$0xff]  ;;  %v2457_v45 = vld [vmem:[#allocation5 + $0x38] sm:$0xff] }
0x127f   :  { %2804 = vmatpush1.bf16.msra.mxu1 %v2626_v39  ;;  %2890 = vmatpush1.bf16.msra.mxu0 %v2628_v55  ;;  %v5351_v39 = vpack.c.bf16 %v2441_v31, %v2437_v20  ;;  %v2454_v55 = vld [vmem:[#allocation5 + $0x20] sm:$0xff] }
0x1280   :  { %2805 = vmatprep.subr.bf16.mxu1 %v2635_v40  ;;  %2891 = vmatprep.subr.bf16.mxu0 %v2637_v41  ;;  %v2456_v40 = vld [vmem:[#allocation5 + $0x30] sm:$0xff]  ;;  %v2463_v41 = vld [vmem:[#allocation5 + $0x68] sm:$0xff] }
0x1283   :  { %2806 = vmatpush1.bf16.msra.mxu1 %v2634_v46  ;;  %2892 = vmatpush1.bf16.msra.mxu0 %v2636_v48  ;;  %v2465_v46 = vld [vmem:[#allocation5 + $0x78] sm:$0xff]  ;;  %v2462_v48 = vld [vmem:[#allocation5 + $0x60] sm:$0xff] }
0x1284   :  { %2807 = vmatprep.subr.bf16.mxu1 %v2643_v49  ;;  %2893 = vmatprep.subr.bf16.mxu0 %v2645_v50  ;;  %v2464_v49 = vld [vmem:[#allocation5 + $0x70] sm:$0xff]  ;;  %v2471_v50 = vld [vmem:[#allocation5 + $0xa8] sm:$0xff] }
0x1287   :  { %2808 = vmatpush1.bf16.msra.mxu1 %v2642_v51  ;;  %2894 = vmatpush1.bf16.msra.mxu0 %v2644_v53  ;;  %v2473_v51 = vld [vmem:[#allocation5 + $0xb8] sm:$0xff]  ;;  %v2470_v53 = vld [vmem:[#allocation5 + $0xa0] sm:$0xff] }
0x1288   :  { %2809 = vmatprep.subr.bf16.mxu1 %v2651_v54  ;;  %2895 = vmatprep.subr.bf16.mxu0 %v2653_v56  ;;  %v2472_v54 = vld [vmem:[#allocation5 + $0xb0] sm:$0xff]  ;;  %v2479_v56 = vld [vmem:[#allocation5 + $0xe8] sm:$0xff] }
0x128b   :  { %2810 = vmatpush1.bf16.msra.mxu1 %v2650_v57  ;;  %2896 = vmatpush1.bf16.msra.mxu0 %v2652_v58  ;;  %v2481_v57 = vld [vmem:[#allocation5 + $0xf8] sm:$0xff]  ;;  %v2478_v58 = vld [vmem:[#allocation5 + $0xe0] sm:$0xff] }
0x128c   :  { %2811 = vmatprep.subr.bf16.mxu1 %v2659_v59  ;;  %2897 = vmatprep.subr.bf16.mxu0 %v2661_v43  ;;  %v2480_v59 = vld [vmem:[#allocation5 + $0xf0] sm:$0xff]  ;;  %v2487_v43 = vld [vmem:[#allocation5 + $0x128] sm:$0xff] }
0x128f   :  { %2812 = vmatpush1.bf16.msra.mxu1 %v2658_v60  ;;  %2898 = vmatpush1.bf16.msra.mxu0 %v2660_v61  ;;  %v2489_v60 = vld [vmem:[#allocation5 + $0x138] sm:$0xff]  ;;  %v2488_v61 = vld [vmem:[#allocation5 + $0x130] sm:$0xff] }
0x1290   :  { %2813 = vmatprep.subr.bf16.mxu1 %v2667_v62  ;;  %2899 = vmatprep.subr.bf16.mxu0 %v2669_v63  ;;  %v2495_v62 = vld [vmem:[#allocation5 + $0x168] sm:$0xff]  ;;  %v2497_v63 = vld [vmem:[#allocation5 + $0x178] sm:$0xff] }
0x1293   :  { %2814 = vmatpush1.bf16.msra.mxu1 %v2666_v5  ;;  %2900 = vmatpush1.bf16.msra.mxu0 %v2668_v4  ;;  %v2494_v5 = vld [vmem:[#allocation5 + $0x160] sm:$0xff]  ;;  %v2496_v4 = vld [vmem:[#allocation5 + $0x170] sm:$0xff] }
0x1294   :  { %2815 = vmatprep.subr.bf16.mxu1 %v2675_v3  ;;  %2901 = vmatprep.subr.bf16.mxu0 %v2677_v6  ;;  %v2503_v3 = vld [vmem:[#allocation5 + $0x1a8] sm:$0xff]  ;;  %v2505_v6 = vld [vmem:[#allocation5 + $0x1b8] sm:$0xff] }
0x1297   :  { %2816 = vmatpush1.bf16.msra.mxu1 %v2674_v7  ;;  %2902 = vmatpush1.bf16.msra.mxu0 %v2676_v30  ;;  %v2502_v7 = vld [vmem:[#allocation5 + $0x1a0] sm:$0xff]  ;;  %v2504_v30 = vld [vmem:[#allocation5 + $0x1b0] sm:$0xff] }
0x1298   :  { %2817 = vmatprep.subr.bf16.mxu1 %v2683_v9  ;;  %2903 = vmatprep.subr.bf16.mxu0 %v2685_v10  ;;  %v2511_v9 = vld [vmem:[#allocation5 + $0x1e8] sm:$0xff]  ;;  %v2513_v10 = vld [vmem:[#allocation5 + $0x1f8] sm:$0xff] }
0x129b   :  { %2818 = vmatpush1.bf16.msra.mxu1 %v2682_v12  ;;  %2904 = vmatpush1.bf16.msra.mxu0 %v2684_v15  ;;  %v2510_v12 = vld [vmem:[#allocation5 + $0x1e0] sm:$0xff]  ;;  %v2512_v15 = vld [vmem:[#allocation5 + $0x1f0] sm:$0xff] }
0x129c   :  { %2819 = vmatprep.subr.bf16.mxu1 %v2691_v23  ;;  %2905 = vmatprep.subr.bf16.mxu0 %v2693_v24  ;;  %v2519_v23 = vld [vmem:[#allocation5 + $0x228] sm:$0xff]  ;;  %v2521_v24 = vld [vmem:[#allocation5 + $0x238] sm:$0xff] }
0x129f   :  { %2820 = vmatpush1.bf16.msra.mxu1 %v2690_v35  ;;  %2906 = vmatpush1.bf16.msra.mxu0 %v2692_v36  ;;  %v2518_v35 = vld [vmem:[#allocation5 + $0x220] sm:$0xff]  ;;  %v2520_v36 = vld [vmem:[#allocation5 + $0x230] sm:$0xff] }
0x12a0   :  { %2821 = vmatprep.subr.bf16.mxu1 %v2699_v37  ;;  %2907 = vmatprep.subr.bf16.mxu0 %v2701_v16  ;;  %v2527_v37 = vld [vmem:[#allocation5 + $0x268] sm:$0xff]  ;;  %v2529_v16 = vld [vmem:[#allocation5 + $0x278] sm:$0xff] }
0x12a3   :  { %2822 = vmatpush1.bf16.msra.mxu1 %v2698_v19  ;;  %2908 = vmatpush1.bf16.msra.mxu0 %v2700_v38  ;;  %v2526_v19 = vld [vmem:[#allocation5 + $0x260] sm:$0xff]  ;;  %v2528_v38 = vld [vmem:[#allocation5 + $0x270] sm:$0xff] }
0x12a4   :  { %2920 = vmatprep.subr.bf16.mxu1 %v2455_v42  ;;  %3006 = vmatprep.subr.bf16.mxu0 %v2457_v45  ;;  %v2535_v42 = vld [vmem:[#allocation5 + $0x2a8] sm:$0xff]  ;;  %v2537_v45 = vld [vmem:[#allocation5 + $0x2b8] sm:$0xff] }
0x12a6   :  { %2824 = vmatmul.mubr.bf16.vlgmr.msra.gmra.mrb[32].mxu1 %v5351_v39  ;;  %2910 = vmatmul.mubr.bf16.vlgmr.msra.gmra.mrb[24].mxu0 %v5351_v39 }
0x12a7   :  { %2921 = vmatpush1.bf16.msra.mxu1 %v2454_v55  ;;  %3007 = vmatpush1.bf16.msra.mxu0 %v2456_v40  ;;  %v2534_v55 = vld [vmem:[#allocation5 + $0x2a0] sm:$0xff]  ;;  %v2536_v40 = vld [vmem:[#allocation5 + $0x2b0] sm:$0xff] }
0x12a8   :  { %2922 = vmatprep.subr.bf16.mxu1 %v2463_v41  ;;  %3008 = vmatprep.subr.bf16.mxu0 %v2465_v46  ;;  %v2543_v41 = vld [vmem:[#allocation5 + $0x2e8] sm:$0xff]  ;;  %v2545_v46 = vld [vmem:[#allocation5 + $0x2f8] sm:$0xff] }
0x12a9   :  { %2952 = vmatprep.mubr.bf16.mxu1 %v5325_v34  ;;  %3038 = vmatprep.mubr.bf16.mxu0 %v5325_v34  ;;  %v2486_v34 = vld [vmem:[#allocation5 + $0x120] sm:$0xff] }
0x12ab   :  { %2923 = vmatpush1.bf16.msra.mxu1 %v2462_v48  ;;  %3009 = vmatpush1.bf16.msra.mxu0 %v2464_v49  ;;  %v2542_v48 = vld [vmem:[#allocation5 + $0x2e0] sm:$0xff]  ;;  %v2544_v49 = vld [vmem:[#allocation5 + $0x2f0] sm:$0xff] }
0x12ac   :  { %2924 = vmatprep.subr.bf16.mxu1 %v2471_v50  ;;  %3010 = vmatprep.subr.bf16.mxu0 %v2473_v51  ;;  %v2551_v50 = vld [vmem:[#allocation5 + $0x328] sm:$0xff]  ;;  %v2553_v51 = vld [vmem:[#allocation5 + $0x338] sm:$0xff] }
0x12af   :  { %2925 = vmatpush1.bf16.msra.mxu1 %v2470_v53  ;;  %3011 = vmatpush1.bf16.msra.mxu0 %v2472_v54  ;;  %v2550_v53 = vld [vmem:[#allocation5 + $0x320] sm:$0xff]  ;;  %v2552_v54 = vld [vmem:[#allocation5 + $0x330] sm:$0xff] }
0x12b0   :  { %2926 = vmatprep.subr.bf16.mxu1 %v2479_v56  ;;  %3012 = vmatprep.subr.bf16.mxu0 %v2481_v57  ;;  %v2559_v56 = vld [vmem:[#allocation5 + $0x368] sm:$0xff]  ;;  %v2561_v57 = vld [vmem:[#allocation5 + $0x378] sm:$0xff] }
0x12b3   :  { %2927 = vmatpush1.bf16.msra.mxu1 %v2478_v58  ;;  %3013 = vmatpush1.bf16.msra.mxu0 %v2480_v59  ;;  %v2558_v58 = vld [vmem:[#allocation5 + $0x360] sm:$0xff]  ;;  %v2560_v59 = vld [vmem:[#allocation5 + $0x370] sm:$0xff] }
0x12b4   :  { %2928 = vmatprep.subr.bf16.mxu1 %v2487_v43  ;;  %3014 = vmatprep.subr.bf16.mxu0 %v2489_v60  ;;  %v2567_v43 = vld [vmem:[#allocation5 + $0x3a8] sm:$0xff]  ;;  %v2569_v60 = vld [vmem:[#allocation5 + $0x3b8] sm:$0xff] }
0x12b7   :  { %2929 = vmatpush1.bf16.msra.mxu1 %v2486_v34  ;;  %3015 = vmatpush1.bf16.msra.mxu0 %v2488_v61  ;;  %v2566_v34 = vld [vmem:[#allocation5 + $0x3a0] sm:$0xff]  ;;  %v2568_v61 = vld [vmem:[#allocation5 + $0x3b0] sm:$0xff] }
0x12b8   :  { %2930 = vmatprep.subr.bf16.mxu1 %v2495_v62  ;;  %3016 = vmatprep.subr.bf16.mxu0 %v2497_v63  ;;  %v2575_v62 = vld [vmem:[#allocation5 + $0x3e8] sm:$0xff]  ;;  %v2577_v63 = vld [vmem:[#allocation5 + $0x3f8] sm:$0xff] }
0x12bb   :  { %2931 = vmatpush1.bf16.msra.mxu1 %v2494_v5  ;;  %3017 = vmatpush1.bf16.msra.mxu0 %v2496_v4  ;;  %v2574_v5 = vld [vmem:[#allocation5 + $0x3e0] sm:$0xff]  ;;  %v2576_v4 = vld [vmem:[#allocation5 + $0x3f0] sm:$0xff] }
0x12bc   :  { %2932 = vmatprep.subr.bf16.mxu1 %v2503_v3  ;;  %3018 = vmatprep.subr.bf16.mxu0 %v2505_v6  ;;  %v2583_v3 = vld [vmem:[#allocation5 + $0x428] sm:$0xff]  ;;  %v2585_v6 = vld [vmem:[#allocation5 + $0x438] sm:$0xff] }
0x12bf   :  { %2933 = vmatpush1.bf16.msra.mxu1 %v2502_v7  ;;  %3019 = vmatpush1.bf16.msra.mxu0 %v2504_v30  ;;  %v2582_v7 = vld [vmem:[#allocation5 + $0x420] sm:$0xff]  ;;  %v2584_v30 = vld [vmem:[#allocation5 + $0x430] sm:$0xff] }
0x12c0   :  { %2934 = vmatprep.subr.bf16.mxu1 %v2511_v9  ;;  %3020 = vmatprep.subr.bf16.mxu0 %v2513_v10  ;;  %v2591_v9 = vld [vmem:[#allocation5 + $0x468] sm:$0xff]  ;;  %v2593_v10 = vld [vmem:[#allocation5 + $0x478] sm:$0xff] }
0x12c3   :  { %2935 = vmatpush1.bf16.msra.mxu1 %v2510_v12  ;;  %3021 = vmatpush1.bf16.msra.mxu0 %v2512_v15  ;;  %v2590_v12 = vld [vmem:[#allocation5 + $0x460] sm:$0xff]  ;;  %v2592_v15 = vld [vmem:[#allocation5 + $0x470] sm:$0xff] }
0x12c4   :  { %2936 = vmatprep.subr.bf16.mxu1 %v2519_v23  ;;  %3022 = vmatprep.subr.bf16.mxu0 %v2521_v24  ;;  %v2599_v23 = vld [vmem:[#allocation5 + $0x4a8] sm:$0xff]  ;;  %v2601_v24 = vld [vmem:[#allocation5 + $0x4b8] sm:$0xff] }
0x12c7   :  { %2937 = vmatpush1.bf16.msra.mxu1 %v2518_v35  ;;  %3023 = vmatpush1.bf16.msra.mxu0 %v2520_v36  ;;  %v2598_v35 = vld [vmem:[#allocation5 + $0x4a0] sm:$0xff]  ;;  %v2600_v36 = vld [vmem:[#allocation5 + $0x4b0] sm:$0xff] }
0x12c8   :  { %2938 = vmatprep.subr.bf16.mxu1 %v2527_v37  ;;  %3024 = vmatprep.subr.bf16.mxu0 %v2529_v16  ;;  %v2607_v37 = vld [vmem:[#allocation5 + $0x4e8] sm:$0xff]  ;;  %v2606_v16 = vld [vmem:[#allocation5 + $0x4e0] sm:$0xff] }
0x12cb   :  { %2939 = vmatpush1.bf16.msra.mxu1 %v2526_v19  ;;  %3025 = vmatpush1.bf16.msra.mxu0 %v2528_v38  ;;  %v2608_v19 = vld [vmem:[#allocation5 + $0x4f0] sm:$0xff]  ;;  %v2615_v38 = vld [vmem:[#allocation5 + $0x528] sm:$0xff] }
0x12cc   :  { %2940 = vmatprep.subr.bf16.mxu1 %v2535_v42  ;;  %3026 = vmatprep.subr.bf16.mxu0 %v2537_v45  ;;  %v2617_v42 = vld [vmem:[#allocation5 + $0x538] sm:$0xff]  ;;  %v2616_v45 = vld [vmem:[#allocation5 + $0x530] sm:$0xff] }
0x12cf   :  { %2941 = vmatpush1.bf16.msra.mxu1 %v2534_v55  ;;  %3027 = vmatpush1.bf16.msra.mxu0 %v2536_v40  ;;  %v2623_v55 = vld [vmem:[#allocation5 + $0x568] sm:$0xff]  ;;  %v2625_v40 = vld [vmem:[#allocation5 + $0x578] sm:$0xff] }
0x12d0   :  { %2942 = vmatprep.subr.bf16.mxu1 %v2543_v41  ;;  %3028 = vmatprep.subr.bf16.mxu0 %v2545_v46  ;;  %v2622_v41 = vld [vmem:[#allocation5 + $0x560] sm:$0xff]  ;;  %v2624_v46 = vld [vmem:[#allocation5 + $0x570] sm:$0xff] }
0x12d3   :  { %2943 = vmatpush1.bf16.msra.mxu1 %v2542_v48  ;;  %3029 = vmatpush1.bf16.msra.mxu0 %v2544_v49  ;;  %v2631_v48 = vld [vmem:[#allocation5 + $0x5a8] sm:$0xff]  ;;  %v2633_v49 = vld [vmem:[#allocation5 + $0x5b8] sm:$0xff] }
0x12d4   :  { %2944 = vmatprep.subr.bf16.mxu1 %v2551_v50  ;;  %3030 = vmatprep.subr.bf16.mxu0 %v2553_v51  ;;  %v2630_v50 = vld [vmem:[#allocation5 + $0x5a0] sm:$0xff]  ;;  %v2632_v51 = vld [vmem:[#allocation5 + $0x5b0] sm:$0xff] }
0x12d7   :  { %2945 = vmatpush1.bf16.msra.mxu1 %v2550_v53  ;;  %3031 = vmatpush1.bf16.msra.mxu0 %v2552_v54  ;;  %v2639_v53 = vld [vmem:[#allocation5 + $0x5e8] sm:$0xff]  ;;  %v2641_v54 = vld [vmem:[#allocation5 + $0x5f8] sm:$0xff] }
0x12d8   :  { %2946 = vmatprep.subr.bf16.mxu1 %v2559_v56  ;;  %3032 = vmatprep.subr.bf16.mxu0 %v2561_v57  ;;  %v2638_v56 = vld [vmem:[#allocation5 + $0x5e0] sm:$0xff]  ;;  %v2640_v57 = vld [vmem:[#allocation5 + $0x5f0] sm:$0xff] }
0x12db   :  { %2947 = vmatpush1.bf16.msra.mxu1 %v2558_v58  ;;  %3033 = vmatpush1.bf16.msra.mxu0 %v2560_v59  ;;  %v2647_v58 = vld [vmem:[#allocation5 + $0x628] sm:$0xff]  ;;  %v2649_v59 = vld [vmem:[#allocation5 + $0x638] sm:$0xff] }
0x12dc   :  { %2948 = vmatprep.subr.bf16.mxu1 %v2567_v43  ;;  %3034 = vmatprep.subr.bf16.mxu0 %v2569_v60  ;;  %v2646_v43 = vld [vmem:[#allocation5 + $0x620] sm:$0xff]  ;;  %v2648_v60 = vld [vmem:[#allocation5 + $0x630] sm:$0xff] }
0x12df   :  { %2949 = vmatpush1.bf16.msra.mxu1 %v2566_v34  ;;  %3035 = vmatpush1.bf16.msra.mxu0 %v2568_v61  ;;  %v2655_v34 = vld [vmem:[#allocation5 + $0x668] sm:$0xff]  ;;  %v2657_v61 = vld [vmem:[#allocation5 + $0x678] sm:$0xff] }
0x12e0   :  { %2950 = vmatprep.subr.bf16.mxu1 %v2575_v62  ;;  %3036 = vmatprep.subr.bf16.mxu0 %v2577_v63  ;;  %v2654_v62 = vld [vmem:[#allocation5 + $0x660] sm:$0xff]  ;;  %v2656_v63 = vld [vmem:[#allocation5 + $0x670] sm:$0xff] }
0x12e3   :  { %2951 = vmatpush1.bf16.msra.mxu1 %v2574_v5  ;;  %3037 = vmatpush1.bf16.msra.mxu0 %v2576_v4  ;;  %v2663_v5 = vld [vmem:[#allocation5 + $0x6a8] sm:$0xff]  ;;  %v2665_v4 = vld [vmem:[#allocation5 + $0x6b8] sm:$0xff] }
0x12e4   :  { %2963 = vmatprep.subr.bf16.mxu1 %v2583_v3  ;;  %3049 = vmatprep.subr.bf16.mxu0 %v2585_v6  ;;  %v2662_v3 = vld [vmem:[#allocation5 + $0x6a0] sm:$0xff]  ;;  %v2664_v6 = vld [vmem:[#allocation5 + $0x6b0] sm:$0xff] }
0x12e6   :  { %2953 = vmatmul.mubr.bf16.vlgmr.msra.gmra.mrb[36].mxu1 %v5335_v47  ;;  %3039 = vmatmul.mubr.bf16.vlgmr.msra.gmra.mrb[28].mxu0 %v5335_v47  ;;  %v2609_v47 = vld [vmem:[#allocation5 + $0x4f8] sm:$0xff] }
0x12e7   :  { %2964 = vmatpush1.bf16.msra.mxu1 %v2582_v7  ;;  %3050 = vmatpush1.bf16.msra.mxu0 %v2584_v30  ;;  %v2671_v7 = vld [vmem:[#allocation5 + $0x6e8] sm:$0xff]  ;;  %v2673_v30 = vld [vmem:[#allocation5 + $0x6f8] sm:$0xff] }
0x12e8   :  { %2965 = vmatprep.subr.bf16.mxu1 %v2591_v9  ;;  %3051 = vmatprep.subr.bf16.mxu0 %v2593_v10  ;;  %v2670_v9 = vld [vmem:[#allocation5 + $0x6e0] sm:$0xff]  ;;  %v2672_v10 = vld [vmem:[#allocation5 + $0x6f0] sm:$0xff] }
0x12e9   :  { %2995 = vmatprep.mubr.bf16.mxu1 %v5341_v0  ;;  %3081 = vmatprep.mubr.bf16.mxu0 %v5341_v0  ;;  %v2614_v0 = vld [vmem:[#allocation5 + $0x520] sm:$0xff] }
0x12eb   :  { %2966 = vmatpush1.bf16.msra.mxu1 %v2590_v12  ;;  %3052 = vmatpush1.bf16.msra.mxu0 %v2592_v15  ;;  %v2679_v12 = vld [vmem:[#allocation5 + $0x728] sm:$0xff]  ;;  %v2681_v15 = vld [vmem:[#allocation5 + $0x738] sm:$0xff] }
0x12ec   :  { %2967 = vmatprep.subr.bf16.mxu1 %v2599_v23  ;;  %3053 = vmatprep.subr.bf16.mxu0 %v2601_v24  ;;  %v2678_v23 = vld [vmem:[#allocation5 + $0x720] sm:$0xff]  ;;  %v2680_v24 = vld [vmem:[#allocation5 + $0x730] sm:$0xff] }
0x12ef   :  { %2968 = vmatpush1.bf16.msra.mxu1 %v2598_v35  ;;  %3054 = vmatpush1.bf16.msra.mxu0 %v2600_v36  ;;  %v2687_v35 = vld [vmem:[#allocation5 + $0x768] sm:$0xff]  ;;  %v2689_v36 = vld [vmem:[#allocation5 + $0x778] sm:$0xff] }
0x12f0   :  { %2969 = vmatprep.subr.bf16.mxu1 %v2607_v37  ;;  %3055 = vmatprep.subr.bf16.mxu0 %v2609_v47  ;;  %v2686_v37 = vld [vmem:[#allocation5 + $0x760] sm:$0xff]  ;;  %v2688_v47 = vld [vmem:[#allocation5 + $0x770] sm:$0xff] }
0x12f3   :  { %2970 = vmatpush1.bf16.msra.mxu1 %v2606_v16  ;;  %3056 = vmatpush1.bf16.msra.mxu0 %v2608_v19  ;;  %v2695_v16 = vld [vmem:[#allocation5 + $0x7a8] sm:$0xff]  ;;  %v2697_v19 = vld [vmem:[#allocation5 + $0x7b8] sm:$0xff] }
0x12f4   :  { %2971 = vmatprep.subr.bf16.mxu1 %v2615_v38  ;;  %3057 = vmatprep.subr.bf16.mxu0 %v2617_v42  ;;  %v2694_v38 = vld [vmem:[#allocation5 + $0x7a0] sm:$0xff]  ;;  %v2696_v42 = vld [vmem:[#allocation5 + $0x7b0] sm:$0xff] }
0x12f7   :  { %2972 = vmatpush1.bf16.msra.mxu1 %v2614_v0  ;;  %3058 = vmatpush1.bf16.msra.mxu0 %v2616_v45  ;;  %v2703_v0 = vld [vmem:[#allocation5 + $0x7e8] sm:$0xff]  ;;  %v2705_v45 = vld [vmem:[#allocation5 + $0x7f8] sm:$0xff] }
0x12f8   :  { %2973 = vmatprep.subr.bf16.mxu1 %v2623_v55  ;;  %3059 = vmatprep.subr.bf16.mxu0 %v2625_v40  ;;  %v2702_v55 = vld [vmem:[#allocation5 + $0x7e0] sm:$0xff]  ;;  %v2704_v40 = vld [vmem:[#allocation5 + $0x7f0] sm:$0xff] }
0x12fb   :  { %2974 = vmatpush1.bf16.msra.mxu1 %v2622_v41  ;;  %3060 = vmatpush1.bf16.msra.mxu0 %v2624_v46 }
0x12fc   :  { %2975 = vmatprep.subr.bf16.mxu1 %v2631_v48  ;;  %3061 = vmatprep.subr.bf16.mxu0 %v2633_v49 }
0x12ff   :  { %2976 = vmatpush1.bf16.msra.mxu1 %v2630_v50  ;;  %3062 = vmatpush1.bf16.msra.mxu0 %v2632_v51 }
0x1300   :  { %2977 = vmatprep.subr.bf16.mxu1 %v2639_v53  ;;  %3063 = vmatprep.subr.bf16.mxu0 %v2641_v54 }
0x1303   :  { %2978 = vmatpush1.bf16.msra.mxu1 %v2638_v56  ;;  %3064 = vmatpush1.bf16.msra.mxu0 %v2640_v57  ;;  %v2706_v56 = vld [vmem:[%s5476_s14] sm:$0xff] }
0x1304   :  { %2979 = vmatprep.subr.bf16.mxu1 %v2647_v58  ;;  %3065 = vmatprep.subr.bf16.mxu0 %v2649_v59  ;;  %v2711_v57 = vrot.slane %v2706_v56, %v5153_v14  ;;  %v2719_v58 = vrot.slane %v2706_v56, %v5285_v1  ;;  %v2726_v59 = vsub.s32 4, %v5150_v13 }
0x1307   :  { %2980 = vmatpush1.bf16.msra.mxu1 %v2646_v43  ;;  %3066 = vmatpush1.bf16.msra.mxu0 %v2648_v60  ;;  %v2715_v43 = vrot.slane %v2706_v56, %v5159_v17  ;;  %v2730_v60 = vsub.s32 5, %v5150_v13 }
0x1308   :  { %2981 = vmatprep.subr.bf16.mxu1 %v2655_v34  ;;  %3067 = vmatprep.subr.bf16.mxu0 %v2657_v61  ;;  %v2738_v34 = vsub.s32 7, %v5150_v13 }
0x130b   :  { %2982 = vmatpush1.bf16.msra.mxu1 %v2654_v62  ;;  %3068 = vmatpush1.bf16.msra.mxu0 %v2656_v63  ;;  %v2727_v63 = vrot.slane %v2706_v56, %v2726_v59 }
0x130c   :  { %2983 = vmatprep.subr.bf16.mxu1 %v2663_v5  ;;  %3069 = vmatprep.subr.bf16.mxu0 %v2665_v4 }
0x130f   :  { %2984 = vmatpush1.bf16.msra.mxu1 %v2662_v3  ;;  %3070 = vmatpush1.bf16.msra.mxu0 %v2664_v6  ;;  %v2731_v3 = vrot.slane %v2706_v56, %v2730_v60  ;;  %v2739_v6 = vrot.slane %v2706_v56, %v2738_v34 }
0x1310   :  { %2985 = vmatprep.subr.bf16.mxu1 %v2671_v7  ;;  %3071 = vmatprep.subr.bf16.mxu0 %v2673_v30 }
0x1313   :  { %2986 = vmatpush1.bf16.msra.mxu1 %v2670_v9  ;;  %3072 = vmatpush1.bf16.msra.mxu0 %v2672_v10 }
0x1314   :  { %2987 = vmatprep.subr.bf16.mxu1 %v2679_v12  ;;  %3073 = vmatprep.subr.bf16.mxu0 %v2681_v15 }
0x1317   :  { %2988 = vmatpush1.bf16.msra.mxu1 %v2678_v23  ;;  %3074 = vmatpush1.bf16.msra.mxu0 %v2680_v24 }
0x1318   :  { %2989 = vmatprep.subr.bf16.mxu1 %v2687_v35  ;;  %3075 = vmatprep.subr.bf16.mxu0 %v2689_v36 }
0x131b   :  { %2990 = vmatpush1.bf16.msra.mxu1 %v2686_v37  ;;  %3076 = vmatpush1.bf16.msra.mxu0 %v2688_v47 }
0x131c   :  { %2991 = vmatprep.subr.bf16.mxu1 %v2695_v16  ;;  %3077 = vmatprep.subr.bf16.mxu0 %v2697_v19 }
0x131f   :  { %2992 = vmatpush1.bf16.msra.mxu1 %v2694_v38  ;;  %3078 = vmatpush1.bf16.msra.mxu0 %v2696_v42 }
0x1320   :  { %2993 = vmatprep.subr.bf16.mxu1 %v2703_v0  ;;  %3079 = vmatprep.subr.bf16.mxu0 %v2705_v45 }
0x1323   :  { %2994 = vmatpush1.bf16.msra.mxu1 %v2702_v55  ;;  %3080 = vmatpush1.bf16.msra.mxu0 %v2704_v40  ;;  %v2723_v40 = vrot.slane %v2706_v56, %v5291_v2 }
0x1326   :  { %2996 = vmatmul.mubr.bf16.vlgmr.msra.gmra.mrb[36].mxu1 %v5351_v39  ;;  %3082 = vmatmul.mubr.bf16.vlgmr.msra.gmra.mrb[28].mxu0 %v5351_v39  ;;  %v2734_v39 = vsub.s32 6, %v5150_v13 }
0x1328   :  { %v2735_v5 = vrot.slane %v2706_v56, %v2734_v39 }
0x1379   :  { %v2825_v41 = vpop.f32.mrb[32].mxu1  ;;  %v2911_v46 = vpop.f32.mrb[24].mxu0 }
0x137a   :  { %v2827_v48 = vpop.f32.mrb[33].mxu1  ;;  %v2913_v49 = vpop.f32.mrb[25].mxu0  ;;  %v4146_v61 = vadd.f32 %v2825_v41, %v2711_v57  ;;  %v4150_v62 = vadd.f32 %v2911_v46, %v2719_v58 }
0x137b   :  { %v2829_v50 = vpop.f32.mrb[34].mxu1  ;;  %v2915_v51 = vpop.f32.mrb[26].mxu0  ;;  %v4147_v4 = vadd.f32 %v2827_v48, %v2715_v43  ;;  %v4151_v39 = vadd.f32 %v2913_v49, %v2723_v40 }
0x137c   :  { %v2831_v53 = vpop.f32.mrb[35].mxu1  ;;  %v2917_v54 = vpop.f32.mrb[27].mxu0  ;;  %4380 = vtanh.f32 %v4146_v61  ;;  %v4148_v34 = vadd.f32 %v2829_v50, %v2711_v57 }
0x137d   :  { %4382 = vtanh.f32 %v4150_v62  ;;  %v4152_v62 = vadd.f32 %v2915_v51, %v2719_v58  ;;  %v4153_v56 = vadd.f32 %v2917_v54, %v2723_v40 }
0x137e   :  { %4384 = vtanh.f32 %v4147_v4 }
0x1386   :  { %v4381_v60 = vpop.eup %4380 }
0x1387   :  { %v4383_v61 = vpop.eup %4382 }
0x13f9   :  { %v2997_v7 = vpop.f32.mrb[36].mxu1  ;;  %v3083_v30 = vpop.f32.mrb[28].mxu0 }
0x13fa   :  { %v4154_v9 = vadd.f32 %v2997_v7, %v2727_v63  ;;  %v4158_v10 = vadd.f32 %v3083_v30, %v2735_v5  ;;  %v2999_v12 = vpop.f32.mrb[37].mxu1  ;;  %v3085_v15 = vpop.f32.mrb[29].mxu0 }
0x13fb   :  { %v4155_v23 = vadd.f32 %v2999_v12, %v2731_v3  ;;  %v4159_v24 = vadd.f32 %v3085_v15, %v2739_v6  ;;  %v3001_v35 = vpop.f32.mrb[38].mxu1  ;;  %v3087_v13 = vpop.f32.mrb[30].mxu0 }
0x13fc   :  { %v3945_v36 = vmul.f32 -1.442695, %v4154_v9  ;;  %v3947_v37 = vmul.f32 -1.442695, %v4158_v10  ;;  %v4156_v47 = vadd.f32 %v3001_v35, %v2727_v63  ;;  %v4160_v16 = vadd.f32 %v3087_v13, %v2735_v5  ;;  %v3003_v19 = vpop.f32.mrb[39].mxu1  ;;  %v3089_v38 = vpop.f32.mrb[31].mxu0 }
0x13fd   :  { %v3946_v42 = vmul.f32 -1.442695, %v4155_v23  ;;  %v3948_v0 = vmul.f32 -1.442695, %v4159_v24  ;;  %v4157_v45 = vadd.f32 %v3003_v19, %v2731_v3  ;;  %v4161_v55 = vadd.f32 %v3089_v38, %v2739_v6  ;;  %v4385_v63 = vpop.eup %4384  ;;  %v3156_v24 = vld [vmem:[%s5547_s10] sm:$0xf] }
0x13fe   :  { %4386 = vpow2.f32 %v3945_v36  ;;  %v3949_v41 = vmul.f32 -1.442695, %v4156_v47  ;;  %v3951_v46 = vmul.f32 -1.442695, %v4160_v16  ;;  %v4149_v5 = vadd.f32 %v2831_v53, %v2715_v43 }
0x13ff   :  { %4388 = vpow2.f32 %v3947_v37  ;;  %v3950_v48 = vmul.f32 -1.442695, %v4157_v45  ;;  %v3952_v59 = vmul.f32 -1.442695, %v4161_v55  ;;  %v3161_v37 = vrot.slane %v3156_v24, %v5153_v14 }
0x1400   :  { %4390 = vpow2.f32 %v3946_v42  ;;  %v3165_v38 = vrot.slane %v3156_v24, %v5159_v17  ;;  %v3169_v40 = vrot.slane %v3156_v24, %v5285_v1 }
0x1401   :  { %4392 = vpow2.f32 %v3948_v0 }
0x1402   :  { %4394 = vpow2.f32 %v3949_v41 }
0x1403   :  { %4396 = vpow2.f32 %v3951_v46 }
0x1404   :  { %4398 = vpow2.f32 %v3950_v48 }
0x1405   :  { %4400 = vpow2.f32 %v3952_v59 }
0x1406   :  { %4402 = vtanh.f32 %v4151_v39  ;;  %v3173_v39 = vrot.slane %v3156_v24, %v5291_v2 }
0x1407   :  { %4404 = vtanh.f32 %v4148_v34 }
0x1408   :  { %v4387_v4 = vpop.eup %4386  ;;  %4406 = vtanh.f32 %v4152_v62 }
0x1409   :  { %v4389_v3 = vpop.eup %4388  ;;  %4408 = vtanh.f32 %v4149_v5  ;;  %v3124_v6 = vadd.f32 1.0, %v4387_v4 }
0x140a   :  { %v4391_v7 = vpop.eup %4390  ;;  %4410 = vtanh.f32 %v4153_v56  ;;  %v3126_v49 = vadd.f32 1.0, %v4389_v3 }
0x140b   :  { %v4393_v30 = vpop.eup %4392  ;;  %4412 = vrcp.f32 %v3124_v6  ;;  %v3125_v50 = vadd.f32 1.0, %v4391_v7 }
0x140c   :  { %v4395_v57 = vpop.eup %4394  ;;  %4414 = vrcp.f32 %v3126_v49  ;;  %v3127_v51 = vadd.f32 1.0, %v4393_v30 }
0x140d   :  { %v4397_v58 = vpop.eup %4396  ;;  %4416 = vrcp.f32 %v3125_v50  ;;  %v3128_v53 = vadd.f32 1.0, %v4395_v57 }
0x140e   :  { %v4399_v43 = vpop.eup %4398  ;;  %4418 = vrcp.f32 %v3127_v51  ;;  %v3130_v54 = vadd.f32 1.0, %v4397_v58 }
0x140f   :  { %v4401_v9 = vpop.eup %4400  ;;  %4420 = vrcp.f32 %v3128_v53  ;;  %v3129_v10 = vadd.f32 1.0, %v4399_v43 }
0x1410   :  { %v4403_v12 = vpop.eup %4402  ;;  %4422 = vrcp.f32 %v3130_v54  ;;  %v3131_v15 = vadd.f32 1.0, %v4401_v9  ;;  %v3953_v54 = vld [vmem:[#allocation10] ss:$0 sm:$0xff] }
0x1411   :  { %v4405_v23 = vpop.eup %4404  ;;  %4424 = vrcp.f32 %v3129_v10 }
0x1412   :  { %v4407_v35 = vpop.eup %4406  ;;  %4426 = vrcp.f32 %v3131_v15 }
0x1413   :  { %v4409_v13 = vpop.eup %4408 }
0x1414   :  { %v4411_v36 = vpop.eup %4410 }
0x1415   :  { %v4413_v47 = vpop.eup %4412 }
0x1416   :  { %v4415_v16 = vpop.eup %4414  ;;  %v3148_v19 = vmul.f32 %v4413_v47, %v4381_v60 }
0x1417   :  { %v4417_v42 = vpop.eup %4416  ;;  %v3150_v0 = vmul.f32 %v4415_v16, %v4383_v61 }
0x1418   :  { %v4419_v45 = vpop.eup %4418  ;;  %v3149_v55 = vmul.f32 %v4417_v42, %v4385_v63  ;;  %v3178_v41 = vmul.f32 %v3161_v37, %v3148_v19 }
0x1419   :  { %v4421_v46 = vpop.eup %4420  ;;  %v3151_v48 = vmul.f32 %v4419_v45, %v4403_v12  ;;  %v3180_v60 = vmul.f32 %v3169_v40, %v3150_v0 }
0x141a   :  { %v4423_v59 = vpop.eup %4422  ;;  %v3179_v34 = vmul.f32 %v3165_v38, %v3149_v55  ;;  %v3152_v62 = vmul.f32 %v4421_v46, %v4405_v23 }
0x141b   :  { %v4425_v5 = vpop.eup %4424  ;;  %v3154_v56 = vmul.f32 %v4423_v59, %v4407_v35  ;;  %v3181_v49 = vmul.f32 %v3173_v39, %v3151_v48 }
0x141c   :  { %v4427_v4 = vpop.eup %4426  ;;  %v3186_v3 = vadd.f32 %v3179_v34, %v3178_v41  ;;  %v3153_v6 = vmul.f32 %v4425_v5, %v4409_v13  ;;  %v3182_v7 = vmul.f32 %v3161_v37, %v3152_v62 }
0x141d   :  { %v3155_v61 = vmul.f32 %v4427_v4, %v4411_v36  ;;  %v3184_v57 = vmul.f32 %v3169_v40, %v3154_v56 }
0x141e   :  { %v3187_v63 = vadd.f32 %v3186_v3, %v3180_v60  ;;  %v3183_v30 = vmul.f32 %v3165_v38, %v3153_v6 }
0x141f   :  { %v3185_v58 = vmul.f32 %v3173_v39, %v3155_v61 }
0x1420   :  { %v3188_v50 = vadd.f32 %v3187_v63, %v3181_v49  ;;  %v3191_v51 = vadd.f32 %v3183_v30, %v3182_v7 }
0x1422   :  { %3189 = vadd.xlane.f32.xlu0 %v3188_v50  ;;  %v3192_v53 = vadd.f32 %v3191_v51, %v3184_v57 }
0x1424   :  { %v3193_v43 = vadd.f32 %v3192_v53, %v3185_v58 }
0x1426   :  { %3194 = vadd.xlane.f32.xlu0 %v3193_v43 }
0x14af   :  { %v3190_v9 = vpop.xlane.xlu0 %3189 }
0x14b0   :  { %v3203_v10 = vadd.f32 %v3953_v54, %v3190_v9 }
0x14b2   :  { %3207 = vperm.xlu0 %4379, %v3203_v10   ;;  %v3218_v23 = vsel %vm3217_vm7, %v3203_v10, -inf }
0x14b3   :  { %v3195_v12 = vpop.xlane.xlu0 %3194 }
0x14b4   :  { %v3204_v15 = vadd.f32 %v3953_v54, %v3195_v12 }
0x14b6   :  { %v3219_v24 = vsel %vm3217_vm7, %v3204_v15, -inf }
0x14b7   :  { %v3220_v35 = vmax.f32 %v3218_v23, %v3219_v24 }
0x14b9   :  { %v3221_v13 = vrot.slane %v3220_v35, 4 }
0x14bb   :  { %v3222_v36 = vmax.f32 %v3220_v35, %v3221_v13 }
0x14bd   :  { %v3223_v37 = vrot.slane %v3222_v36, 2 }
0x14bf   :  { %v3224_v47 = vmax.f32 %v3222_v36, %v3223_v37 }
0x14c1   :  { %v3225_v16 = vrot.slane %v3224_v47, 1 }
0x14c3   :  { %v3226_v19 = vmax.f32 %v3224_v47, %v3225_v16 }
0x14c5   :  { %v3227_v38 = vsub.f32 %v3203_v10, %v3226_v19  ;;  %v3228_v42 = vsub.f32 %v3204_v15, %v3226_v19 }
0x14c7   :  { %v3229_v0 = vmul.f32 1.442695, %v3227_v38  ;;  %v3231_v45 = vmul.f32 1.442695, %v3228_v42 }
0x14c9   :  { %4428 = vpow2.f32 %v3229_v0 }
0x14ca   :  { %4430 = vpow2.f32 %v3231_v45 }
0x14d3   :  { %v4429_v55 = vpop.eup %4428 }
0x14d4   :  { %v4431_v40 = vpop.eup %4430  ;;  %v3233_v41 = vsel %vm3217_vm7, %v4429_v55, 0.0 }
0x14d5   :  { %v3234_v46 = vsel %vm3217_vm7, %v4431_v40, 0.0 }
0x14d6   :  { %v3235_v48 = vadd.f32 %v3234_v46, %v3233_v41 }
0x14d8   :  { %v3236_v59 = vrot.slane %v3235_v48, 4 }
0x14da   :  { %v3237_v39 = vadd.f32 %v3236_v59, %v3235_v48 }
0x14dc   :  { %v3238_v34 = vrot.slane %v3237_v39, 2 }
0x14de   :  { %v3239_v62 = vadd.f32 %v3238_v34, %v3237_v39 }
0x14e0   :  { %v3240_v5 = vrot.slane %v3239_v62, 1 }
0x14e2   :  { %v3241_v56 = vadd.f32 %v3240_v5, %v3239_v62 }
0x14e4   :  { %4432 = vrcp.f32 %v3241_v56 }
0x14ee   :  { %v4433_v4 = vpop.eup %4432 }
0x14ef   :  { %v3243_v60 = vmul.f32 %v4433_v4, %v4429_v55  ;;  %v3244_v3 = vmul.f32 %v4433_v4, %v4431_v40 }
0x14f1   :  { %3247 = vperm.xlu1 %4378, %v3243_v60  }
0x14f5   :  { %3252 = vperm.xlu1 %4378, %v3244_v3  }
0x14f9   :  { %3212 = vperm.xlu1 %4378, %v3204_v15  }
0x1531   :  { %v3208_v6 = vpop.permute.xlu0 %3207 }
0x1532   :  { %3215 = vst [vmem:[#allocation25] sm:$0xff] %v3208_v6 }
0x1570   :  { %v3248_v7 = vpop.permute.xlu1 %3247 }
0x1571   :  { %v3255_v61 = vmul.f32 %v3248_v7, %v2435_v18  ;;  %v3256_v49 = vmul.f32 %v3248_v7, %v2436_v44  ;;  %v3257_v63 = vmul.f32 %v3248_v7, %v2437_v20  ;;  %v3258_v30 = vmul.f32 %v3248_v7, %v2438_v25 }
0x1574   :  { %v3253_v50 = vpop.permute.xlu1 %3252 }
0x1575   :  { %v3259_v57 = vmul.f32 %v3253_v50, %v2439_v29  ;;  %v3260_v51 = vmul.f32 %v3253_v50, %v2440_v32  ;;  %v3261_v28 = vmul.f32 %v3253_v50, %v2441_v31  ;;  %v3262_v11 = vmul.f32 %v3253_v50, %v2442_v33 }
0x1577   :  { %v3263_v18 = vadd.f32 %v3259_v57, %v3255_v61  ;;  %v3270_v44 = vadd.f32 %v3260_v51, %v3256_v49  ;;  %v3277_v8 = vadd.f32 %v3261_v28, %v3257_v63  ;;  %v3284_v20 = vadd.f32 %v3262_v11, %v3258_v30 }
0x1578   :  { %v3213_v58 = vpop.permute.xlu1 %3212 }
0x1579   :  { %v3264_v52 = vrot.slane %v3263_v18, 4  ;;  %v3271_v25 = vrot.slane %v3270_v44, 4  ;;  %v3278_v53 = vrot.slane %v3277_v8, 4  ;;  %v3285_v43 = vrot.slane %v3284_v20, 4  ;;  %3216 = vst [vmem:[#allocation25 + $0x8] sm:$0xff] %v3213_v58 }
0x157b   :  { %v3265_v21 = vadd.f32 %v3264_v52, %v3263_v18  ;;  %v3272_v29 = vadd.f32 %v3271_v25, %v3270_v44  ;;  %v3279_v26 = vadd.f32 %v3278_v53, %v3277_v8  ;;  %v3286_v32 = vadd.f32 %v3285_v43, %v3284_v20 }
0x157d   :  { %v3266_v54 = vrot.slane %v3265_v21, 2  ;;  %v3273_v22 = vrot.slane %v3272_v29, 2  ;;  %v3280_v31 = vrot.slane %v3279_v26, 2  ;;  %v3287_v9 = vrot.slane %v3286_v32, 2 }
0x157f   :  { %v3267_v27 = vadd.f32 %v3266_v54, %v3265_v21  ;;  %v3274_v33 = vadd.f32 %v3273_v22, %v3272_v29  ;;  %v3281_v10 = vadd.f32 %v3280_v31, %v3279_v26  ;;  %v3288_v12 = vadd.f32 %v3287_v9, %v3286_v32 }
0x1581   :  { %v3268_v15 = vrot.slane %v3267_v27, 1  ;;  %v3275_v23 = vrot.slane %v3274_v33, 1  ;;  %v3282_v24 = vrot.slane %v3281_v10, 1  ;;  %v3289_v35 = vrot.slane %v3288_v12, 1 }
0x1583   :  { %v5401_v13 = vadd.f32 %v3268_v15, %v3267_v27  ;;  %v3276_v36 = vadd.f32 %v3275_v23, %v3274_v33  ;;  %v5403_v37 = vadd.f32 %v3282_v24, %v3281_v10  ;;  %v5405_v47 = vadd.f32 %v3289_v35, %v3288_v12 }
0x1584   :  { %4713 = dma.done.wait [#allocation9 + $0x2], 16384 }
0x1585   :  { %4714 = vsyncadd [#allocation9 + $0x2], 4294950912  ;;  %v3294_v16 = vpack.c.bf16 %v3276_v36, %v3276_v36  ;;  %v3298_v19 = vld [vmem:[#allocation6 + $0x8] sm:$0xff]  ;;  %v3300_v38 = vld [vmem:[#allocation6 + $0x18] sm:$0xff]  ;;  %s5548_s29 = sld [smem:[#allocation73_spill]] }
0x1586   :  { %v3297_v42 = vld [vmem:[#allocation6] sm:$0xff]  ;;  %3447 = vmatprep.subr.bf16.mxu1 %v3298_v19  ;;  %3529 = vmatprep.subr.bf16.mxu0 %v3300_v38  ;;  %v3299_v0 = vld [vmem:[#allocation6 + $0x10] sm:$0xff]  ;;  %v3302_v45 = vld [vmem:[#allocation6 + $0x28] sm:$0xff] }
0x1587   :  { %3479 = vmatprep.mubr.bf16.mxu1 %v3294_v16  ;;  %3561 = vmatprep.mubr.bf16.mxu0 %v3294_v16  ;;  %v3304_v55 = vld [vmem:[#allocation6 + $0x38] sm:$0xff]  ;;  %v3301_v40 = vld [vmem:[#allocation6 + $0x20] sm:$0xff]  ;;  %v3303_v41 = vld [vmem:[#allocation6 + $0x30] sm:$0xff] }
0x1588   :  { %3448 = vmatpush1.bf16.msra.mxu1 %v3297_v42  ;;  %3530 = vmatpush1.bf16.msra.mxu0 %v3299_v0  ;;  %v3306_v46 = vld [vmem:[#allocation6 + $0x48] sm:$0xff]  ;;  %v3308_v48 = vld [vmem:[#allocation6 + $0x58] sm:$0xff]  ;;  %v3305_v59 = vld [vmem:[#allocation6 + $0x40] sm:$0xff] }
0x1589   :  { %3449 = vmatprep.subr.bf16.mxu1 %v3302_v45  ;;  %3531 = vmatprep.subr.bf16.mxu0 %v3304_v55  ;;  %v3307_v39 = vld [vmem:[#allocation6 + $0x50] sm:$0xff]  ;;  %v3310_v34 = vld [vmem:[#allocation6 + $0x68] sm:$0xff]  ;;  %v3312_v62 = vld [vmem:[#allocation6 + $0x78] sm:$0xff] }
0x158a   :  { %v3309_v5 = vld [vmem:[#allocation6 + $0x60] sm:$0xff]  ;;  %v3311_v56 = vld [vmem:[#allocation6 + $0x70] sm:$0xff]  ;;  %v3314_v4 = vld [vmem:[#allocation6 + $0x88] sm:$0xff] }
0x158b   :  { %v3316_v60 = vld [vmem:[#allocation6 + $0x98] sm:$0xff]  ;;  %v3313_v3 = vld [vmem:[#allocation6 + $0x80] sm:$0xff]  ;;  %v3315_v6 = vld [vmem:[#allocation6 + $0x90] sm:$0xff] }
0x158c   :  { %3450 = vmatpush1.bf16.msra.mxu1 %v3301_v40  ;;  %3532 = vmatpush1.bf16.msra.mxu0 %v3303_v41  ;;  %v3318_v7 = vld [vmem:[#allocation6 + $0xa8] sm:$0xff]  ;;  %v3320_v61 = vld [vmem:[#allocation6 + $0xb8] sm:$0xff]  ;;  %v3317_v49 = vld [vmem:[#allocation6 + $0xa0] sm:$0xff] }
0x158d   :  { %3451 = vmatprep.subr.bf16.mxu1 %v3306_v46  ;;  %3533 = vmatprep.subr.bf16.mxu0 %v3308_v48  ;;  %v3319_v63 = vld [vmem:[#allocation6 + $0xb0] sm:$0xff]  ;;  %v3322_v30 = vld [vmem:[#allocation6 + $0xc8] sm:$0xff]  ;;  %v3324_v50 = vld [vmem:[#allocation6 + $0xd8] sm:$0xff]  ;;  %v3293_v48 = vpack.c.bf16 %v5401_v13, %v5401_v13 }
0x158e   :  { %v3321_v57 = vld [vmem:[#allocation6 + $0xc0] sm:$0xff]  ;;  %v3323_v51 = vld [vmem:[#allocation6 + $0xd0] sm:$0xff]  ;;  %v3326_v28 = vld [vmem:[#allocation6 + $0xe8] sm:$0xff] }
0x158f   :  { %v3328_v11 = vld [vmem:[#allocation6 + $0xf8] sm:$0xff]  ;;  %v3325_v18 = vld [vmem:[#allocation6 + $0xe0] sm:$0xff]  ;;  %v3327_v44 = vld [vmem:[#allocation6 + $0xf0] sm:$0xff] }
0x1590   :  { %3452 = vmatpush1.bf16.msra.mxu1 %v3305_v59  ;;  %3534 = vmatpush1.bf16.msra.mxu0 %v3307_v39  ;;  %v3330_v8 = vld [vmem:[#allocation6 + $0x108] sm:$0xff]  ;;  %v3332_v20 = vld [vmem:[#allocation6 + $0x118] sm:$0xff]  ;;  %v3329_v58 = vld [vmem:[#allocation6 + $0x100] sm:$0xff] }
0x1591   :  { %3453 = vmatprep.subr.bf16.mxu1 %v3310_v34  ;;  %3535 = vmatprep.subr.bf16.mxu0 %v3312_v62  ;;  %v3331_v52 = vld [vmem:[#allocation6 + $0x110] sm:$0xff]  ;;  %v3334_v25 = vld [vmem:[#allocation6 + $0x128] sm:$0xff]  ;;  %v3336_v53 = vld [vmem:[#allocation6 + $0x138] sm:$0xff] }
0x1592   :  { %v3333_v43 = vld [vmem:[#allocation6 + $0x120] sm:$0xff]  ;;  %v3335_v21 = vld [vmem:[#allocation6 + $0x130] sm:$0xff]  ;;  %v3338_v29 = vld [vmem:[#allocation6 + $0x148] sm:$0xff] }
0x1593   :  { %v3340_v26 = vld [vmem:[#allocation6 + $0x158] sm:$0xff]  ;;  %v3337_v32 = vld [vmem:[#allocation6 + $0x140] sm:$0xff]  ;;  %v3339_v54 = vld [vmem:[#allocation6 + $0x150] sm:$0xff] }
0x1594   :  { %3454 = vmatpush1.bf16.msra.mxu1 %v3309_v5  ;;  %3536 = vmatpush1.bf16.msra.mxu0 %v3311_v56  ;;  %v3342_v22 = vld [vmem:[#allocation6 + $0x168] sm:$0xff]  ;;  %v3344_v31 = vld [vmem:[#allocation6 + $0x178] sm:$0xff]  ;;  %v3341_v9 = vld [vmem:[#allocation6 + $0x160] sm:$0xff]  ;;  %v3296_v5 = vpack.c.bf16 %v5405_v47, %v5405_v47 }
0x1595   :  { %3455 = vmatprep.subr.bf16.mxu1 %v3314_v4  ;;  %3537 = vmatprep.subr.bf16.mxu0 %v3316_v60  ;;  %v3343_v27 = vld [vmem:[#allocation6 + $0x170] sm:$0xff]  ;;  %v3346_v33 = vld [vmem:[#allocation6 + $0x188] sm:$0xff]  ;;  %v3348_v10 = vld [vmem:[#allocation6 + $0x198] sm:$0xff] }
0x1596   :  { %v3345_v12 = vld [vmem:[#allocation6 + $0x180] sm:$0xff]  ;;  %v3347_v15 = vld [vmem:[#allocation6 + $0x190] sm:$0xff]  ;;  %v3350_v23 = vld [vmem:[#allocation6 + $0x1a8] sm:$0xff] }
0x1597   :  { %v3352_v24 = vld [vmem:[#allocation6 + $0x1b8] sm:$0xff]  ;;  %v3349_v35 = vld [vmem:[#allocation6 + $0x1a0] sm:$0xff]  ;;  %v3351_v36 = vld [vmem:[#allocation6 + $0x1b0] sm:$0xff] }
0x1598   :  { %3456 = vmatpush1.bf16.msra.mxu1 %v3313_v3  ;;  %3538 = vmatpush1.bf16.msra.mxu0 %v3315_v6  ;;  %v3354_v16 = vld [vmem:[#allocation6 + $0x1c8] sm:$0xff]  ;;  %v3356_v19 = vld [vmem:[#allocation6 + $0x1d8] sm:$0xff]  ;;  %v3353_v38 = vld [vmem:[#allocation6 + $0x1c0] sm:$0xff] }
0x1599   :  { %3457 = vmatprep.subr.bf16.mxu1 %v3318_v7  ;;  %3539 = vmatprep.subr.bf16.mxu0 %v3320_v61  ;;  %v3355_v42 = vld [vmem:[#allocation6 + $0x1d0] sm:$0xff]  ;;  %v3358_v0 = vld [vmem:[#allocation6 + $0x1e8] sm:$0xff]  ;;  %v3360_v45 = vld [vmem:[#allocation6 + $0x1f8] sm:$0xff] }
0x159a   :  { %v3357_v55 = vld [vmem:[#allocation6 + $0x1e0] sm:$0xff]  ;;  %v3359_v40 = vld [vmem:[#allocation6 + $0x1f0] sm:$0xff]  ;;  %v3362_v41 = vld [vmem:[#allocation6 + $0x208] sm:$0xff] }
0x159b   :  { %v3364_v46 = vld [vmem:[#allocation6 + $0x218] sm:$0xff]  ;;  %v3361_v59 = vld [vmem:[#allocation6 + $0x200] sm:$0xff]  ;;  %v3363_v39 = vld [vmem:[#allocation6 + $0x210] sm:$0xff] }
0x159c   :  { %3458 = vmatpush1.bf16.msra.mxu1 %v3317_v49  ;;  %3540 = vmatpush1.bf16.msra.mxu0 %v3319_v63  ;;  %v3366_v34 = vld [vmem:[#allocation6 + $0x228] sm:$0xff]  ;;  %v3368_v62 = vld [vmem:[#allocation6 + $0x238] sm:$0xff]  ;;  %v3365_v56 = vld [vmem:[#allocation6 + $0x220] sm:$0xff] }
0x159d   :  { %3459 = vmatprep.subr.bf16.mxu1 %v3322_v30  ;;  %3541 = vmatprep.subr.bf16.mxu0 %v3324_v50  ;;  %v3367_v4 = vld [vmem:[#allocation6 + $0x230] sm:$0xff]  ;;  %v3370_v13 = vld [vmem:[#allocation6 + $0x248] sm:$0xff]  ;;  %v3372_v60 = vld [vmem:[#allocation6 + $0x258] sm:$0xff] }
0x159e   :  { %v3369_v3 = vld [vmem:[#allocation6 + $0x240] sm:$0xff]  ;;  %v3371_v6 = vld [vmem:[#allocation6 + $0x250] sm:$0xff]  ;;  %v3374_v7 = vld [vmem:[#allocation6 + $0x268] sm:$0xff] }
0x159f   :  { %v3376_v47 = vld [vmem:[#allocation6 + $0x278] sm:$0xff]  ;;  %v3373_v61 = vld [vmem:[#allocation6 + $0x260] sm:$0xff]  ;;  %v3375_v49 = vld [vmem:[#allocation6 + $0x270] sm:$0xff] }
0x15a0   :  { %3460 = vmatpush1.bf16.msra.mxu1 %v3321_v57  ;;  %3542 = vmatpush1.bf16.msra.mxu0 %v3323_v51  ;;  %v3378_v63 = vld [vmem:[#allocation6 + $0x288] sm:$0xff]  ;;  %v3380_v30 = vld [vmem:[#allocation6 + $0x298] sm:$0xff]  ;;  %v3377_v50 = vld [vmem:[#allocation6 + $0x280] sm:$0xff] }
0x15a1   :  { %3461 = vmatprep.subr.bf16.mxu1 %v3326_v28  ;;  %3543 = vmatprep.subr.bf16.mxu0 %v3328_v11  ;;  %v3379_v57 = vld [vmem:[#allocation6 + $0x290] sm:$0xff]  ;;  %v3382_v51 = vld [vmem:[#allocation6 + $0x2a8] sm:$0xff]  ;;  %v3384_v28 = vld [vmem:[#allocation6 + $0x2b8] sm:$0xff] }
0x15a2   :  { %v3381_v11 = vld [vmem:[#allocation6 + $0x2a0] sm:$0xff] }
0x15a4   :  { %3462 = vmatpush1.bf16.msra.mxu1 %v3325_v18  ;;  %3544 = vmatpush1.bf16.msra.mxu0 %v3327_v44  ;;  %v3383_v18 = vld [vmem:[#allocation6 + $0x2b0] sm:$0xff]  ;;  %v3386_v44 = vld [vmem:[#allocation6 + $0x2c8] sm:$0xff] }
0x15a5   :  { %3463 = vmatprep.subr.bf16.mxu1 %v3330_v8  ;;  %3545 = vmatprep.subr.bf16.mxu0 %v3332_v20  ;;  %v3388_v8 = vld [vmem:[#allocation6 + $0x2d8] sm:$0xff]  ;;  %v3385_v20 = vld [vmem:[#allocation6 + $0x2c0] sm:$0xff] }
0x15a8   :  { %3464 = vmatpush1.bf16.msra.mxu1 %v3329_v58  ;;  %3546 = vmatpush1.bf16.msra.mxu0 %v3331_v52  ;;  %v3387_v58 = vld [vmem:[#allocation6 + $0x2d0] sm:$0xff]  ;;  %v3390_v52 = vld [vmem:[#allocation6 + $0x2e8] sm:$0xff] }
0x15a9   :  { %3465 = vmatprep.subr.bf16.mxu1 %v3334_v25  ;;  %3547 = vmatprep.subr.bf16.mxu0 %v3336_v53  ;;  %v3392_v25 = vld [vmem:[#allocation6 + $0x2f8] sm:$0xff]  ;;  %v3389_v53 = vld [vmem:[#allocation6 + $0x2e0] sm:$0xff] }
0x15ac   :  { %3466 = vmatpush1.bf16.msra.mxu1 %v3333_v43  ;;  %3548 = vmatpush1.bf16.msra.mxu0 %v3335_v21  ;;  %v3391_v43 = vld [vmem:[#allocation6 + $0x2f0] sm:$0xff]  ;;  %v3394_v21 = vld [vmem:[#allocation6 + $0x308] sm:$0xff] }
0x15ad   :  { %3467 = vmatprep.subr.bf16.mxu1 %v3338_v29  ;;  %3549 = vmatprep.subr.bf16.mxu0 %v3340_v26  ;;  %v3396_v29 = vld [vmem:[#allocation6 + $0x318] sm:$0xff]  ;;  %v3393_v26 = vld [vmem:[#allocation6 + $0x300] sm:$0xff] }
0x15b0   :  { %3468 = vmatpush1.bf16.msra.mxu1 %v3337_v32  ;;  %3550 = vmatpush1.bf16.msra.mxu0 %v3339_v54  ;;  %v3395_v32 = vld [vmem:[#allocation6 + $0x310] sm:$0xff]  ;;  %v3398_v54 = vld [vmem:[#allocation6 + $0x328] sm:$0xff] }
0x15b1   :  { %3469 = vmatprep.subr.bf16.mxu1 %v3342_v22  ;;  %3551 = vmatprep.subr.bf16.mxu0 %v3344_v31  ;;  %v3400_v22 = vld [vmem:[#allocation6 + $0x338] sm:$0xff]  ;;  %v3397_v31 = vld [vmem:[#allocation6 + $0x320] sm:$0xff] }
0x15b4   :  { %3470 = vmatpush1.bf16.msra.mxu1 %v3341_v9  ;;  %3552 = vmatpush1.bf16.msra.mxu0 %v3343_v27  ;;  %v3399_v9 = vld [vmem:[#allocation6 + $0x330] sm:$0xff]  ;;  %v3402_v27 = vld [vmem:[#allocation6 + $0x348] sm:$0xff] }
0x15b5   :  { %3471 = vmatprep.subr.bf16.mxu1 %v3346_v33  ;;  %3553 = vmatprep.subr.bf16.mxu0 %v3348_v10  ;;  %v3404_v33 = vld [vmem:[#allocation6 + $0x358] sm:$0xff]  ;;  %v3401_v10 = vld [vmem:[#allocation6 + $0x340] sm:$0xff] }
0x15b8   :  { %3472 = vmatpush1.bf16.msra.mxu1 %v3345_v12  ;;  %3554 = vmatpush1.bf16.msra.mxu0 %v3347_v15  ;;  %v3403_v12 = vld [vmem:[#allocation6 + $0x350] sm:$0xff]  ;;  %v3406_v15 = vld [vmem:[#allocation6 + $0x368] sm:$0xff] }
0x15b9   :  { %3473 = vmatprep.subr.bf16.mxu1 %v3350_v23  ;;  %3555 = vmatprep.subr.bf16.mxu0 %v3352_v24  ;;  %v3408_v23 = vld [vmem:[#allocation6 + $0x378] sm:$0xff]  ;;  %v3405_v24 = vld [vmem:[#allocation6 + $0x360] sm:$0xff] }
0x15bc   :  { %3474 = vmatpush1.bf16.msra.mxu1 %v3349_v35  ;;  %3556 = vmatpush1.bf16.msra.mxu0 %v3351_v36  ;;  %v3407_v35 = vld [vmem:[#allocation6 + $0x370] sm:$0xff]  ;;  %v3410_v36 = vld [vmem:[#allocation6 + $0x388] sm:$0xff] }
0x15bd   :  { %3475 = vmatprep.subr.bf16.mxu1 %v3354_v16  ;;  %3557 = vmatprep.subr.bf16.mxu0 %v3356_v19  ;;  %v3412_v16 = vld [vmem:[#allocation6 + $0x398] sm:$0xff]  ;;  %v3409_v19 = vld [vmem:[#allocation6 + $0x380] sm:$0xff] }
0x15c0   :  { %3476 = vmatpush1.bf16.msra.mxu1 %v3353_v38  ;;  %3558 = vmatpush1.bf16.msra.mxu0 %v3355_v42  ;;  %v3411_v38 = vld [vmem:[#allocation6 + $0x390] sm:$0xff]  ;;  %v3414_v42 = vld [vmem:[#allocation6 + $0x3a8] sm:$0xff] }
0x15c1   :  { %3477 = vmatprep.subr.bf16.mxu1 %v3358_v0  ;;  %3559 = vmatprep.subr.bf16.mxu0 %v3360_v45  ;;  %v3416_v0 = vld [vmem:[#allocation6 + $0x3b8] sm:$0xff]  ;;  %v3413_v45 = vld [vmem:[#allocation6 + $0x3a0] sm:$0xff] }
0x15c4   :  { %3478 = vmatpush1.bf16.msra.mxu1 %v3357_v55  ;;  %3560 = vmatpush1.bf16.msra.mxu0 %v3359_v40  ;;  %v3415_v55 = vld [vmem:[#allocation6 + $0x3b0] sm:$0xff]  ;;  %v3418_v40 = vld [vmem:[#allocation6 + $0x3c8] sm:$0xff] }
0x15c5   :  { %3488 = vmatprep.subr.bf16.mxu1 %v3362_v41  ;;  %3570 = vmatprep.subr.bf16.mxu0 %v3364_v46  ;;  %v3420_v41 = vld [vmem:[#allocation6 + $0x3d8] sm:$0xff]  ;;  %v3417_v46 = vld [vmem:[#allocation6 + $0x3c0] sm:$0xff] }
0x15c7   :  { %3480 = vmatmul.mubr.bf16.vlgmr.msra.gmra.mrb[40].mxu1 %v3293_v48  ;;  %3562 = vmatmul.mubr.bf16.vlgmr.msra.gmra.mrb[32].mxu0 %v3293_v48  ;;  %v3419_v48 = vld [vmem:[#allocation6 + $0x3d0] sm:$0xff] }
0x15c8   :  { %3489 = vmatpush1.bf16.msra.mxu1 %v3361_v59  ;;  %3571 = vmatpush1.bf16.msra.mxu0 %v3363_v39  ;;  %v3422_v59 = vld [vmem:[#allocation6 + $0x3e8] sm:$0xff]  ;;  %v3424_v39 = vld [vmem:[#allocation6 + $0x3f8] sm:$0xff] }
0x15c9   :  { %3490 = vmatprep.subr.bf16.mxu1 %v3366_v34  ;;  %3572 = vmatprep.subr.bf16.mxu0 %v3368_v62  ;;  %v3421_v34 = vld [vmem:[#allocation6 + $0x3e0] sm:$0xff]  ;;  %v3423_v62 = vld [vmem:[#allocation6 + $0x3f0] sm:$0xff] }
0x15ca   :  { %3520 = vmatprep.mubr.bf16.mxu1 %v3296_v5  ;;  %3602 = vmatprep.mubr.bf16.mxu0 %v3296_v5  ;;  %v3295_v5 = vpack.c.bf16 %v5403_v37, %v5403_v37 }
0x15cc   :  { %3491 = vmatpush1.bf16.msra.mxu1 %v3365_v56  ;;  %3573 = vmatpush1.bf16.msra.mxu0 %v3367_v4  ;;  %v3425_v56 = vld [vmem:[%s5548_s29] sm:$0xf] }
0x15cd   :  { %3492 = vmatprep.subr.bf16.mxu1 %v3370_v13  ;;  %3574 = vmatprep.subr.bf16.mxu0 %v3372_v60  ;;  %v3430_v4 = vrot.slane %v3425_v56, %v5153_v14  ;;  %v3438_v13 = vrot.slane %v3425_v56, %v5285_v1  ;;  %v3434_v60 = vrot.slane %v3425_v56, %v5159_v17 }
0x15d0   :  { %3493 = vmatpush1.bf16.msra.mxu1 %v3369_v3  ;;  %3575 = vmatpush1.bf16.msra.mxu0 %v3371_v6  ;;  %v3442_v3 = vrot.slane %v3425_v56, %v5291_v2 }
0x15d1   :  { %3494 = vmatprep.subr.bf16.mxu1 %v3374_v7  ;;  %3576 = vmatprep.subr.bf16.mxu0 %v3376_v47 }
0x15d4   :  { %3495 = vmatpush1.bf16.msra.mxu1 %v3373_v61  ;;  %3577 = vmatpush1.bf16.msra.mxu0 %v3375_v49 }
0x15d5   :  { %3496 = vmatprep.subr.bf16.mxu1 %v3378_v63  ;;  %3578 = vmatprep.subr.bf16.mxu0 %v3380_v30 }
0x15d8   :  { %3497 = vmatpush1.bf16.msra.mxu1 %v3377_v50  ;;  %3579 = vmatpush1.bf16.msra.mxu0 %v3379_v57 }
0x15d9   :  { %3498 = vmatprep.subr.bf16.mxu1 %v3382_v51  ;;  %3580 = vmatprep.subr.bf16.mxu0 %v3384_v28 }
0x15dc   :  { %3499 = vmatpush1.bf16.msra.mxu1 %v3381_v11  ;;  %3581 = vmatpush1.bf16.msra.mxu0 %v3383_v18 }
0x15dd   :  { %3500 = vmatprep.subr.bf16.mxu1 %v3386_v44  ;;  %3582 = vmatprep.subr.bf16.mxu0 %v3388_v8 }
0x15e0   :  { %3501 = vmatpush1.bf16.msra.mxu1 %v3385_v20  ;;  %3583 = vmatpush1.bf16.msra.mxu0 %v3387_v58 }
0x15e1   :  { %3502 = vmatprep.subr.bf16.mxu1 %v3390_v52  ;;  %3584 = vmatprep.subr.bf16.mxu0 %v3392_v25 }
0x15e4   :  { %3503 = vmatpush1.bf16.msra.mxu1 %v3389_v53  ;;  %3585 = vmatpush1.bf16.msra.mxu0 %v3391_v43 }
0x15e5   :  { %3504 = vmatprep.subr.bf16.mxu1 %v3394_v21  ;;  %3586 = vmatprep.subr.bf16.mxu0 %v3396_v29 }
0x15e8   :  { %3505 = vmatpush1.bf16.msra.mxu1 %v3393_v26  ;;  %3587 = vmatpush1.bf16.msra.mxu0 %v3395_v32 }
0x15e9   :  { %3506 = vmatprep.subr.bf16.mxu1 %v3398_v54  ;;  %3588 = vmatprep.subr.bf16.mxu0 %v3400_v22 }
0x15ec   :  { %3507 = vmatpush1.bf16.msra.mxu1 %v3397_v31  ;;  %3589 = vmatpush1.bf16.msra.mxu0 %v3399_v9 }
0x15ed   :  { %3508 = vmatprep.subr.bf16.mxu1 %v3402_v27  ;;  %3590 = vmatprep.subr.bf16.mxu0 %v3404_v33 }
0x15f0   :  { %3509 = vmatpush1.bf16.msra.mxu1 %v3401_v10  ;;  %3591 = vmatpush1.bf16.msra.mxu0 %v3403_v12 }
0x15f1   :  { %3510 = vmatprep.subr.bf16.mxu1 %v3406_v15  ;;  %3592 = vmatprep.subr.bf16.mxu0 %v3408_v23 }
0x15f4   :  { %3511 = vmatpush1.bf16.msra.mxu1 %v3405_v24  ;;  %3593 = vmatpush1.bf16.msra.mxu0 %v3407_v35 }
0x15f5   :  { %3512 = vmatprep.subr.bf16.mxu1 %v3410_v36  ;;  %3594 = vmatprep.subr.bf16.mxu0 %v3412_v16 }
0x15f8   :  { %3513 = vmatpush1.bf16.msra.mxu1 %v3409_v19  ;;  %3595 = vmatpush1.bf16.msra.mxu0 %v3411_v38 }
0x15f9   :  { %3514 = vmatprep.subr.bf16.mxu1 %v3414_v42  ;;  %3596 = vmatprep.subr.bf16.mxu0 %v3416_v0 }
0x15fc   :  { %3515 = vmatpush1.bf16.msra.mxu1 %v3413_v45  ;;  %3597 = vmatpush1.bf16.msra.mxu0 %v3415_v55 }
0x15fd   :  { %3516 = vmatprep.subr.bf16.mxu1 %v3418_v40  ;;  %3598 = vmatprep.subr.bf16.mxu0 %v3420_v41 }
0x1600   :  { %3517 = vmatpush1.bf16.msra.mxu1 %v3417_v46  ;;  %3599 = vmatpush1.bf16.msra.mxu0 %v3419_v48 }
0x1601   :  { %3518 = vmatprep.subr.bf16.mxu1 %v3422_v59  ;;  %3600 = vmatprep.subr.bf16.mxu0 %v3424_v39 }
0x1604   :  { %3519 = vmatpush1.bf16.msra.mxu1 %v3421_v34  ;;  %3601 = vmatpush1.bf16.msra.mxu0 %v3423_v62 }
0x1607   :  { %3521 = vmatmul.mubr.bf16.vlgmr.msra.gmra.mrb[40].mxu1 %v3295_v5  ;;  %3603 = vmatmul.mubr.bf16.vlgmr.msra.gmra.mrb[32].mxu0 %v3295_v5 }
0x16da   :  { %v3522_v6 = vpop.f32.mrb[40].mxu1  ;;  %v3604_v7 = vpop.f32.mrb[32].mxu0 }
0x16db   :  { %v5420_v47 = vadd.f32 %v3522_v6, %v3430_v4  ;;  %v5422_v37 = vadd.f32 %v3604_v7, %v3438_v13  ;;  %v3524_v61 = vpop.f32.mrb[41].mxu1  ;;  %v3606_v49 = vpop.f32.mrb[33].mxu0 }
0x16dc   :  { %v4163_v63 = vadd.f32 %v3524_v61, %v3434_v60  ;;  %v4165_v30 = vadd.f32 %v3606_v49, %v3442_v3  ;;  %v3526_v50 = vpop.f32.mrb[42].mxu1  ;;  %v3608_v57 = vpop.f32.mrb[34].mxu0 }
0x16dd   :  { %v3611_v14 = vmax.f32 %v5420_v47, 0.0  ;;  %v3613_v1 = vmax.f32 %v5422_v37, 0.0  ;;  %v3527_v51 = vpop.f32.mrb[43].mxu1  ;;  %v3609_v17 = vpop.f32.mrb[35].mxu0 }
0x16de   :  { %v3612_v28 = vmax.f32 %v4163_v63, 0.0  ;;  %v3614_v2 = vmax.f32 %v4165_v30, 0.0 }
0x16df   :  { %4715 = dma.done.wait [#allocation9 + $0x3], 4096 }
0x16e0   :  { %4716 = vsyncadd [#allocation9 + $0x3], 4294963200  ;;  %v3619_v11 = vpack.c.bf16 %v3612_v28, %v3612_v28  ;;  %v3621_v18 = vpack.c.bf16 %v3614_v2, %v3614_v2  ;;  %v3630_v44 = vld [vmem:[#allocation7 + $0x40] sm:$0xff]  ;;  %v3631_v52 = vld [vmem:[#allocation7 + $0x48] sm:$0xff]  ;;  %v3618_v40 = vpack.c.bf16 %v3611_v14, %v3611_v14  ;;  %v3620_v41 = vpack.c.bf16 %v3613_v1, %v3613_v1  ;;  %s4757_s5 = smov [#allocation25]  }
0x16e1   :  { %v3646_v8 = vld [vmem:[#allocation7 + $0xc0] sm:$0xff]  ;;  %4094 = vmatprep.subr.bf16.mxu1 %v3630_v44  ;;  %v3647_v25 = vld [vmem:[#allocation7 + $0xc8] sm:$0xff]  ;;  %v3632_v21 = vld [vmem:[#allocation7 + $0x50] sm:$0xff]  ;;  %s3751_s19 = sshll.u32 %s4757_s5, 4  ;;  %s3752_s19 = int_to_ptr.vmem [resolvable:$true] %s3751_s19 }
0x16e2   :  { %3687 = vmatprep.mubr.bf16.mxu1 %v3619_v11  ;;  %3727 = vmatprep.mubr.bf16.mxu0 %v3621_v18  ;;  %v3622_v20 = vld [vmem:[#allocation7] sm:$0xff]  ;;  %v3623_v53 = vld [vmem:[#allocation7 + $0x8] sm:$0xff]  ;;  %v3648_v29 = vld [vmem:[#allocation7 + $0xd0] sm:$0xff]  ;;  %s4645_s27 = scalar_lea.vmem %s3752_s19, 256  ;;  %p4650_p12 = scmp.lt.s32.totalorder %s3752_s19, %s3752_s19 }
0x16e3   :  { %4116 = vmatprep.subr.bf16.mxu0 %v3646_v8  ;;  %v3638_v58 = vld [vmem:[#allocation7 + $0x80] sm:$0xff]  ;;  %4095 = vmatpush3.bf16.msra.mxu1 %v3622_v20  ;;  %v3639_v43 = vld [vmem:[#allocation7 + $0x88] sm:$0xff]  ;;  %v3624_v26 = vld [vmem:[#allocation7 + $0x10] sm:$0xff]  ;;  %p4646_p9 = scmp.ne.s32.totalorder %s3752_s19, %s4645_s27  ;;  %p4651_p13 = scmp.lt.s32.totalorder %s4645_s27, %s4645_s27 }
0x16e4   :  { %4117 = vmatpush3.bf16.msra.mxu0 %v3638_v58  ;;  %4096 = vmatprep.subr.bf16.mxu1 %v3631_v52  ;;  %v3640_v32 = vld [vmem:[#allocation7 + $0x90] sm:$0xff]  ;;  %v3633_v54 = vld [vmem:[#allocation7 + $0x58] sm:$0xff]  ;;  %v3634_v27 = vld [vmem:[#allocation7 + $0x60] sm:$0xff] }
0x16e5   :  { %4118 = vmatprep.subr.bf16.mxu0 %v3647_v25  ;;  %v3649_v22 = vld [vmem:[#allocation7 + $0xd8] sm:$0xff]  ;;  %v3650_v33 = vld [vmem:[#allocation7 + $0xe0] sm:$0xff]  ;;  %v3635_v15 = vld [vmem:[#allocation7 + $0x68] sm:$0xff]  ;;  %p4652_p0 = por %p4651_p13, %p4650_p12 }
0x16e6   :  { %v3625_v31 = vld [vmem:[#allocation7 + $0x18] sm:$0xff]  ;;  %v3626_v10 = vld [vmem:[#allocation7 + $0x20] sm:$0xff]  ;;  %v3651_v23 = vld [vmem:[#allocation7 + $0xe8] sm:$0xff] }
0x16e7   :  { %4097 = vmatpush3.bf16.msra.mxu1 %v3623_v53  ;;  %v3641_v9 = vld [vmem:[#allocation7 + $0x98] sm:$0xff]  ;;  %v3642_v12 = vld [vmem:[#allocation7 + $0xa0] sm:$0xff]  ;;  %v3627_v24 = vld [vmem:[#allocation7 + $0x28] sm:$0xff]  ;;  %p4653_p1 = pnand %p4652_p0, %p4646_p9 }
0x16e8   :  { %4119 = vmatpush3.bf16.msra.mxu0 %v3639_v43  ;;  %4098 = vmatprep.subr.bf16.mxu1 %v3632_v21  ;;  %v3643_v35 = vld [vmem:[#allocation7 + $0xa8] sm:$0xff]  ;;  %v3636_v36 = vld [vmem:[#allocation7 + $0x70] sm:$0xff]  ;;  %v3637_v42 = vld [vmem:[#allocation7 + $0x78] sm:$0xff] }
0x16e9   :  { %4120 = vmatprep.subr.bf16.mxu0 %v3648_v29  ;;  %v3652_v16 = vld [vmem:[#allocation7 + $0xf0] sm:$0xff]  ;;  %v3653_v0 = vld [vmem:[#allocation7 + $0xf8] sm:$0xff] }
0x16ea   :  { %v3628_v19 = vld [vmem:[#allocation7 + $0x30] sm:$0xff]  ;;  %v3629_v45 = vld [vmem:[#allocation7 + $0x38] sm:$0xff] }
0x16eb   :  { %4099 = vmatpush3.bf16.msra.mxu1 %v3624_v26  ;;  %v3644_v38 = vld [vmem:[#allocation7 + $0xb0] sm:$0xff]  ;;  %v3645_v55 = vld [vmem:[#allocation7 + $0xb8] sm:$0xff] }
0x16ec   :  { %4121 = vmatpush3.bf16.msra.mxu0 %v3640_v32  ;;  %4100 = vmatprep.subr.bf16.mxu1 %v3633_v54 }
0x16ed   :  { %4122 = vmatprep.subr.bf16.mxu0 %v3649_v22 }
0x16ef   :  { %4101 = vmatpush3.bf16.msra.mxu1 %v3625_v31 }
0x16f0   :  { %4123 = vmatpush3.bf16.msra.mxu0 %v3641_v9  ;;  %4102 = vmatprep.subr.bf16.mxu1 %v3634_v27 }
0x16f1   :  { %4124 = vmatprep.subr.bf16.mxu0 %v3650_v33 }
0x16f3   :  { %4103 = vmatpush3.bf16.msra.mxu1 %v3626_v10 }
0x16f4   :  { %4125 = vmatpush3.bf16.msra.mxu0 %v3642_v12  ;;  %4104 = vmatprep.subr.bf16.mxu1 %v3635_v15 }
0x16f5   :  { %4126 = vmatprep.subr.bf16.mxu0 %v3651_v23 }
0x16f7   :  { %4105 = vmatpush3.bf16.msra.mxu1 %v3627_v24 }
0x16f8   :  { %4127 = vmatpush3.bf16.msra.mxu0 %v3643_v35  ;;  %4106 = vmatprep.subr.bf16.mxu1 %v3636_v36 }
0x16f9   :  { %4128 = vmatprep.subr.bf16.mxu0 %v3652_v16 }
0x16fb   :  { %4107 = vmatpush3.bf16.msra.mxu1 %v3628_v19 }
0x16fc   :  { %4129 = vmatpush3.bf16.msra.mxu0 %v3644_v38  ;;  %4108 = vmatprep.subr.bf16.mxu1 %v3637_v42 }
0x16fd   :  { %4130 = vmatprep.subr.bf16.mxu0 %v3653_v0 }
0x16ff   :  { %4109 = vmatpush3.bf16.msra.mxu1 %v3629_v45 }
0x1700   :  { %4131 = vmatpush3.bf16.msra.mxu0 %v3645_v55 }
0x1702   :  { %3688 = vmatmul.mubr.bf16.vlgmr.msra.gmra.mrb[44].mxu1 %v3618_v40 }
0x1703   :  { %3728 = vmatmul.mubr.bf16.vlgmr.msra.gmra.mrb[36].mxu0 %v3620_v41 }
0x1704   :  { %4656 = shalt.err (!%p4653_p1)
}
0x1705   :  { %s5549_s7 = sld [smem:[#allocation76_spill]] }
0x170b   :  { %s4657_s2 = scalar_lea.hbm %s5549_s7, 256 }
0x170c   :  { %p4658_p2 = scmp.ne.s32.totalorder %s5549_s7, %s4657_s2  ;;  %p4661_p10 = scmp.lt.u32.totalorder %s4657_s2, %s5549_s7 }
0x170e   :  { %p4663_p11 = pnand %p4661_p10, %p4658_p2 }
0x1710   :  { %4666 = shalt.err (!%p4663_p11)
}
0x1711   :  { %3757 = dma.vmem_to_hbm [thread:$0]  %s3752_s19, 256, %s5549_s7, [#allocation26], %s5539_s17, %s5539_s17, %s5542_s25  }
0x1712   :  { %s5550_s9 = sld [smem:[#allocation74_spill]]  ;;  %s4758_s15 = smov [#allocation24]  }
0x1713   :  { %s3742_s20 = sshll.u32 %s4758_s15, 4  ;;  %s3743_s20 = int_to_ptr.vmem [resolvable:$true] %s3742_s20 }
0x1714   :  { %s4667_s17 = scalar_lea.vmem %s3743_s20, 16  ;;  %s4671_s25 = scalar_lea.vmem %s3743_s20, 32 }
0x1715   :  { %p4668_p3 = scmp.ne.s32.totalorder %s3743_s20, %s4667_s17  ;;  %p4672_p4 = scmp.lt.s32.totalorder %s3743_s20, %s3743_s20 }
0x1716   :  { %p4673_p5 = scmp.lt.s32.totalorder %s4671_s25, %s4667_s17 }
0x1718   :  { %v3654_v59 = vld [vmem:[%s5550_s9] sm:$0x1]  ;;  %p4674_p6 = por %p4673_p5, %p4672_p4 }
0x171a   :  { %p4675_p7 = pnand %p4674_p6, %p4668_p3 }
0x17d5   :  { %v4110_v46 = vpop.f32.mrb[44].mxu1 }
0x17d6   :  { %v4132_v48 = vpop.f32.mrb[36].mxu0  ;;  %v4111_v39 = vpop.f32.mrb[45].mxu1 }
0x17d7   :  { %v4133_v34 = vpop.f32.mrb[37].mxu0  ;;  %v4112_v62 = vadd.f32 %v4111_v39, %v4110_v46  ;;  %v4113_v56 = vpop.f32.mrb[46].mxu1 }
0x17d8   :  { %v4134_v5 = vadd.f32 %v4133_v34, %v4132_v48  ;;  %v4135_v4 = vpop.f32.mrb[38].mxu0  ;;  %v4114_v13 = vpop.f32.mrb[47].mxu1 }
0x17d9   :  { %v4136_v60 = vpop.f32.mrb[39].mxu0  ;;  %v3690_v3 = vadd.f32 %v4112_v62, %v3654_v59 }
0x17db   :  { %v3730_v6 = vadd.f32 %v4134_v5, %v3690_v3 }
0x17dd   :  { %3735 = vst [vmem:[#allocation24] sm:$0x1] %v3730_v6 }
0x17de   :  { %4678 = shalt.err (!%p4675_p7)
}
0x17df   :  { %s5551_s12 = sld [smem:[#allocation75_spill]] }
0x17e5   :  { %s4679_s13 = scalar_lea.hbm %s5551_s12, 16 }
0x17e6   :  { %p4680_p8 = scmp.ne.s32.totalorder %s5551_s12, %s4679_s13  ;;  %p4683_p9 = scmp.lt.u32.totalorder %s4679_s13, %s5551_s12 }
0x17e8   :  { %p4685_p12 = pnand %p4683_p9, %p4680_p8 }
0x17ea   :  { %4688 = shalt.err (!%p4685_p12)
}
0x17eb   :  { %3745 = dma.vmem_to_hbm [thread:$0]  %s3743_s20, 16, %s5551_s12, [#allocation13]  }
0x17ec   :  { %4717 = dma.done.wait [#allocation13], 16  }
0x17ed   :  { %4718 = vsyncadd [#allocation13], 4294967280 }
0x17ee   :  { %4719 = dma.done.wait [#allocation26], 256  }
0x17ef   :  { %4720 = vsyncadd [#allocation26], 4294967040 }
0x17f0   :  { %3764 = vsyncpa [#allocation12], 1 }
0x17f1   :  { %3765 = vsyncpa [#allocation16], 1 }
0x17f2   :  { %3766 = vsyncpa [#allocation20], 1 }
0x17f3   :  { %3767 = vsyncpa [#allocation23], 1 }
0x17f4   :  { %3768 = vsyncpa [#allocation13], 1 }
0x17f5   :  { %3769 = vsyncpa [#allocation26], 1 }
0x17f6   :  { %3770 = vsyncpa [#allocation14], 1 }
0x17f7   :  { %3771 = vsyncmov [#allocation8] }
0x17fa   :  { %s3772_s29 = vpop.sfrf %3771 }
0x17fb   :  { %p3954_p13 = scmp.ne.s32.totalorder %s3772_s29, 0 }
0x17fd   :  { %3776 = shalt.err (%p3954_p13)  }
0x17fe   :  { %3778 = vsyncmov [#allocation8 + $0x1] }
0x1801   :  { %s3779_s5 = vpop.sfrf %3778 }
0x1802   :  { %p3955_p0 = scmp.ne.s32.totalorder %s3779_s5, 0 }
0x1804   :  { %3783 = shalt.err (%p3955_p0)  }
0x1805   :  { %3785 = vsyncmov [#allocation8 + $0x2] }
0x1808   :  { %s3786_s19 = vpop.sfrf %3785 }
0x1809   :  { %p3956_p1 = scmp.ne.s32.totalorder %s3786_s19, 0 }
0x180b   :  { %3790 = shalt.err (%p3956_p1)  }
0x180c   :  { %3792 = vsyncmov [#allocation8 + $0x3] }
0x180f   :  { %s3793_s27 = vpop.sfrf %3792 }
0x1810   :  { %p3957_p2 = scmp.ne.s32.totalorder %s3793_s27, 0 }
0x1812   :  { %3797 = shalt.err (%p3957_p2)  }
0x1813   :  { %3798 = vsyncmov [#allocation9] }
0x1816   :  { %s3799_s1 = vpop.sfrf %3798 }
0x1817   :  { %p3958_p10 = scmp.ne.s32.totalorder %s3799_s1, 0 }
0x1819   :  { %3803 = shalt.err (%p3958_p10)  }
0x181a   :  { %3805 = vsyncmov [#allocation9 + $0x1] }
0x181d   :  { %s3806_s21 = vpop.sfrf %3805 }
0x181e   :  { %p3959_p11 = scmp.ne.s32.totalorder %s3806_s21, 0 }
0x1820   :  { %3810 = shalt.err (%p3959_p11)  }
0x1821   :  { %3812 = vsyncmov [#allocation9 + $0x2] }
0x1824   :  { %s3813_s7 = vpop.sfrf %3812 }
0x1825   :  { %p3960_p3 = scmp.ne.s32.totalorder %s3813_s7, 0 }
0x1827   :  { %3817 = shalt.err (%p3960_p3)  }
0x1828   :  { %3819 = vsyncmov [#allocation9 + $0x3] }
0x182b   :  { %s3820_s2 = vpop.sfrf %3819 }
0x182c   :  { %p3961_p4 = scmp.ne.s32.totalorder %s3820_s2, 0 }
0x182e   :  { %3824 = shalt.err (%p3961_p4)  }

</bundles_post_ra>
